<compile_context>
chip_gen: v7x
topology: tpu7x:2x2x1
jax: 0.10.0
libtpu: 0.0.40
codegen_flags: <defaults>
</compile_context>

<pallas_src>
import functools
import math

import numpy as np
import jax
import jax.numpy as jnp
from jax import lax
from jax.experimental import pallas as pl
from jax.experimental.pallas import tpu as pltpu

BN_EPS = 1e-5
_VMEM_SPEC = pl.BlockSpec(memory_space=pltpu.MemorySpace.VMEM)


def _round_up(x, m):
    return (x + m - 1) // m * m


def _pick_tile(p, pref):
    """Largest tile <= pref dividing padded dim p; prefer 256-multiples
    (2x256x256 MXU on v6e/v7x), fall back to 128 (v5e's 4x128x128)."""
    if p <= pref:
        return p
    if p % pref == 0:
        return pref
    t = (pref // 256) * 256
    while t >= 256:
        if p % t == 0:
            return t
        t -= 256
    t = (pref // 128) * 128
    while t >= 128:
        if p % t == 0:
            return t
        t -= 128
    return 128


# --------------------------------------------------------------------------- #
# Tiled matmul + fused affine / log-softmax epilogue (used for the small FCs)
# --------------------------------------------------------------------------- #
def _make_mm_kernel(*, do_lsm, n_valid):
    def kernel(a_ref, b_ref, s_ref, t_ref, o_ref, acc_ref):
        k = pl.program_id(2)

        @pl.when(k == 0)
        def _():
            acc_ref[...] = jnp.zeros_like(acc_ref)

        acc_ref[...] += jnp.dot(a_ref[...], b_ref[...],
                                preferred_element_type=jnp.float32)

        @pl.when(k == pl.num_programs(2) - 1)
        def _():
            out = acc_ref[...] * s_ref[...] + t_ref[...]
            if do_lsm:
                col = lax.broadcasted_iota(jnp.int32, out.shape, 1)
                out = jnp.where(col < n_valid, out, -1e30)
                m = jnp.max(out, axis=-1, keepdims=True)
                sh = out - m
                out = sh - jnp.log(jnp.sum(jnp.exp(sh), axis=-1, keepdims=True))
            o_ref[...] = out.astype(o_ref.dtype)

    return kernel


def matmul_affine(a, b, scale=None, shift=None, *, log_softmax=False,
                  out_dtype=jnp.float32, tm=256, tn=256, tk=512):
    """out = epilogue((a @ b) * scale + shift); scale/shift broadcast per column."""
    M, K = a.shape
    K2, N = b.shape
    assert K == K2
    if scale is None:
        scale = jnp.ones((N,), jnp.float32)
    if shift is None:
        shift = jnp.zeros((N,), jnp.float32)

    Mp = _round_up(M, 8)
    tm_e = min(tm, Mp)
    Mp = _round_up(Mp, tm_e)
    Kp = _round_up(K, 128)                # lane-dense A tiles even for tiny K
    tk_e = _pick_tile(Kp, tk)
    Np = _round_up(N, 128)
    tn_e = _pick_tile(Np, tn)
    if log_softmax:
        assert Np == tn_e, "log-softmax fusion needs the whole row in one N tile"

    a_p = jnp.pad(a.astype(jnp.bfloat16), ((0, Mp - M), (0, Kp - K)))
    b_p = jnp.pad(b.astype(jnp.bfloat16), ((0, Kp - K), (0, Np - N)))
    s_p = jnp.pad(scale.astype(jnp.float32), (0, Np - N),
                  constant_values=1.0).reshape(1, Np)
    t_p = jnp.pad(shift.astype(jnp.float32), (0, Np - N)).reshape(1, Np)

    grid = (Mp // tm_e, Np // tn_e, Kp // tk_e)
    kernel = _make_mm_kernel(do_lsm=log_softmax, n_valid=N)
    cost = pl.CostEstimate(
        flops=2 * Mp * Kp * Np,
        transcendentals=(Mp * Np if log_softmax else 0),
        bytes_accessed=Mp * Kp * 2 + Kp * Np * 2 + Mp * Np * 4)

    out = pl.pallas_call(
        kernel,
        out_shape=jax.ShapeDtypeStruct((Mp, Np), out_dtype),
        grid=grid,
        in_specs=[pl.BlockSpec((tm_e, tk_e), lambda i, j, k: (i, k)),
                  pl.BlockSpec((tk_e, tn_e), lambda i, j, k: (k, j)),
                  pl.BlockSpec((1, tn_e), lambda i, j, k: (0, j)),
                  pl.BlockSpec((1, tn_e), lambda i, j, k: (0, j))],
        out_specs=pl.BlockSpec((tm_e, tn_e), lambda i, j, k: (i, j)),
        scratch_shapes=[pltpu.VMEM((tm_e, tn_e), jnp.float32)],
        compiler_params=pltpu.CompilerParams(
            dimension_semantics=("parallel", "parallel", "arbitrary"),
            vmem_limit_bytes=32 * 1024 * 1024),
        cost_estimate=cost,
    )(a_p, b_p, s_p, t_p)
    return out[:M, :N]


# --------------------------------------------------------------------------- #
# ConvFrontend: Conv3d(1,C1,(5,7,7),stride(1,2,2),pad(2,3,3)) + BN + ReLU
# In-kernel per-(dz,dy) banded matmul accumulation (no im2col).
# --------------------------------------------------------------------------- #
def _frontend_banded_weight(w, W):
    """w: (C1,1,5,7,7) -> (35, Wp, Wo*C1) banded weight; Wp = W+6, lane=wo*C1+co."""
    C1 = w.shape[0]
    Wp = W + 6
    Wo = (W + 6 - 7) // 2 + 1
    w0 = w[:, 0]                                                   # (C1,5,7,7)
    dx = np.arange(Wp)[:, None] - 2 * np.arange(Wo)[None, :]       # (Wp, Wo)
    valid = (dx >= 0) & (dx < 7)
    dxc = np.clip(dx, 0, 6)
    g = jnp.take(w0, jnp.asarray(dxc.reshape(-1)), axis=3)
    g = g.reshape(C1, 5, 7, Wp, Wo)
    g = g * jnp.asarray(valid, w.dtype)[None, None, None, :, :]
    g = jnp.transpose(g, (1, 2, 3, 4, 0))                          # (5,7,Wp,Wo,C1)
    return g.reshape(35, Wp, Wo * C1).astype(jnp.bfloat16), Wo, Wp


def _frontend_kernel(xe_ref, xo_ref, w_ref, sc_ref, sh_ref, o_ref, *, T, Ho, Wp, WoC):
    xe = xe_ref[...]                      # (T+4, ceil(Hp/2), Wp) bf16, even H rows
    xo = xo_ref[...]                      # odd H rows
    acc = jnp.zeros((T * Ho, WoC), jnp.float32)
    for dz in range(5):
        for dy in range(7):
            src = xe if dy % 2 == 0 else xo
            patch = src[dz:dz + T, dy // 2:dy // 2 + Ho, :]        # (T, Ho, Wp)
            patch = patch.reshape(T * Ho, Wp)
            acc = acc + jnp.dot(patch, w_ref[dz * 7 + dy],
                                preferred_element_type=jnp.float32)
    out = jnp.maximum(acc * sc_ref[...] + sh_ref[...], 0.0)
    o_ref[...] = out.reshape(T, Ho, WoC).astype(o_ref.dtype)


def frontend_conv_bn_relu(x, w, bn_scale, bn_shift):
    """x: (B,1,T,H,W) -> (B, T, Ho, Wo*C1) bf16, channels-last lane-packed."""
    B, _, T, H, W = x.shape
    C1 = w.shape[0]
    xpad = jnp.pad(x[:, 0], ((0, 0), (2, 2), (3, 3), (3, 3))).astype(jnp.bfloat16)
    xe = xpad[:, :, 0::2, :]                                       # (B, T+4, He, Wp)
    xo = xpad[:, :, 1::2, :]
    Tp, He, Wp_in = xe.shape[1], xe.shape[2], xe.shape[3]
    Ho_odd = xo.shape[2]
    Hout = (H + 6 - 7) // 2 + 1
    bw, Wo, Wp = _frontend_banded_weight(w, W)
    assert Wp == Wp_in
    WoC = Wo * C1
    sc = jnp.tile(bn_scale.astype(jnp.float32), Wo).reshape(1, WoC)
    sh = jnp.tile(bn_shift.astype(jnp.float32), Wo).reshape(1, WoC)

    return pl.pallas_call(
        functools.partial(_frontend_kernel, T=T, Ho=Hout, Wp=Wp, WoC=WoC),
        out_shape=jax.ShapeDtypeStruct((B, T, Hout, WoC), jnp.bfloat16),
        grid=(B,),
        in_specs=[pl.BlockSpec((None, Tp, He, Wp), lambda b: (b, 0, 0, 0)),
                  pl.BlockSpec((None, Tp, Ho_odd, Wp), lambda b: (b, 0, 0, 0)),
                  pl.BlockSpec((35, Wp, WoC), lambda b: (0, 0, 0)),
                  pl.BlockSpec((1, WoC), lambda b: (0, 0)),
                  pl.BlockSpec((1, WoC), lambda b: (0, 0))],
        out_specs=pl.BlockSpec((None, T, Hout, WoC), lambda b: (b, 0, 0, 0)),
        compiler_params=pltpu.CompilerParams(dimension_semantics=("parallel",)),
    )(xe, xo, bw, sc, sh)


# --------------------------------------------------------------------------- #
# MaxPool 3x3 / stride 2 / pad 1 (per-frame grid, channels-last lane-packed)
# --------------------------------------------------------------------------- #
def _maxpool_kernel(ee_ref, eo_ref, oe_ref, oo_ref, o_ref, *, Ho, Wo, C):
    WoC = Wo * C
    ee, eo, oe, oo = ee_ref[...], eo_ref[...], oe_ref[...], oo_ref[...]

    def tap(a, dh, dw):
        return a[dh:dh + Ho, dw * C:dw * C + WoC]

    m = tap(ee, 0, 0)
    for a, dh, dw in ((eo, 0, 0), (ee, 0, 1), (oe, 0, 0), (oo, 0, 0),
                      (oe, 0, 1), (ee, 1, 0), (eo, 1, 0), (ee, 1, 1)):
        m = jnp.maximum(m, tap(a, dh, dw))
    o_ref[...] = m


def maxpool2d_3x3_s2_p1(x):
    """x: (N, H, W, C) -> (N, Ho, Wo*C), kernel 3, stride 2, pad 1."""
    N, H, W, C = x.shape
    Ho = (H + 2 - 3) // 2 + 1
    Wo = (W + 2 - 3) // 2 + 1
    NEG = -1e30
    xp = jnp.pad(x, ((0, 0), (1, 1), (1, 1), (0, 0)), constant_values=NEG)
    need_h, need_w = 2 * Ho + 1, 2 * Wo + 1
    ph = max(0, need_h - xp.shape[1])
    pw = max(0, need_w - xp.shape[2])
    if ph or pw:
        xp = jnp.pad(xp, ((0, 0), (0, ph), (0, pw), (0, 0)), constant_values=NEG)

    def deci(oh, ow):
        d = xp[:, oh::2, ow::2, :][:, :Ho + 1, :Wo + 1, :]
        dh = Ho + 1 - d.shape[1]
        dw = Wo + 1 - d.shape[2]
        if dh or dw:
            d = jnp.pad(d, ((0, 0), (0, dh), (0, dw), (0, 0)), constant_values=NEG)
        return d.reshape(N, Ho + 1, (Wo + 1) * C)

    ee, eo, oe, oo = deci(0, 0), deci(0, 1), deci(1, 0), deci(1, 1)
    in_spec = pl.BlockSpec((None, Ho + 1, (Wo + 1) * C), lambda i: (i, 0, 0))
    return pl.pallas_call(
        functools.partial(_maxpool_kernel, Ho=Ho, Wo=Wo, C=C),
        out_shape=jax.ShapeDtypeStruct((N, Ho, Wo * C), x.dtype),
        grid=(N,),
        in_specs=[in_spec] * 4,
        out_specs=pl.BlockSpec((None, Ho, Wo * C), lambda i: (i, 0, 0)),
        compiler_params=pltpu.CompilerParams(dimension_semantics=("parallel",)),
    )(ee, eo, oe, oo)


# --------------------------------------------------------------------------- #
# ResNet BasicBlock (conv-bn-relu, conv-bn, +residual, relu) + fused avg-pool
# In-kernel per-dy banded matmul accumulation (no im2col).
# --------------------------------------------------------------------------- #
def _conv3x3_banded_weight(wc, W):
    """wc: (Cout,Cin,3,3) -> (3, (W+2)*Cin, W*Cout) banded weight."""
    Cout, Cin = wc.shape[0], wc.shape[1]
    Wp = W + 2
    dx = np.arange(Wp)[:, None] - np.arange(W)[None, :]
    valid = (dx >= 0) & (dx < 3)
    dxc = np.clip(dx, 0, 2)
    g = jnp.take(wc, jnp.asarray(dxc.reshape(-1)), axis=3)
    g = g.reshape(Cout, Cin, 3, Wp, W)
    g = g * jnp.asarray(valid, wc.dtype)[None, None, None, :, :]
    g = jnp.transpose(g, (2, 3, 1, 4, 0))                          # (3,Wp,Cin,W,Cout)
    return g.reshape(3, Wp * Cin, W * Cout).astype(jnp.bfloat16)


def _conv3x3_kernel(x_ref, w_ref, sc_ref, sh_ref, o_ref, *, H):
    xv = x_ref[...]                                                 # (H+2, (W+2)*Cin)
    acc = jnp.dot(xv[0:H, :], w_ref[0], preferred_element_type=jnp.float32)
    for dy in (1, 2):
        acc = acc + jnp.dot(xv[dy:dy + H, :], w_ref[dy],
                            preferred_element_type=jnp.float32)
    out = jnp.maximum(acc * sc_ref[...] + sh_ref[...], 0.0)
    o_ref[...] = out.astype(o_ref.dtype)


def _conv3x3_res_pool_kernel(x_ref, w_ref, sc_ref, sh_ref, res_ref, o_ref, *, H, W, C):
    xv = x_ref[...]
    acc = jnp.dot(xv[0:H, :], w_ref[0], preferred_element_type=jnp.float32)
    for dy in (1, 2):
        acc = acc + jnp.dot(xv[dy:dy + H, :], w_ref[dy],
                            preferred_element_type=jnp.float32)
    out = acc * sc_ref[...] + sh_ref[...] + res_ref[...].astype(jnp.float32)
    out = jnp.maximum(out, 0.0)                                     # (H, W*C)
    s = jnp.sum(out, axis=0, keepdims=True)                         # (1, W*C)
    pooled = s[:, 0:C]
    for w in range(1, W):
        pooled = pooled + s[:, w * C:(w + 1) * C]
    o_ref[...] = pooled * (1.0 / (H * W))                           # (1, C)


def resnet_basicblock_pool(y, w1, w2, *, C):
    """y: (N, Hs, Ws*C) bf16 -> (N, C) f32: BasicBlock + global average pool."""
    N, Hs, WsC = y.shape
    Ws = WsC // C
    Kb = (Ws + 2) * C
    scale_val = 1.0 / math.sqrt(1.0 + BN_EPS)                       # BN eval, init stats
    sc = jnp.full((1, WsC), scale_val, jnp.float32)
    sh = jnp.zeros((1, WsC), jnp.float32)
    bw1 = _conv3x3_banded_weight(w1, Ws)
    bw2 = _conv3x3_banded_weight(w2, Ws)

    def padhw(a):                                                   # pad H by 1, W by 1
        return jnp.pad(a, ((0, 0), (1, 1), (C, C)))

    spec_x = pl.BlockSpec((None, Hs + 2, Kb), lambda i: (i, 0, 0))
    spec_w = pl.BlockSpec((3, Kb, WsC), lambda i: (0, 0, 0))
    spec_ss = pl.BlockSpec((1, WsC), lambda i: (0, 0))
    spec_y = pl.BlockSpec((None, Hs, WsC), lambda i: (i, 0, 0))
    cparams = pltpu.CompilerParams(dimension_semantics=("parallel",))

    r = pl.pallas_call(
        functools.partial(_conv3x3_kernel, H=Hs),
        out_shape=jax.ShapeDtypeStruct((N, Hs, WsC), jnp.bfloat16),
        grid=(N,),
        in_specs=[spec_x, spec_w, spec_ss, spec_ss],
        out_specs=spec_y,
        compiler_params=cparams,
    )(padhw(y), bw1, sc, sh)

    pooled = pl.pallas_call(
        functools.partial(_conv3x3_res_pool_kernel, H=Hs, W=Ws, C=C),
        out_shape=jax.ShapeDtypeStruct((N, 1, C), jnp.float32),
        grid=(N,),
        in_specs=[spec_x, spec_w, spec_ss, spec_ss, spec_y],
        out_specs=pl.BlockSpec((None, 1, C), lambda i: (i, 0, 0)),
        compiler_params=cparams,
    )(padhw(r), bw2, sc, sh, y)
    return pooled.reshape(N, C)


# --------------------------------------------------------------------------- #
# Bidirectional LSTM: both directions interleaved in ONE kernel body
# --------------------------------------------------------------------------- #
def _sigmoid(x):
    return 1.0 / (1.0 + jnp.exp(-x))      # exact (avoid approx drift over T steps)


def _bilstm_kernel(gxf_ref, gxb_ref, whf_ref, whb_ref, of_ref, ob_ref,
                   hf_s, cf_s, hb_s, cb_s, *, T, Hp):
    for s in (hf_s, cf_s, hb_s, cb_s):
        s[...] = jnp.zeros(s.shape, s.dtype)

    def step(t, carry):
        gf = gxf_ref[t] + jnp.dot(hf_s[...].astype(jnp.bfloat16), whf_ref[...],
                                  preferred_element_type=jnp.float32)
        gb = gxb_ref[t] + jnp.dot(hb_s[...].astype(jnp.bfloat16), whb_ref[...],
                                  preferred_element_type=jnp.float32)

        def act(g):                        # gate slices are 128-lane aligned (Hp pad)
            i = _sigmoid(g[:, 0 * Hp:1 * Hp])
            f = _sigmoid(g[:, 1 * Hp:2 * Hp])
            gg = jnp.tanh(g[:, 2 * Hp:3 * Hp])
            o = _sigmoid(g[:, 3 * Hp:4 * Hp])
            return i, f, gg, o

        i_f, f_f, g_f, o_f = act(gf)
        i_b, f_b, g_b, o_b = act(gb)
        cf = f_f * cf_s[...] + i_f * g_f
        cb = f_b * cb_s[...] + i_b * g_b
        hf = o_f * jnp.tanh(cf)
        hb = o_b * jnp.tanh(cb)
        cf_s[...] = cf
        cb_s[...] = cb
        hf_s[...] = hf
        hb_s[...] = hb
        of_ref[t] = hf.astype(of_ref.dtype)
        ob_ref[T - 1 - t] = hb.astype(ob_ref.dtype)   # store time-aligned, no JAX flip
        return carry

    lax.fori_loop(0, T, step, 0)


def lstm_bidirectional(x, p):
    """x: (B, T, D) -> (B, T, 2H) bf16. PyTorch gate order i,f,g,o; h0=c0=0."""
    B, T, D = x.shape
    H = p['w_hh_f'].shape[1]
    Hp = _round_up(H, 128)                 # lane-tile aligned gate columns
    Bp = max(8, _round_up(B, 8))

    def pad_gate_cols(w_t):                # (..., 4H) -> (..., 4Hp), per-gate pad
        lead = w_t.shape[:-1]
        w4 = w_t.reshape(lead + (4, H))
        w4 = jnp.pad(w4, tuple((0, 0) for _ in lead) + ((0, 0), (0, Hp - H)))
        return w4.reshape(lead + (4 * Hp,))

    w_cat = jnp.concatenate([pad_gate_cols(p['w_ih_f'].T),
                             pad_gate_cols(p['w_ih_b'].T)], axis=1)       # (D, 8Hp)
    b_cat = jnp.concatenate([pad_gate_cols(p['b_ih_f'] + p['b_hh_f']),
                             pad_gate_cols(p['b_ih_b'] + p['b_hh_b'])])   # (8Hp,)
    gx = matmul_affine(x.reshape(B * T, D), w_cat, shift=b_cat)           # f32
    gx = gx.reshape(B, T, 8 * Hp)
    gxf = gx[..., :4 * Hp]
    gxb = gx[..., 4 * Hp:][:, ::-1, :]     # backward direction: reversed time

    def prep(g):                           # (B, T, 4Hp) -> (T, Bp, 4Hp)
        g = jnp.transpose(g, (1, 0, 2))
        return jnp.pad(g, ((0, 0), (0, Bp - B), (0, 0)))

    def pad_hh(w_hh):                      # (4H, H) -> (Hp, 4Hp) bf16
        wt = pad_gate_cols(w_hh.T)
        return jnp.pad(wt, ((0, Hp - H), (0, 0))).astype(jnp.bfloat16)

    of, ob = pl.pallas_call(
        functools.partial(_bilstm_kernel, T=T, Hp=Hp),
        out_shape=(jax.ShapeDtypeStruct((T, Bp, Hp), jnp.bfloat16),
                   jax.ShapeDtypeStruct((T, Bp, Hp), jnp.bfloat16)),
        in_specs=[_VMEM_SPEC] * 4,
        out_specs=(_VMEM_SPEC, _VMEM_SPEC),
        scratch_shapes=[pltpu.VMEM((Bp, Hp), jnp.float32)] * 4,
        compiler_params=pltpu.CompilerParams(vmem_limit_bytes=64 * 1024 * 1024),
    )(prep(gxf), prep(gxb), pad_hh(p['w_hh_f']), pad_hh(p['w_hh_b']))

    fwd = jnp.transpose(of[:, :B, :H], (1, 0, 2))                         # (B, T, H)
    bwd = jnp.transpose(ob[:, :B, :H], (1, 0, 2))
    return jnp.concatenate([fwd, bwd], axis=-1)


# --------------------------------------------------------------------------- #
# LipRead forward (frontend -> resnet -> LSTM backend)
# --------------------------------------------------------------------------- #
def lipread_forward(x, params):
    """x: (B, 1, T, H, W) NCDHW -> (B, T, numclasses) log-probabilities."""
    B, Cin, T, H, W = x.shape
    w = params['frontend_conv_w']
    C1 = w.shape[0]

    # ConvFrontend: Conv3d + BN(eval) + ReLU (fused epilogue) ; temporal pool size 1
    bn_scale = params['frontend_bn_w'] / jnp.sqrt(1.0 + BN_EPS)          # running_var=1
    bn_shift = params['frontend_bn_b'] + params['frontend_conv_b'] * bn_scale
    fo = frontend_conv_bn_relu(x, w, bn_scale, bn_shift)                 # (B,T,Ho,Wo*C1)
    _, _, Ho, WoC = fo.shape
    Wo = WoC // C1

    # MaxPool3d((1,3,3),(1,2,2),(0,1,1)): per-frame 2D maxpool, gridded over frames
    y = maxpool2d_3x3_s2_p1(fo.reshape(B * T, Ho, Wo, C1))               # (N,Hs,Ws*C1)

    # ResNetBBC (reduced): BasicBlock + fused residual/ReLU/global-avg-pool + Linear
    pooled = resnet_basicblock_pool(y, params['res_conv1_w'],
                                    params['res_conv2_w'], C=C1)         # (N, C1)
    feat = matmul_affine(pooled, params['res_fc_w'].T, shift=params['res_fc_b'],
                         out_dtype=jnp.bfloat16)
    inputdim = params['res_fc_w'].shape[0]
    seq = feat.reshape(B, T, inputdim)

    # LSTMBackend: bidirectional LSTM + Linear + LogSoftmax(dim=2) (fused epilogue)
    lstm_out = lstm_bidirectional(seq, params)                           # (B, T, 2H)
    H2 = lstm_out.shape[-1]
    numclasses = params['fc_w'].shape[0]
    logp = matmul_affine(lstm_out.reshape(B * T, H2), params['fc_w'].T,
                         shift=params['fc_b'], log_softmax=True)
    return logp.reshape(B, T, numclasses)


# --------------------------------------------------------------------------- #
# Deterministic parameter init (mirrors LipRead.weights_init at small scale)
# --------------------------------------------------------------------------- #
def init_params(key, *, C1=8, inputdim=16, hidden=16, numclasses=10):
    ks = jax.random.split(key, 16)
    p = {}
    p['frontend_conv_w'] = 0.02 * jax.random.normal(ks[0], (C1, 1, 5, 7, 7), jnp.float32)
    fan_in = 1 * 5 * 7 * 7
    bnd = 1.0 / math.sqrt(fan_in)
    p['frontend_conv_b'] = jax.random.uniform(ks[1], (C1,), jnp.float32, -bnd, bnd)
    p['frontend_bn_w'] = jnp.ones((C1,), jnp.float32)    # BatchNorm weight filled 1.0
    p['frontend_bn_b'] = jnp.zeros((C1,), jnp.float32)   # BatchNorm bias filled 0
    p['res_conv1_w'] = 0.02 * jax.random.normal(ks[2], (C1, C1, 3, 3), jnp.float32)
    p['res_conv2_w'] = 0.02 * jax.random.normal(ks[3], (C1, C1, 3, 3), jnp.float32)
    p['res_fc_w'] = (1.0 / math.sqrt(C1)) * jax.random.normal(ks[4], (inputdim, C1),
                                                              jnp.float32)
    p['res_fc_b'] = jnp.zeros((inputdim,), jnp.float32)  # Linear bias filled 0
    s = 1.0 / math.sqrt(hidden)
    for name, k1, k2, k3, k4 in (('f', 5, 6, 7, 8), ('b', 9, 10, 11, 12)):
        p[f'w_ih_{name}'] = jax.random.uniform(ks[k1], (4 * hidden, inputdim),
                                               jnp.float32, -s, s)
        p[f'w_hh_{name}'] = jax.random.uniform(ks[k2], (4 * hidden, hidden),
                                               jnp.float32, -s, s)
        p[f'b_ih_{name}'] = jax.random.uniform(ks[k3], (4 * hidden,), jnp.float32, -s, s)
        p[f'b_hh_{name}'] = jax.random.uniform(ks[k4], (4 * hidden,), jnp.float32, -s, s)
    p['fc_w'] = (1.0 / math.sqrt(2 * hidden)) * jax.random.normal(
        ks[13], (numclasses, 2 * hidden), jnp.float32)
    p['fc_b'] = jnp.zeros((numclasses,), jnp.float32)    # Linear bias filled 0
    return p


if __name__ == "__main__":
    key = jax.random.PRNGKey(0)
    kx, kp = jax.random.split(key)
    B, T, Himg, Wimg = 2, 6, 16, 16
    x = jax.random.normal(kx, (B, 1, T, Himg, Wimg), jnp.float32)
    params = init_params(kp)

    out = jax.jit(lipread_forward)(x, params)
    out = jax.block_until_ready(out)

    assert out.shape == (B, T, 10), out.shape
    assert bool(jnp.all(jnp.isfinite(out)))
    # rows of log-softmax output must (log-)sum to ~1
    assert bool(jnp.allclose(jnp.sum(jnp.exp(out), axis=-1), 1.0, atol=1e-4))
    print("KERNEL_OK")
</pallas_src>

<mosaic_0001>
module attributes {stable_mosaic.version = 11 : i64} {
  func.func @_frontend_kernel(%arg0: i32, %arg1: memref<1x10x11x22xbf16, #tpu.memory_space<vmem>>, %arg2: memref<1x10x11x22xbf16, #tpu.memory_space<vmem>>, %arg3: memref<35x22x64xbf16, #tpu.memory_space<vmem>>, %arg4: memref<1x64xf32, #tpu.memory_space<vmem>>, %arg5: memref<1x64xf32, #tpu.memory_space<vmem>>, %arg6: memref<1x6x8x64xbf16, #tpu.memory_space<vmem>>) attributes {dimension_semantics = [#tpu.dimension_semantics<parallel>], iteration_bounds = array<i64: 2>, scalar_prefetch = 0 : i64, scratch_operands = 0 : i64, tpu.core_type = #tpu.core_type<tc>, window_params = [{transform_indices = @transform_0, window_bounds = array<i64: 1, 10, 11, 22>}, {transform_indices = @transform_1, window_bounds = array<i64: 1, 10, 11, 22>}, {pipeline_mode = #tpu.pipeline_mode<synchronous>, transform_indices = @transform_2, window_bounds = array<i64: 35, 22, 64>}, {pipeline_mode = #tpu.pipeline_mode<synchronous>, transform_indices = @transform_3, window_bounds = array<i64: 1, 64>}, {pipeline_mode = #tpu.pipeline_mode<synchronous>, transform_indices = @transform_4, window_bounds = array<i64: 1, 64>}, {transform_indices = @transform_5, window_bounds = array<i64: 1, 6, 8, 64>}]} {
    %c0 = arith.constant 0 : index
    %c0_0 = arith.constant 0 : index
    %c0_1 = arith.constant 0 : index
    %c0_2 = arith.constant 0 : index
    %0 = vector.load %arg1[%c0, %c0_0, %c0_1, %c0_2] : memref<1x10x11x22xbf16, #tpu.memory_space<vmem>>, vector<1x10x11x22xbf16>
    %1 = vector.shape_cast %0 : vector<1x10x11x22xbf16> to vector<10x11x22xbf16>
    %c0_3 = arith.constant 0 : index
    %c0_4 = arith.constant 0 : index
    %c0_5 = arith.constant 0 : index
    %c0_6 = arith.constant 0 : index
    %2 = vector.load %arg2[%c0_3, %c0_4, %c0_5, %c0_6] : memref<1x10x11x22xbf16, #tpu.memory_space<vmem>>, vector<1x10x11x22xbf16>
    %3 = vector.shape_cast %2 : vector<1x10x11x22xbf16> to vector<10x11x22xbf16>
    %cst = arith.constant 0.000000e+00 : f32
    %4 = vector.broadcast %cst : f32 to vector<48x64xf32>
    %5 = vector.extract_strided_slice %1 {offsets = [0, 0, 0], sizes = [6, 8, 22], strides = [1, 1, 1]} : vector<10x11x22xbf16> to vector<6x8x22xbf16>
    %6 = vector.shape_cast %5 : vector<6x8x22xbf16> to vector<48x22xbf16>
    %c0_7 = arith.constant 0 : index
    %c0_8 = arith.constant 0 : index
    %c0_9 = arith.constant 0 : index
    %7 = vector.load %arg3[%c0_7, %c0_8, %c0_9] : memref<35x22x64xbf16, #tpu.memory_space<vmem>>, vector<1x22x64xbf16>
    %8 = vector.shape_cast %7 : vector<1x22x64xbf16> to vector<22x64xbf16>
    %cst_10 = arith.constant dense<0.000000e+00> : vector<48x64xf32>
    %9 = tpu.matmul %6, %8, %cst_10 {dimension_numbers = #tpu.dot_dimension_numbers<[1], [0], [0], [1], [0, 0, 1, 1], [], []>} : vector<48x22xbf16>, vector<22x64xbf16>, vector<48x64xf32> -> vector<48x64xf32>
    %10 = arith.addf %4, %9 : vector<48x64xf32>
    %11 = vector.extract_strided_slice %3 {offsets = [0, 0, 0], sizes = [6, 8, 22], strides = [1, 1, 1]} : vector<10x11x22xbf16> to vector<6x8x22xbf16>
    %12 = vector.shape_cast %11 : vector<6x8x22xbf16> to vector<48x22xbf16>
    %c1 = arith.constant 1 : index
    %c0_11 = arith.constant 0 : index
    %c0_12 = arith.constant 0 : index
    %13 = vector.load %arg3[%c1, %c0_11, %c0_12] : memref<35x22x64xbf16, #tpu.memory_space<vmem>>, vector<1x22x64xbf16>
    %14 = vector.shape_cast %13 : vector<1x22x64xbf16> to vector<22x64xbf16>
    %cst_13 = arith.constant dense<0.000000e+00> : vector<48x64xf32>
    %15 = tpu.matmul %12, %14, %cst_13 {dimension_numbers = #tpu.dot_dimension_numbers<[1], [0], [0], [1], [0, 0, 1, 1], [], []>} : vector<48x22xbf16>, vector<22x64xbf16>, vector<48x64xf32> -> vector<48x64xf32>
    %16 = arith.addf %10, %15 : vector<48x64xf32>
    %17 = vector.extract_strided_slice %1 {offsets = [0, 1, 0], sizes = [6, 8, 22], strides = [1, 1, 1]} : vector<10x11x22xbf16> to vector<6x8x22xbf16>
    %18 = vector.shape_cast %17 : vector<6x8x22xbf16> to vector<48x22xbf16>
    %c2 = arith.constant 2 : index
    %c0_14 = arith.constant 0 : index
    %c0_15 = arith.constant 0 : index
    %19 = vector.load %arg3[%c2, %c0_14, %c0_15] : memref<35x22x64xbf16, #tpu.memory_space<vmem>>, vector<1x22x64xbf16>
    %20 = vector.shape_cast %19 : vector<1x22x64xbf16> to vector<22x64xbf16>
    %cst_16 = arith.constant dense<0.000000e+00> : vector<48x64xf32>
    %21 = tpu.matmul %18, %20, %cst_16 {dimension_numbers = #tpu.dot_dimension_numbers<[1], [0], [0], [1], [0, 0, 1, 1], [], []>} : vector<48x22xbf16>, vector<22x64xbf16>, vector<48x64xf32> -> vector<48x64xf32>
    %22 = arith.addf %16, %21 : vector<48x64xf32>
    %23 = vector.extract_strided_slice %3 {offsets = [0, 1, 0], sizes = [6, 8, 22], strides = [1, 1, 1]} : vector<10x11x22xbf16> to vector<6x8x22xbf16>
    %24 = vector.shape_cast %23 : vector<6x8x22xbf16> to vector<48x22xbf16>
    %c3 = arith.constant 3 : index
    %c0_17 = arith.constant 0 : index
    %c0_18 = arith.constant 0 : index
    %25 = vector.load %arg3[%c3, %c0_17, %c0_18] : memref<35x22x64xbf16, #tpu.memory_space<vmem>>, vector<1x22x64xbf16>
    %26 = vector.shape_cast %25 : vector<1x22x64xbf16> to vector<22x64xbf16>
    %cst_19 = arith.constant dense<0.000000e+00> : vector<48x64xf32>
    %27 = tpu.matmul %24, %26, %cst_19 {dimension_numbers = #tpu.dot_dimension_numbers<[1], [0], [0], [1], [0, 0, 1, 1], [], []>} : vector<48x22xbf16>, vector<22x64xbf16>, vector<48x64xf32> -> vector<48x64xf32>
    %28 = arith.addf %22, %27 : vector<48x64xf32>
    %29 = vector.extract_strided_slice %1 {offsets = [0, 2, 0], sizes = [6, 8, 22], strides = [1, 1, 1]} : vector<10x11x22xbf16> to vector<6x8x22xbf16>
    %30 = vector.shape_cast %29 : vector<6x8x22xbf16> to vector<48x22xbf16>
    %c4 = arith.constant 4 : index
    %c0_20 = arith.constant 0 : index
    %c0_21 = arith.constant 0 : index
    %31 = vector.load %arg3[%c4, %c0_20, %c0_21] : memref<35x22x64xbf16, #tpu.memory_space<vmem>>, vector<1x22x64xbf16>
    %32 = vector.shape_cast %31 : vector<1x22x64xbf16> to vector<22x64xbf16>
    %cst_22 = arith.constant dense<0.000000e+00> : vector<48x64xf32>
    %33 = tpu.matmul %30, %32, %cst_22 {dimension_numbers = #tpu.dot_dimension_numbers<[1], [0], [0], [1], [0, 0, 1, 1], [], []>} : vector<48x22xbf16>, vector<22x64xbf16>, vector<48x64xf32> -> vector<48x64xf32>
    %34 = arith.addf %28, %33 : vector<48x64xf32>
    %35 = vector.extract_strided_slice %3 {offsets = [0, 2, 0], sizes = [6, 8, 22], strides = [1, 1, 1]} : vector<10x11x22xbf16> to vector<6x8x22xbf16>
    %36 = vector.shape_cast %35 : vector<6x8x22xbf16> to vector<48x22xbf16>
    %c5 = arith.constant 5 : index
    %c0_23 = arith.constant 0 : index
    %c0_24 = arith.constant 0 : index
    %37 = vector.load %arg3[%c5, %c0_23, %c0_24] : memref<35x22x64xbf16, #tpu.memory_space<vmem>>, vector<1x22x64xbf16>
    %38 = vector.shape_cast %37 : vector<1x22x64xbf16> to vector<22x64xbf16>
    %cst_25 = arith.constant dense<0.000000e+00> : vector<48x64xf32>
    %39 = tpu.matmul %36, %38, %cst_25 {dimension_numbers = #tpu.dot_dimension_numbers<[1], [0], [0], [1], [0, 0, 1, 1], [], []>} : vector<48x22xbf16>, vector<22x64xbf16>, vector<48x64xf32> -> vector<48x64xf32>
    %40 = arith.addf %34, %39 : vector<48x64xf32>
    %41 = vector.extract_strided_slice %1 {offsets = [0, 3, 0], sizes = [6, 8, 22], strides = [1, 1, 1]} : vector<10x11x22xbf16> to vector<6x8x22xbf16>
    %42 = vector.shape_cast %41 : vector<6x8x22xbf16> to vector<48x22xbf16>
    %c6 = arith.constant 6 : index
    %c0_26 = arith.constant 0 : index
    %c0_27 = arith.constant 0 : index
    %43 = vector.load %arg3[%c6, %c0_26, %c0_27] : memref<35x22x64xbf16, #tpu.memory_space<vmem>>, vector<1x22x64xbf16>
    %44 = vector.shape_cast %43 : vector<1x22x64xbf16> to vector<22x64xbf16>
    %cst_28 = arith.constant dense<0.000000e+00> : vector<48x64xf32>
    %45 = tpu.matmul %42, %44, %cst_28 {dimension_numbers = #tpu.dot_dimension_numbers<[1], [0], [0], [1], [0, 0, 1, 1], [], []>} : vector<48x22xbf16>, vector<22x64xbf16>, vector<48x64xf32> -> vector<48x64xf32>
    %46 = arith.addf %40, %45 : vector<48x64xf32>
    %47 = vector.extract_strided_slice %1 {offsets = [1, 0, 0], sizes = [6, 8, 22], strides = [1, 1, 1]} : vector<10x11x22xbf16> to vector<6x8x22xbf16>
    %48 = vector.shape_cast %47 : vector<6x8x22xbf16> to vector<48x22xbf16>
    %c7 = arith.constant 7 : index
    %c0_29 = arith.constant 0 : index
    %c0_30 = arith.constant 0 : index
    %49 = vector.load %arg3[%c7, %c0_29, %c0_30] : memref<35x22x64xbf16, #tpu.memory_space<vmem>>, vector<1x22x64xbf16>
    %50 = vector.shape_cast %49 : vector<1x22x64xbf16> to vector<22x64xbf16>
    %cst_31 = arith.constant dense<0.000000e+00> : vector<48x64xf32>
    %51 = tpu.matmul %48, %50, %cst_31 {dimension_numbers = #tpu.dot_dimension_numbers<[1], [0], [0], [1], [0, 0, 1, 1], [], []>} : vector<48x22xbf16>, vector<22x64xbf16>, vector<48x64xf32> -> vector<48x64xf32>
    %52 = arith.addf %46, %51 : vector<48x64xf32>
    %53 = vector.extract_strided_slice %3 {offsets = [1, 0, 0], sizes = [6, 8, 22], strides = [1, 1, 1]} : vector<10x11x22xbf16> to vector<6x8x22xbf16>
    %54 = vector.shape_cast %53 : vector<6x8x22xbf16> to vector<48x22xbf16>
    %c8 = arith.constant 8 : index
    %c0_32 = arith.constant 0 : index
    %c0_33 = arith.constant 0 : index
    %55 = vector.load %arg3[%c8, %c0_32, %c0_33] : memref<35x22x64xbf16, #tpu.memory_space<vmem>>, vector<1x22x64xbf16>
    %56 = vector.shape_cast %55 : vector<1x22x64xbf16> to vector<22x64xbf16>
    %cst_34 = arith.constant dense<0.000000e+00> : vector<48x64xf32>
    %57 = tpu.matmul %54, %56, %cst_34 {dimension_numbers = #tpu.dot_dimension_numbers<[1], [0], [0], [1], [0, 0, 1, 1], [], []>} : vector<48x22xbf16>, vector<22x64xbf16>, vector<48x64xf32> -> vector<48x64xf32>
    %58 = arith.addf %52, %57 : vector<48x64xf32>
    %59 = vector.extract_strided_slice %1 {offsets = [1, 1, 0], sizes = [6, 8, 22], strides = [1, 1, 1]} : vector<10x11x22xbf16> to vector<6x8x22xbf16>
    %60 = vector.shape_cast %59 : vector<6x8x22xbf16> to vector<48x22xbf16>
    %c9 = arith.constant 9 : index
    %c0_35 = arith.constant 0 : index
    %c0_36 = arith.constant 0 : index
    %61 = vector.load %arg3[%c9, %c0_35, %c0_36] : memref<35x22x64xbf16, #tpu.memory_space<vmem>>, vector<1x22x64xbf16>
    %62 = vector.shape_cast %61 : vector<1x22x64xbf16> to vector<22x64xbf16>
    %cst_37 = arith.constant dense<0.000000e+00> : vector<48x64xf32>
    %63 = tpu.matmul %60, %62, %cst_37 {dimension_numbers = #tpu.dot_dimension_numbers<[1], [0], [0], [1], [0, 0, 1, 1], [], []>} : vector<48x22xbf16>, vector<22x64xbf16>, vector<48x64xf32> -> vector<48x64xf32>
    %64 = arith.addf %58, %63 : vector<48x64xf32>
    %65 = vector.extract_strided_slice %3 {offsets = [1, 1, 0], sizes = [6, 8, 22], strides = [1, 1, 1]} : vector<10x11x22xbf16> to vector<6x8x22xbf16>
    %66 = vector.shape_cast %65 : vector<6x8x22xbf16> to vector<48x22xbf16>
    %c10 = arith.constant 10 : index
    %c0_38 = arith.constant 0 : index
    %c0_39 = arith.constant 0 : index
    %67 = vector.load %arg3[%c10, %c0_38, %c0_39] : memref<35x22x64xbf16, #tpu.memory_space<vmem>>, vector<1x22x64xbf16>
    %68 = vector.shape_cast %67 : vector<1x22x64xbf16> to vector<22x64xbf16>
    %cst_40 = arith.constant dense<0.000000e+00> : vector<48x64xf32>
    %69 = tpu.matmul %66, %68, %cst_40 {dimension_numbers = #tpu.dot_dimension_numbers<[1], [0], [0], [1], [0, 0, 1, 1], [], []>} : vector<48x22xbf16>, vector<22x64xbf16>, vector<48x64xf32> -> vector<48x64xf32>
    %70 = arith.addf %64, %69 : vector<48x64xf32>
    %71 = vector.extract_strided_slice %1 {offsets = [1, 2, 0], sizes = [6, 8, 22], strides = [1, 1, 1]} : vector<10x11x22xbf16> to vector<6x8x22xbf16>
    %72 = vector.shape_cast %71 : vector<6x8x22xbf16> to vector<48x22xbf16>
    %c11 = arith.constant 11 : index
    %c0_41 = arith.constant 0 : index
    %c0_42 = arith.constant 0 : index
    %73 = vector.load %arg3[%c11, %c0_41, %c0_42] : memref<35x22x64xbf16, #tpu.memory_space<vmem>>, vector<1x22x64xbf16>
    %74 = vector.shape_cast %73 : vector<1x22x64xbf16> to vector<22x64xbf16>
    %cst_43 = arith.constant dense<0.000000e+00> : vector<48x64xf32>
    %75 = tpu.matmul %72, %74, %cst_43 {dimension_numbers = #tpu.dot_dimension_numbers<[1], [0], [0], [1], [0, 0, 1, 1], [], []>} : vector<48x22xbf16>, vector<22x64xbf16>, vector<48x64xf32> -> vector<48x64xf32>
    %76 = arith.addf %70, %75 : vector<48x64xf32>
    %77 = vector.extract_strided_slice %3 {offsets = [1, 2, 0], sizes = [6, 8, 22], strides = [1, 1, 1]} : vector<10x11x22xbf16> to vector<6x8x22xbf16>
    %78 = vector.shape_cast %77 : vector<6x8x22xbf16> to vector<48x22xbf16>
    %c12 = arith.constant 12 : index
    %c0_44 = arith.constant 0 : index
    %c0_45 = arith.constant 0 : index
    %79 = vector.load %arg3[%c12, %c0_44, %c0_45] : memref<35x22x64xbf16, #tpu.memory_space<vmem>>, vector<1x22x64xbf16>
    %80 = vector.shape_cast %79 : vector<1x22x64xbf16> to vector<22x64xbf16>
    %cst_46 = arith.constant dense<0.000000e+00> : vector<48x64xf32>
    %81 = tpu.matmul %78, %80, %cst_46 {dimension_numbers = #tpu.dot_dimension_numbers<[1], [0], [0], [1], [0, 0, 1, 1], [], []>} : vector<48x22xbf16>, vector<22x64xbf16>, vector<48x64xf32> -> vector<48x64xf32>
    %82 = arith.addf %76, %81 : vector<48x64xf32>
    %83 = vector.extract_strided_slice %1 {offsets = [1, 3, 0], sizes = [6, 8, 22], strides = [1, 1, 1]} : vector<10x11x22xbf16> to vector<6x8x22xbf16>
    %84 = vector.shape_cast %83 : vector<6x8x22xbf16> to vector<48x22xbf16>
    %c13 = arith.constant 13 : index
    %c0_47 = arith.constant 0 : index
    %c0_48 = arith.constant 0 : index
    %85 = vector.load %arg3[%c13, %c0_47, %c0_48] : memref<35x22x64xbf16, #tpu.memory_space<vmem>>, vector<1x22x64xbf16>
    %86 = vector.shape_cast %85 : vector<1x22x64xbf16> to vector<22x64xbf16>
    %cst_49 = arith.constant dense<0.000000e+00> : vector<48x64xf32>
    %87 = tpu.matmul %84, %86, %cst_49 {dimension_numbers = #tpu.dot_dimension_numbers<[1], [0], [0], [1], [0, 0, 1, 1], [], []>} : vector<48x22xbf16>, vector<22x64xbf16>, vector<48x64xf32> -> vector<48x64xf32>
    %88 = arith.addf %82, %87 : vector<48x64xf32>
    %89 = vector.extract_strided_slice %1 {offsets = [2, 0, 0], sizes = [6, 8, 22], strides = [1, 1, 1]} : vector<10x11x22xbf16> to vector<6x8x22xbf16>
    %90 = vector.shape_cast %89 : vector<6x8x22xbf16> to vector<48x22xbf16>
    %c14 = arith.constant 14 : index
    %c0_50 = arith.constant 0 : index
    %c0_51 = arith.constant 0 : index
    %91 = vector.load %arg3[%c14, %c0_50, %c0_51] : memref<35x22x64xbf16, #tpu.memory_space<vmem>>, vector<1x22x64xbf16>
    %92 = vector.shape_cast %91 : vector<1x22x64xbf16> to vector<22x64xbf16>
    %cst_52 = arith.constant dense<0.000000e+00> : vector<48x64xf32>
    %93 = tpu.matmul %90, %92, %cst_52 {dimension_numbers = #tpu.dot_dimension_numbers<[1], [0], [0], [1], [0, 0, 1, 1], [], []>} : vector<48x22xbf16>, vector<22x64xbf16>, vector<48x64xf32> -> vector<48x64xf32>
    %94 = arith.addf %88, %93 : vector<48x64xf32>
    %95 = vector.extract_strided_slice %3 {offsets = [2, 0, 0], sizes = [6, 8, 22], strides = [1, 1, 1]} : vector<10x11x22xbf16> to vector<6x8x22xbf16>
    %96 = vector.shape_cast %95 : vector<6x8x22xbf16> to vector<48x22xbf16>
    %c15 = arith.constant 15 : index
    %c0_53 = arith.constant 0 : index
    %c0_54 = arith.constant 0 : index
    %97 = vector.load %arg3[%c15, %c0_53, %c0_54] : memref<35x22x64xbf16, #tpu.memory_space<vmem>>, vector<1x22x64xbf16>
    %98 = vector.shape_cast %97 : vector<1x22x64xbf16> to vector<22x64xbf16>
    %cst_55 = arith.constant dense<0.000000e+00> : vector<48x64xf32>
    %99 = tpu.matmul %96, %98, %cst_55 {dimension_numbers = #tpu.dot_dimension_numbers<[1], [0], [0], [1], [0, 0, 1, 1], [], []>} : vector<48x22xbf16>, vector<22x64xbf16>, vector<48x64xf32> -> vector<48x64xf32>
    %100 = arith.addf %94, %99 : vector<48x64xf32>
    %101 = vector.extract_strided_slice %1 {offsets = [2, 1, 0], sizes = [6, 8, 22], strides = [1, 1, 1]} : vector<10x11x22xbf16> to vector<6x8x22xbf16>
    %102 = vector.shape_cast %101 : vector<6x8x22xbf16> to vector<48x22xbf16>
    %c16 = arith.constant 16 : index
    %c0_56 = arith.constant 0 : index
    %c0_57 = arith.constant 0 : index
    %103 = vector.load %arg3[%c16, %c0_56, %c0_57] : memref<35x22x64xbf16, #tpu.memory_space<vmem>>, vector<1x22x64xbf16>
    %104 = vector.shape_cast %103 : vector<1x22x64xbf16> to vector<22x64xbf16>
    %cst_58 = arith.constant dense<0.000000e+00> : vector<48x64xf32>
    %105 = tpu.matmul %102, %104, %cst_58 {dimension_numbers = #tpu.dot_dimension_numbers<[1], [0], [0], [1], [0, 0, 1, 1], [], []>} : vector<48x22xbf16>, vector<22x64xbf16>, vector<48x64xf32> -> vector<48x64xf32>
    %106 = arith.addf %100, %105 : vector<48x64xf32>
    %107 = vector.extract_strided_slice %3 {offsets = [2, 1, 0], sizes = [6, 8, 22], strides = [1, 1, 1]} : vector<10x11x22xbf16> to vector<6x8x22xbf16>
    %108 = vector.shape_cast %107 : vector<6x8x22xbf16> to vector<48x22xbf16>
    %c17 = arith.constant 17 : index
    %c0_59 = arith.constant 0 : index
    %c0_60 = arith.constant 0 : index
    %109 = vector.load %arg3[%c17, %c0_59, %c0_60] : memref<35x22x64xbf16, #tpu.memory_space<vmem>>, vector<1x22x64xbf16>
    %110 = vector.shape_cast %109 : vector<1x22x64xbf16> to vector<22x64xbf16>
    %cst_61 = arith.constant dense<0.000000e+00> : vector<48x64xf32>
    %111 = tpu.matmul %108, %110, %cst_61 {dimension_numbers = #tpu.dot_dimension_numbers<[1], [0], [0], [1], [0, 0, 1, 1], [], []>} : vector<48x22xbf16>, vector<22x64xbf16>, vector<48x64xf32> -> vector<48x64xf32>
    %112 = arith.addf %106, %111 : vector<48x64xf32>
    %113 = vector.extract_strided_slice %1 {offsets = [2, 2, 0], sizes = [6, 8, 22], strides = [1, 1, 1]} : vector<10x11x22xbf16> to vector<6x8x22xbf16>
    %114 = vector.shape_cast %113 : vector<6x8x22xbf16> to vector<48x22xbf16>
    %c18 = arith.constant 18 : index
    %c0_62 = arith.constant 0 : index
    %c0_63 = arith.constant 0 : index
    %115 = vector.load %arg3[%c18, %c0_62, %c0_63] : memref<35x22x64xbf16, #tpu.memory_space<vmem>>, vector<1x22x64xbf16>
    %116 = vector.shape_cast %115 : vector<1x22x64xbf16> to vector<22x64xbf16>
    %cst_64 = arith.constant dense<0.000000e+00> : vector<48x64xf32>
    %117 = tpu.matmul %114, %116, %cst_64 {dimension_numbers = #tpu.dot_dimension_numbers<[1], [0], [0], [1], [0, 0, 1, 1], [], []>} : vector<48x22xbf16>, vector<22x64xbf16>, vector<48x64xf32> -> vector<48x64xf32>
    %118 = arith.addf %112, %117 : vector<48x64xf32>
    %119 = vector.extract_strided_slice %3 {offsets = [2, 2, 0], sizes = [6, 8, 22], strides = [1, 1, 1]} : vector<10x11x22xbf16> to vector<6x8x22xbf16>
    %120 = vector.shape_cast %119 : vector<6x8x22xbf16> to vector<48x22xbf16>
    %c19 = arith.constant 19 : index
    %c0_65 = arith.constant 0 : index
    %c0_66 = arith.constant 0 : index
    %121 = vector.load %arg3[%c19, %c0_65, %c0_66] : memref<35x22x64xbf16, #tpu.memory_space<vmem>>, vector<1x22x64xbf16>
    %122 = vector.shape_cast %121 : vector<1x22x64xbf16> to vector<22x64xbf16>
    %cst_67 = arith.constant dense<0.000000e+00> : vector<48x64xf32>
    %123 = tpu.matmul %120, %122, %cst_67 {dimension_numbers = #tpu.dot_dimension_numbers<[1], [0], [0], [1], [0, 0, 1, 1], [], []>} : vector<48x22xbf16>, vector<22x64xbf16>, vector<48x64xf32> -> vector<48x64xf32>
    %124 = arith.addf %118, %123 : vector<48x64xf32>
    %125 = vector.extract_strided_slice %1 {offsets = [2, 3, 0], sizes = [6, 8, 22], strides = [1, 1, 1]} : vector<10x11x22xbf16> to vector<6x8x22xbf16>
    %126 = vector.shape_cast %125 : vector<6x8x22xbf16> to vector<48x22xbf16>
    %c20 = arith.constant 20 : index
    %c0_68 = arith.constant 0 : index
    %c0_69 = arith.constant 0 : index
    %127 = vector.load %arg3[%c20, %c0_68, %c0_69] : memref<35x22x64xbf16, #tpu.memory_space<vmem>>, vector<1x22x64xbf16>
    %128 = vector.shape_cast %127 : vector<1x22x64xbf16> to vector<22x64xbf16>
    %cst_70 = arith.constant dense<0.000000e+00> : vector<48x64xf32>
    %129 = tpu.matmul %126, %128, %cst_70 {dimension_numbers = #tpu.dot_dimension_numbers<[1], [0], [0], [1], [0, 0, 1, 1], [], []>} : vector<48x22xbf16>, vector<22x64xbf16>, vector<48x64xf32> -> vector<48x64xf32>
    %130 = arith.addf %124, %129 : vector<48x64xf32>
    %131 = vector.extract_strided_slice %1 {offsets = [3, 0, 0], sizes = [6, 8, 22], strides = [1, 1, 1]} : vector<10x11x22xbf16> to vector<6x8x22xbf16>
    %132 = vector.shape_cast %131 : vector<6x8x22xbf16> to vector<48x22xbf16>
    %c21 = arith.constant 21 : index
    %c0_71 = arith.constant 0 : index
    %c0_72 = arith.constant 0 : index
    %133 = vector.load %arg3[%c21, %c0_71, %c0_72] : memref<35x22x64xbf16, #tpu.memory_space<vmem>>, vector<1x22x64xbf16>
    %134 = vector.shape_cast %133 : vector<1x22x64xbf16> to vector<22x64xbf16>
    %cst_73 = arith.constant dense<0.000000e+00> : vector<48x64xf32>
    %135 = tpu.matmul %132, %134, %cst_73 {dimension_numbers = #tpu.dot_dimension_numbers<[1], [0], [0], [1], [0, 0, 1, 1], [], []>} : vector<48x22xbf16>, vector<22x64xbf16>, vector<48x64xf32> -> vector<48x64xf32>
    %136 = arith.addf %130, %135 : vector<48x64xf32>
    %137 = vector.extract_strided_slice %3 {offsets = [3, 0, 0], sizes = [6, 8, 22], strides = [1, 1, 1]} : vector<10x11x22xbf16> to vector<6x8x22xbf16>
    %138 = vector.shape_cast %137 : vector<6x8x22xbf16> to vector<48x22xbf16>
    %c22 = arith.constant 22 : index
    %c0_74 = arith.constant 0 : index
    %c0_75 = arith.constant 0 : index
    %139 = vector.load %arg3[%c22, %c0_74, %c0_75] : memref<35x22x64xbf16, #tpu.memory_space<vmem>>, vector<1x22x64xbf16>
    %140 = vector.shape_cast %139 : vector<1x22x64xbf16> to vector<22x64xbf16>
    %cst_76 = arith.constant dense<0.000000e+00> : vector<48x64xf32>
    %141 = tpu.matmul %138, %140, %cst_76 {dimension_numbers = #tpu.dot_dimension_numbers<[1], [0], [0], [1], [0, 0, 1, 1], [], []>} : vector<48x22xbf16>, vector<22x64xbf16>, vector<48x64xf32> -> vector<48x64xf32>
    %142 = arith.addf %136, %141 : vector<48x64xf32>
    %143 = vector.extract_strided_slice %1 {offsets = [3, 1, 0], sizes = [6, 8, 22], strides = [1, 1, 1]} : vector<10x11x22xbf16> to vector<6x8x22xbf16>
    %144 = vector.shape_cast %143 : vector<6x8x22xbf16> to vector<48x22xbf16>
    %c23 = arith.constant 23 : index
    %c0_77 = arith.constant 0 : index
    %c0_78 = arith.constant 0 : index
    %145 = vector.load %arg3[%c23, %c0_77, %c0_78] : memref<35x22x64xbf16, #tpu.memory_space<vmem>>, vector<1x22x64xbf16>
    %146 = vector.shape_cast %145 : vector<1x22x64xbf16> to vector<22x64xbf16>
    %cst_79 = arith.constant dense<0.000000e+00> : vector<48x64xf32>
    %147 = tpu.matmul %144, %146, %cst_79 {dimension_numbers = #tpu.dot_dimension_numbers<[1], [0], [0], [1], [0, 0, 1, 1], [], []>} : vector<48x22xbf16>, vector<22x64xbf16>, vector<48x64xf32> -> vector<48x64xf32>
    %148 = arith.addf %142, %147 : vector<48x64xf32>
    %149 = vector.extract_strided_slice %3 {offsets = [3, 1, 0], sizes = [6, 8, 22], strides = [1, 1, 1]} : vector<10x11x22xbf16> to vector<6x8x22xbf16>
    %150 = vector.shape_cast %149 : vector<6x8x22xbf16> to vector<48x22xbf16>
    %c24 = arith.constant 24 : index
    %c0_80 = arith.constant 0 : index
    %c0_81 = arith.constant 0 : index
    %151 = vector.load %arg3[%c24, %c0_80, %c0_81] : memref<35x22x64xbf16, #tpu.memory_space<vmem>>, vector<1x22x64xbf16>
    %152 = vector.shape_cast %151 : vector<1x22x64xbf16> to vector<22x64xbf16>
    %cst_82 = arith.constant dense<0.000000e+00> : vector<48x64xf32>
    %153 = tpu.matmul %150, %152, %cst_82 {dimension_numbers = #tpu.dot_dimension_numbers<[1], [0], [0], [1], [0, 0, 1, 1], [], []>} : vector<48x22xbf16>, vector<22x64xbf16>, vector<48x64xf32> -> vector<48x64xf32>
    %154 = arith.addf %148, %153 : vector<48x64xf32>
    %155 = vector.extract_strided_slice %1 {offsets = [3, 2, 0], sizes = [6, 8, 22], strides = [1, 1, 1]} : vector<10x11x22xbf16> to vector<6x8x22xbf16>
    %156 = vector.shape_cast %155 : vector<6x8x22xbf16> to vector<48x22xbf16>
    %c25 = arith.constant 25 : index
    %c0_83 = arith.constant 0 : index
    %c0_84 = arith.constant 0 : index
    %157 = vector.load %arg3[%c25, %c0_83, %c0_84] : memref<35x22x64xbf16, #tpu.memory_space<vmem>>, vector<1x22x64xbf16>
    %158 = vector.shape_cast %157 : vector<1x22x64xbf16> to vector<22x64xbf16>
    %cst_85 = arith.constant dense<0.000000e+00> : vector<48x64xf32>
    %159 = tpu.matmul %156, %158, %cst_85 {dimension_numbers = #tpu.dot_dimension_numbers<[1], [0], [0], [1], [0, 0, 1, 1], [], []>} : vector<48x22xbf16>, vector<22x64xbf16>, vector<48x64xf32> -> vector<48x64xf32>
    %160 = arith.addf %154, %159 : vector<48x64xf32>
    %161 = vector.extract_strided_slice %3 {offsets = [3, 2, 0], sizes = [6, 8, 22], strides = [1, 1, 1]} : vector<10x11x22xbf16> to vector<6x8x22xbf16>
    %162 = vector.shape_cast %161 : vector<6x8x22xbf16> to vector<48x22xbf16>
    %c26 = arith.constant 26 : index
    %c0_86 = arith.constant 0 : index
    %c0_87 = arith.constant 0 : index
    %163 = vector.load %arg3[%c26, %c0_86, %c0_87] : memref<35x22x64xbf16, #tpu.memory_space<vmem>>, vector<1x22x64xbf16>
    %164 = vector.shape_cast %163 : vector<1x22x64xbf16> to vector<22x64xbf16>
    %cst_88 = arith.constant dense<0.000000e+00> : vector<48x64xf32>
    %165 = tpu.matmul %162, %164, %cst_88 {dimension_numbers = #tpu.dot_dimension_numbers<[1], [0], [0], [1], [0, 0, 1, 1], [], []>} : vector<48x22xbf16>, vector<22x64xbf16>, vector<48x64xf32> -> vector<48x64xf32>
    %166 = arith.addf %160, %165 : vector<48x64xf32>
    %167 = vector.extract_strided_slice %1 {offsets = [3, 3, 0], sizes = [6, 8, 22], strides = [1, 1, 1]} : vector<10x11x22xbf16> to vector<6x8x22xbf16>
    %168 = vector.shape_cast %167 : vector<6x8x22xbf16> to vector<48x22xbf16>
    %c27 = arith.constant 27 : index
    %c0_89 = arith.constant 0 : index
    %c0_90 = arith.constant 0 : index
    %169 = vector.load %arg3[%c27, %c0_89, %c0_90] : memref<35x22x64xbf16, #tpu.memory_space<vmem>>, vector<1x22x64xbf16>
    %170 = vector.shape_cast %169 : vector<1x22x64xbf16> to vector<22x64xbf16>
    %cst_91 = arith.constant dense<0.000000e+00> : vector<48x64xf32>
    %171 = tpu.matmul %168, %170, %cst_91 {dimension_numbers = #tpu.dot_dimension_numbers<[1], [0], [0], [1], [0, 0, 1, 1], [], []>} : vector<48x22xbf16>, vector<22x64xbf16>, vector<48x64xf32> -> vector<48x64xf32>
    %172 = arith.addf %166, %171 : vector<48x64xf32>
    %173 = vector.extract_strided_slice %1 {offsets = [4, 0, 0], sizes = [6, 8, 22], strides = [1, 1, 1]} : vector<10x11x22xbf16> to vector<6x8x22xbf16>
    %174 = vector.shape_cast %173 : vector<6x8x22xbf16> to vector<48x22xbf16>
    %c28 = arith.constant 28 : index
    %c0_92 = arith.constant 0 : index
    %c0_93 = arith.constant 0 : index
    %175 = vector.load %arg3[%c28, %c0_92, %c0_93] : memref<35x22x64xbf16, #tpu.memory_space<vmem>>, vector<1x22x64xbf16>
    %176 = vector.shape_cast %175 : vector<1x22x64xbf16> to vector<22x64xbf16>
    %cst_94 = arith.constant dense<0.000000e+00> : vector<48x64xf32>
    %177 = tpu.matmul %174, %176, %cst_94 {dimension_numbers = #tpu.dot_dimension_numbers<[1], [0], [0], [1], [0, 0, 1, 1], [], []>} : vector<48x22xbf16>, vector<22x64xbf16>, vector<48x64xf32> -> vector<48x64xf32>
    %178 = arith.addf %172, %177 : vector<48x64xf32>
    %179 = vector.extract_strided_slice %3 {offsets = [4, 0, 0], sizes = [6, 8, 22], strides = [1, 1, 1]} : vector<10x11x22xbf16> to vector<6x8x22xbf16>
    %180 = vector.shape_cast %179 : vector<6x8x22xbf16> to vector<48x22xbf16>
    %c29 = arith.constant 29 : index
    %c0_95 = arith.constant 0 : index
    %c0_96 = arith.constant 0 : index
    %181 = vector.load %arg3[%c29, %c0_95, %c0_96] : memref<35x22x64xbf16, #tpu.memory_space<vmem>>, vector<1x22x64xbf16>
    %182 = vector.shape_cast %181 : vector<1x22x64xbf16> to vector<22x64xbf16>
    %cst_97 = arith.constant dense<0.000000e+00> : vector<48x64xf32>
    %183 = tpu.matmul %180, %182, %cst_97 {dimension_numbers = #tpu.dot_dimension_numbers<[1], [0], [0], [1], [0, 0, 1, 1], [], []>} : vector<48x22xbf16>, vector<22x64xbf16>, vector<48x64xf32> -> vector<48x64xf32>
    %184 = arith.addf %178, %183 : vector<48x64xf32>
    %185 = vector.extract_strided_slice %1 {offsets = [4, 1, 0], sizes = [6, 8, 22], strides = [1, 1, 1]} : vector<10x11x22xbf16> to vector<6x8x22xbf16>
    %186 = vector.shape_cast %185 : vector<6x8x22xbf16> to vector<48x22xbf16>
    %c30 = arith.constant 30 : index
    %c0_98 = arith.constant 0 : index
    %c0_99 = arith.constant 0 : index
    %187 = vector.load %arg3[%c30, %c0_98, %c0_99] : memref<35x22x64xbf16, #tpu.memory_space<vmem>>, vector<1x22x64xbf16>
    %188 = vector.shape_cast %187 : vector<1x22x64xbf16> to vector<22x64xbf16>
    %cst_100 = arith.constant dense<0.000000e+00> : vector<48x64xf32>
    %189 = tpu.matmul %186, %188, %cst_100 {dimension_numbers = #tpu.dot_dimension_numbers<[1], [0], [0], [1], [0, 0, 1, 1], [], []>} : vector<48x22xbf16>, vector<22x64xbf16>, vector<48x64xf32> -> vector<48x64xf32>
    %190 = arith.addf %184, %189 : vector<48x64xf32>
    %191 = vector.extract_strided_slice %3 {offsets = [4, 1, 0], sizes = [6, 8, 22], strides = [1, 1, 1]} : vector<10x11x22xbf16> to vector<6x8x22xbf16>
    %192 = vector.shape_cast %191 : vector<6x8x22xbf16> to vector<48x22xbf16>
    %c31 = arith.constant 31 : index
    %c0_101 = arith.constant 0 : index
    %c0_102 = arith.constant 0 : index
    %193 = vector.load %arg3[%c31, %c0_101, %c0_102] : memref<35x22x64xbf16, #tpu.memory_space<vmem>>, vector<1x22x64xbf16>
    %194 = vector.shape_cast %193 : vector<1x22x64xbf16> to vector<22x64xbf16>
    %cst_103 = arith.constant dense<0.000000e+00> : vector<48x64xf32>
    %195 = tpu.matmul %192, %194, %cst_103 {dimension_numbers = #tpu.dot_dimension_numbers<[1], [0], [0], [1], [0, 0, 1, 1], [], []>} : vector<48x22xbf16>, vector<22x64xbf16>, vector<48x64xf32> -> vector<48x64xf32>
    %196 = arith.addf %190, %195 : vector<48x64xf32>
    %197 = vector.extract_strided_slice %1 {offsets = [4, 2, 0], sizes = [6, 8, 22], strides = [1, 1, 1]} : vector<10x11x22xbf16> to vector<6x8x22xbf16>
    %198 = vector.shape_cast %197 : vector<6x8x22xbf16> to vector<48x22xbf16>
    %c32 = arith.constant 32 : index
    %c0_104 = arith.constant 0 : index
    %c0_105 = arith.constant 0 : index
    %199 = vector.load %arg3[%c32, %c0_104, %c0_105] : memref<35x22x64xbf16, #tpu.memory_space<vmem>>, vector<1x22x64xbf16>
    %200 = vector.shape_cast %199 : vector<1x22x64xbf16> to vector<22x64xbf16>
    %cst_106 = arith.constant dense<0.000000e+00> : vector<48x64xf32>
    %201 = tpu.matmul %198, %200, %cst_106 {dimension_numbers = #tpu.dot_dimension_numbers<[1], [0], [0], [1], [0, 0, 1, 1], [], []>} : vector<48x22xbf16>, vector<22x64xbf16>, vector<48x64xf32> -> vector<48x64xf32>
    %202 = arith.addf %196, %201 : vector<48x64xf32>
    %203 = vector.extract_strided_slice %3 {offsets = [4, 2, 0], sizes = [6, 8, 22], strides = [1, 1, 1]} : vector<10x11x22xbf16> to vector<6x8x22xbf16>
    %204 = vector.shape_cast %203 : vector<6x8x22xbf16> to vector<48x22xbf16>
    %c33 = arith.constant 33 : index
    %c0_107 = arith.constant 0 : index
    %c0_108 = arith.constant 0 : index
    %205 = vector.load %arg3[%c33, %c0_107, %c0_108] : memref<35x22x64xbf16, #tpu.memory_space<vmem>>, vector<1x22x64xbf16>
    %206 = vector.shape_cast %205 : vector<1x22x64xbf16> to vector<22x64xbf16>
    %cst_109 = arith.constant dense<0.000000e+00> : vector<48x64xf32>
    %207 = tpu.matmul %204, %206, %cst_109 {dimension_numbers = #tpu.dot_dimension_numbers<[1], [0], [0], [1], [0, 0, 1, 1], [], []>} : vector<48x22xbf16>, vector<22x64xbf16>, vector<48x64xf32> -> vector<48x64xf32>
    %208 = arith.addf %202, %207 : vector<48x64xf32>
    %209 = vector.extract_strided_slice %1 {offsets = [4, 3, 0], sizes = [6, 8, 22], strides = [1, 1, 1]} : vector<10x11x22xbf16> to vector<6x8x22xbf16>
    %210 = vector.shape_cast %209 : vector<6x8x22xbf16> to vector<48x22xbf16>
    %c34 = arith.constant 34 : index
    %c0_110 = arith.constant 0 : index
    %c0_111 = arith.constant 0 : index
    %211 = vector.load %arg3[%c34, %c0_110, %c0_111] : memref<35x22x64xbf16, #tpu.memory_space<vmem>>, vector<1x22x64xbf16>
    %212 = vector.shape_cast %211 : vector<1x22x64xbf16> to vector<22x64xbf16>
    %cst_112 = arith.constant dense<0.000000e+00> : vector<48x64xf32>
    %213 = tpu.matmul %210, %212, %cst_112 {dimension_numbers = #tpu.dot_dimension_numbers<[1], [0], [0], [1], [0, 0, 1, 1], [], []>} : vector<48x22xbf16>, vector<22x64xbf16>, vector<48x64xf32> -> vector<48x64xf32>
    %214 = arith.addf %208, %213 : vector<48x64xf32>
    %c0_113 = arith.constant 0 : index
    %c0_114 = arith.constant 0 : index
    %215 = vector.load %arg4[%c0_113, %c0_114] : memref<1x64xf32, #tpu.memory_space<vmem>>, vector<1x64xf32>
    %216 = vector.broadcast %215 : vector<1x64xf32> to vector<48x64xf32>
    %217 = arith.mulf %214, %216 : vector<48x64xf32>
    %c0_115 = arith.constant 0 : index
    %c0_116 = arith.constant 0 : index
    %218 = vector.load %arg5[%c0_115, %c0_116] : memref<1x64xf32, #tpu.memory_space<vmem>>, vector<1x64xf32>
    %219 = vector.broadcast %218 : vector<1x64xf32> to vector<48x64xf32>
    %220 = arith.addf %217, %219 : vector<48x64xf32>
    %cst_117 = arith.constant 0.000000e+00 : f32
    %221 = vector.broadcast %cst_117 : f32 to vector<48x64xf32>
    %222 = arith.maximumf %220, %221 : vector<48x64xf32>
    %223 = vector.shape_cast %222 : vector<48x64xf32> to vector<6x8x64xf32>
    %224 = arith.truncf %223 : vector<6x8x64xf32> to vector<6x8x64xbf16>
    %c0_118 = arith.constant 0 : index
    %c0_119 = arith.constant 0 : index
    %c0_120 = arith.constant 0 : index
    %c0_121 = arith.constant 0 : index
    %225 = vector.load %arg6[%c0_118, %c0_119, %c0_120, %c0_121] : memref<1x6x8x64xbf16, #tpu.memory_space<vmem>>, vector<1x6x8x64xbf16>
    %226 = vector.shape_cast %225 : vector<1x6x8x64xbf16> to vector<6x8x64xbf16>
    %227 = vector.shape_cast %224 : vector<6x8x64xbf16> to vector<1x6x8x64xbf16>
    tpu.vector_store %arg6[%c0_118, %c0_119, %c0_120, %c0_121], %227 {strides = array<i32>} : memref<1x6x8x64xbf16, #tpu.memory_space<vmem>>, vector<1x6x8x64xbf16>,
    return
  }
  func.func @transform_0(%arg0: i32) -> (i32, i32, i32, i32) {
    %c0_i32 = arith.constant 0 : i32
    %c0_i32_0 = arith.constant 0 : i32
    %c0_i32_1 = arith.constant 0 : i32
    %c0_i32_2 = arith.constant 0 : i32
    return %arg0, %c0_i32, %c0_i32_0, %c0_i32_1 : i32, i32, i32, i32
  }
  func.func @transform_1(%arg0: i32) -> (i32, i32, i32, i32) {
    %c0_i32 = arith.constant 0 : i32
    %c0_i32_0 = arith.constant 0 : i32
    %c0_i32_1 = arith.constant 0 : i32
    %c0_i32_2 = arith.constant 0 : i32
    return %arg0, %c0_i32, %c0_i32_0, %c0_i32_1 : i32, i32, i32, i32
  }
  func.func @transform_2(%arg0: i32) -> (i32, i32, i32) {
    %c0_i32 = arith.constant 0 : i32
    %c0_i32_0 = arith.constant 0 : i32
    %c0_i32_1 = arith.constant 0 : i32
    %c0_i32_2 = arith.constant 0 : i32
    return %c0_i32, %c0_i32_0, %c0_i32_1 : i32, i32, i32
  }
  func.func @transform_3(%arg0: i32) -> (i32, i32) {
    %c0_i32 = arith.constant 0 : i32
    %c0_i32_0 = arith.constant 0 : i32
    %c0_i32_1 = arith.constant 0 : i32
    return %c0_i32, %c0_i32_0 : i32, i32
  }
  func.func @transform_4(%arg0: i32) -> (i32, i32) {
    %c0_i32 = arith.constant 0 : i32
    %c0_i32_0 = arith.constant 0 : i32
    %c0_i32_1 = arith.constant 0 : i32
    return %c0_i32, %c0_i32_0 : i32, i32
  }
  func.func @transform_5(%arg0: i32) -> (i32, i32, i32, i32) {
    %c0_i32 = arith.constant 0 : i32
    %c0_i32_0 = arith.constant 0 : i32
    %c0_i32_1 = arith.constant 0 : i32
    %c0_i32_2 = arith.constant 0 : i32
    return %arg0, %c0_i32, %c0_i32_0, %c0_i32_1 : i32, i32, i32, i32
  }
}

module attributes {stable_mosaic.version = 11 : i64} {
  func.func @_maxpool_kernel(%arg0: i32, %arg1: memref<1x5x40xbf16, #tpu.memory_space<vmem>>, %arg2: memref<1x5x40xbf16, #tpu.memory_space<vmem>>, %arg3: memref<1x5x40xbf16, #tpu.memory_space<vmem>>, %arg4: memref<1x5x40xbf16, #tpu.memory_space<vmem>>, %arg5: memref<1x4x32xbf16, #tpu.memory_space<vmem>>) attributes {dimension_semantics = [#tpu.dimension_semantics<parallel>], iteration_bounds = array<i64: 12>, scalar_prefetch = 0 : i64, scratch_operands = 0 : i64, tpu.core_type = #tpu.core_type<tc>, window_params = [{transform_indices = @transform_0, window_bounds = array<i64: 1, 5, 40>}, {transform_indices = @transform_1, window_bounds = array<i64: 1, 5, 40>}, {transform_indices = @transform_2, window_bounds = array<i64: 1, 5, 40>}, {transform_indices = @transform_3, window_bounds = array<i64: 1, 5, 40>}, {transform_indices = @transform_4, window_bounds = array<i64: 1, 4, 32>}]} {
    %c0 = arith.constant 0 : index
    %c0_0 = arith.constant 0 : index
    %c0_1 = arith.constant 0 : index
    %0 = vector.load %arg1[%c0, %c0_0, %c0_1] : memref<1x5x40xbf16, #tpu.memory_space<vmem>>, vector<1x5x40xbf16>
    %1 = vector.shape_cast %0 : vector<1x5x40xbf16> to vector<5x40xbf16>
    %c0_2 = arith.constant 0 : index
    %c0_3 = arith.constant 0 : index
    %c0_4 = arith.constant 0 : index
    %2 = vector.load %arg2[%c0_2, %c0_3, %c0_4] : memref<1x5x40xbf16, #tpu.memory_space<vmem>>, vector<1x5x40xbf16>
    %3 = vector.shape_cast %2 : vector<1x5x40xbf16> to vector<5x40xbf16>
    %c0_5 = arith.constant 0 : index
    %c0_6 = arith.constant 0 : index
    %c0_7 = arith.constant 0 : index
    %4 = vector.load %arg3[%c0_5, %c0_6, %c0_7] : memref<1x5x40xbf16, #tpu.memory_space<vmem>>, vector<1x5x40xbf16>
    %5 = vector.shape_cast %4 : vector<1x5x40xbf16> to vector<5x40xbf16>
    %c0_8 = arith.constant 0 : index
    %c0_9 = arith.constant 0 : index
    %c0_10 = arith.constant 0 : index
    %6 = vector.load %arg4[%c0_8, %c0_9, %c0_10] : memref<1x5x40xbf16, #tpu.memory_space<vmem>>, vector<1x5x40xbf16>
    %7 = vector.shape_cast %6 : vector<1x5x40xbf16> to vector<5x40xbf16>
    %8 = vector.extract_strided_slice %1 {offsets = [0, 0], sizes = [4, 32], strides = [1, 1]} : vector<5x40xbf16> to vector<4x32xbf16>
    %9 = vector.extract_strided_slice %3 {offsets = [0, 0], sizes = [4, 32], strides = [1, 1]} : vector<5x40xbf16> to vector<4x32xbf16>
    %10 = arith.maximumf %8, %9 : vector<4x32xbf16>
    %11 = vector.extract_strided_slice %1 {offsets = [0, 8], sizes = [4, 32], strides = [1, 1]} : vector<5x40xbf16> to vector<4x32xbf16>
    %12 = arith.maximumf %10, %11 : vector<4x32xbf16>
    %13 = vector.extract_strided_slice %5 {offsets = [0, 0], sizes = [4, 32], strides = [1, 1]} : vector<5x40xbf16> to vector<4x32xbf16>
    %14 = arith.maximumf %12, %13 : vector<4x32xbf16>
    %15 = vector.extract_strided_slice %7 {offsets = [0, 0], sizes = [4, 32], strides = [1, 1]} : vector<5x40xbf16> to vector<4x32xbf16>
    %16 = arith.maximumf %14, %15 : vector<4x32xbf16>
    %17 = vector.extract_strided_slice %5 {offsets = [0, 8], sizes = [4, 32], strides = [1, 1]} : vector<5x40xbf16> to vector<4x32xbf16>
    %18 = arith.maximumf %16, %17 : vector<4x32xbf16>
    %19 = vector.extract_strided_slice %1 {offsets = [1, 0], sizes = [4, 32], strides = [1, 1]} : vector<5x40xbf16> to vector<4x32xbf16>
    %20 = arith.maximumf %18, %19 : vector<4x32xbf16>
    %21 = vector.extract_strided_slice %3 {offsets = [1, 0], sizes = [4, 32], strides = [1, 1]} : vector<5x40xbf16> to vector<4x32xbf16>
    %22 = arith.maximumf %20, %21 : vector<4x32xbf16>
    %23 = vector.extract_strided_slice %1 {offsets = [1, 8], sizes = [4, 32], strides = [1, 1]} : vector<5x40xbf16> to vector<4x32xbf16>
    %24 = arith.maximumf %22, %23 : vector<4x32xbf16>
    %c0_11 = arith.constant 0 : index
    %c0_12 = arith.constant 0 : index
    %c0_13 = arith.constant 0 : index
    %25 = vector.load %arg5[%c0_11, %c0_12, %c0_13] : memref<1x4x32xbf16, #tpu.memory_space<vmem>>, vector<1x4x32xbf16>
    %26 = vector.shape_cast %25 : vector<1x4x32xbf16> to vector<4x32xbf16>
    %27 = vector.shape_cast %24 : vector<4x32xbf16> to vector<1x4x32xbf16>
    tpu.vector_store %arg5[%c0_11, %c0_12, %c0_13], %27 {strides = array<i32>} : memref<1x4x32xbf16, #tpu.memory_space<vmem>>, vector<1x4x32xbf16>,
    return
  }
  func.func @transform_0(%arg0: i32) -> (i32, i32, i32) {
    %c0_i32 = arith.constant 0 : i32
    %c0_i32_0 = arith.constant 0 : i32
    %c0_i32_1 = arith.constant 0 : i32
    return %arg0, %c0_i32, %c0_i32_0 : i32, i32, i32
  }
  func.func @transform_1(%arg0: i32) -> (i32, i32, i32) {
    %c0_i32 = arith.constant 0 : i32
    %c0_i32_0 = arith.constant 0 : i32
    %c0_i32_1 = arith.constant 0 : i32
    return %arg0, %c0_i32, %c0_i32_0 : i32, i32, i32
  }
  func.func @transform_2(%arg0: i32) -> (i32, i32, i32) {
    %c0_i32 = arith.constant 0 : i32
    %c0_i32_0 = arith.constant 0 : i32
    %c0_i32_1 = arith.constant 0 : i32
    return %arg0, %c0_i32, %c0_i32_0 : i32, i32, i32
  }
  func.func @transform_3(%arg0: i32) -> (i32, i32, i32) {
    %c0_i32 = arith.constant 0 : i32
    %c0_i32_0 = arith.constant 0 : i32
    %c0_i32_1 = arith.constant 0 : i32
    return %arg0, %c0_i32, %c0_i32_0 : i32, i32, i32
  }
  func.func @transform_4(%arg0: i32) -> (i32, i32, i32) {
    %c0_i32 = arith.constant 0 : i32
    %c0_i32_0 = arith.constant 0 : i32
    %c0_i32_1 = arith.constant 0 : i32
    return %arg0, %c0_i32, %c0_i32_0 : i32, i32, i32
  }
}

module attributes {stable_mosaic.version = 11 : i64} {
  func.func @_conv3x3_kernel(%arg0: i32, %arg1: memref<1x6x48xbf16, #tpu.memory_space<vmem>>, %arg2: memref<3x48x32xbf16, #tpu.memory_space<vmem>>, %arg3: memref<1x32xf32, #tpu.memory_space<vmem>>, %arg4: memref<1x32xf32, #tpu.memory_space<vmem>>, %arg5: memref<1x4x32xbf16, #tpu.memory_space<vmem>>) attributes {dimension_semantics = [#tpu.dimension_semantics<parallel>], iteration_bounds = array<i64: 12>, scalar_prefetch = 0 : i64, scratch_operands = 0 : i64, tpu.core_type = #tpu.core_type<tc>, window_params = [{transform_indices = @transform_0, window_bounds = array<i64: 1, 6, 48>}, {pipeline_mode = #tpu.pipeline_mode<synchronous>, transform_indices = @transform_1, window_bounds = array<i64: 3, 48, 32>}, {pipeline_mode = #tpu.pipeline_mode<synchronous>, transform_indices = @transform_2, window_bounds = array<i64: 1, 32>}, {pipeline_mode = #tpu.pipeline_mode<synchronous>, transform_indices = @transform_3, window_bounds = array<i64: 1, 32>}, {transform_indices = @transform_4, window_bounds = array<i64: 1, 4, 32>}]} {
    %c0 = arith.constant 0 : index
    %c0_0 = arith.constant 0 : index
    %c0_1 = arith.constant 0 : index
    %0 = vector.load %arg1[%c0, %c0_0, %c0_1] : memref<1x6x48xbf16, #tpu.memory_space<vmem>>, vector<1x6x48xbf16>
    %1 = vector.shape_cast %0 : vector<1x6x48xbf16> to vector<6x48xbf16>
    %2 = vector.extract_strided_slice %1 {offsets = [0, 0], sizes = [4, 48], strides = [1, 1]} : vector<6x48xbf16> to vector<4x48xbf16>
    %c0_2 = arith.constant 0 : index
    %c0_3 = arith.constant 0 : index
    %c0_4 = arith.constant 0 : index
    %3 = vector.load %arg2[%c0_2, %c0_3, %c0_4] : memref<3x48x32xbf16, #tpu.memory_space<vmem>>, vector<1x48x32xbf16>
    %4 = vector.shape_cast %3 : vector<1x48x32xbf16> to vector<48x32xbf16>
    %cst = arith.constant dense<0.000000e+00> : vector<4x32xf32>
    %5 = tpu.matmul %2, %4, %cst {dimension_numbers = #tpu.dot_dimension_numbers<[1], [0], [0], [1], [0, 0, 1, 1], [], []>} : vector<4x48xbf16>, vector<48x32xbf16>, vector<4x32xf32> -> vector<4x32xf32>
    %6 = vector.extract_strided_slice %1 {offsets = [1, 0], sizes = [4, 48], strides = [1, 1]} : vector<6x48xbf16> to vector<4x48xbf16>
    %c1 = arith.constant 1 : index
    %c0_5 = arith.constant 0 : index
    %c0_6 = arith.constant 0 : index
    %7 = vector.load %arg2[%c1, %c0_5, %c0_6] : memref<3x48x32xbf16, #tpu.memory_space<vmem>>, vector<1x48x32xbf16>
    %8 = vector.shape_cast %7 : vector<1x48x32xbf16> to vector<48x32xbf16>
    %cst_7 = arith.constant dense<0.000000e+00> : vector<4x32xf32>
    %9 = tpu.matmul %6, %8, %cst_7 {dimension_numbers = #tpu.dot_dimension_numbers<[1], [0], [0], [1], [0, 0, 1, 1], [], []>} : vector<4x48xbf16>, vector<48x32xbf16>, vector<4x32xf32> -> vector<4x32xf32>
    %10 = arith.addf %5, %9 : vector<4x32xf32>
    %11 = vector.extract_strided_slice %1 {offsets = [2, 0], sizes = [4, 48], strides = [1, 1]} : vector<6x48xbf16> to vector<4x48xbf16>
    %c2 = arith.constant 2 : index
    %c0_8 = arith.constant 0 : index
    %c0_9 = arith.constant 0 : index
    %12 = vector.load %arg2[%c2, %c0_8, %c0_9] : memref<3x48x32xbf16, #tpu.memory_space<vmem>>, vector<1x48x32xbf16>
    %13 = vector.shape_cast %12 : vector<1x48x32xbf16> to vector<48x32xbf16>
    %cst_10 = arith.constant dense<0.000000e+00> : vector<4x32xf32>
    %14 = tpu.matmul %11, %13, %cst_10 {dimension_numbers = #tpu.dot_dimension_numbers<[1], [0], [0], [1], [0, 0, 1, 1], [], []>} : vector<4x48xbf16>, vector<48x32xbf16>, vector<4x32xf32> -> vector<4x32xf32>
    %15 = arith.addf %10, %14 : vector<4x32xf32>
    %c0_11 = arith.constant 0 : index
    %c0_12 = arith.constant 0 : index
    %16 = vector.load %arg3[%c0_11, %c0_12] : memref<1x32xf32, #tpu.memory_space<vmem>>, vector<1x32xf32>
    %17 = vector.broadcast %16 : vector<1x32xf32> to vector<4x32xf32>
    %18 = arith.mulf %15, %17 : vector<4x32xf32>
    %c0_13 = arith.constant 0 : index
    %c0_14 = arith.constant 0 : index
    %19 = vector.load %arg4[%c0_13, %c0_14] : memref<1x32xf32, #tpu.memory_space<vmem>>, vector<1x32xf32>
    %20 = vector.broadcast %19 : vector<1x32xf32> to vector<4x32xf32>
    %21 = arith.addf %18, %20 : vector<4x32xf32>
    %cst_15 = arith.constant 0.000000e+00 : f32
    %22 = vector.broadcast %cst_15 : f32 to vector<4x32xf32>
    %23 = arith.maximumf %21, %22 : vector<4x32xf32>
    %24 = arith.truncf %23 : vector<4x32xf32> to vector<4x32xbf16>
    %c0_16 = arith.constant 0 : index
    %c0_17 = arith.constant 0 : index
    %c0_18 = arith.constant 0 : index
    %25 = vector.load %arg5[%c0_16, %c0_17, %c0_18] : memref<1x4x32xbf16, #tpu.memory_space<vmem>>, vector<1x4x32xbf16>
    %26 = vector.shape_cast %25 : vector<1x4x32xbf16> to vector<4x32xbf16>
    %27 = vector.shape_cast %24 : vector<4x32xbf16> to vector<1x4x32xbf16>
    tpu.vector_store %arg5[%c0_16, %c0_17, %c0_18], %27 {strides = array<i32>} : memref<1x4x32xbf16, #tpu.memory_space<vmem>>, vector<1x4x32xbf16>,
    return
  }
  func.func @transform_0(%arg0: i32) -> (i32, i32, i32) {
    %c0_i32 = arith.constant 0 : i32
    %c0_i32_0 = arith.constant 0 : i32
    %c0_i32_1 = arith.constant 0 : i32
    return %arg0, %c0_i32, %c0_i32_0 : i32, i32, i32
  }
  func.func @transform_1(%arg0: i32) -> (i32, i32, i32) {
    %c0_i32 = arith.constant 0 : i32
    %c0_i32_0 = arith.constant 0 : i32
    %c0_i32_1 = arith.constant 0 : i32
    %c0_i32_2 = arith.constant 0 : i32
    return %c0_i32, %c0_i32_0, %c0_i32_1 : i32, i32, i32
  }
  func.func @transform_2(%arg0: i32) -> (i32, i32) {
    %c0_i32 = arith.constant 0 : i32
    %c0_i32_0 = arith.constant 0 : i32
    %c0_i32_1 = arith.constant 0 : i32
    return %c0_i32, %c0_i32_0 : i32, i32
  }
  func.func @transform_3(%arg0: i32) -> (i32, i32) {
    %c0_i32 = arith.constant 0 : i32
    %c0_i32_0 = arith.constant 0 : i32
    %c0_i32_1 = arith.constant 0 : i32
    return %c0_i32, %c0_i32_0 : i32, i32
  }
  func.func @transform_4(%arg0: i32) -> (i32, i32, i32) {
    %c0_i32 = arith.constant 0 : i32
    %c0_i32_0 = arith.constant 0 : i32
    %c0_i32_1 = arith.constant 0 : i32
    return %arg0, %c0_i32, %c0_i32_0 : i32, i32, i32
  }
}

module attributes {stable_mosaic.version = 11 : i64} {
  func.func @_conv3x3_res_pool_kernel(%arg0: i32, %arg1: memref<1x6x48xbf16, #tpu.memory_space<vmem>>, %arg2: memref<3x48x32xbf16, #tpu.memory_space<vmem>>, %arg3: memref<1x32xf32, #tpu.memory_space<vmem>>, %arg4: memref<1x32xf32, #tpu.memory_space<vmem>>, %arg5: memref<1x4x32xbf16, #tpu.memory_space<vmem>>, %arg6: memref<1x1x8xf32, #tpu.memory_space<vmem>>) attributes {dimension_semantics = [#tpu.dimension_semantics<parallel>], iteration_bounds = array<i64: 12>, scalar_prefetch = 0 : i64, scratch_operands = 0 : i64, tpu.core_type = #tpu.core_type<tc>, window_params = [{transform_indices = @transform_0, window_bounds = array<i64: 1, 6, 48>}, {pipeline_mode = #tpu.pipeline_mode<synchronous>, transform_indices = @transform_1, window_bounds = array<i64: 3, 48, 32>}, {pipeline_mode = #tpu.pipeline_mode<synchronous>, transform_indices = @transform_2, window_bounds = array<i64: 1, 32>}, {pipeline_mode = #tpu.pipeline_mode<synchronous>, transform_indices = @transform_3, window_bounds = array<i64: 1, 32>}, {transform_indices = @transform_4, window_bounds = array<i64: 1, 4, 32>}, {transform_indices = @transform_5, window_bounds = array<i64: 1, 1, 8>}]} {
    %c0 = arith.constant 0 : index
    %c0_0 = arith.constant 0 : index
    %c0_1 = arith.constant 0 : index
    %0 = vector.load %arg1[%c0, %c0_0, %c0_1] : memref<1x6x48xbf16, #tpu.memory_space<vmem>>, vector<1x6x48xbf16>
    %1 = vector.shape_cast %0 : vector<1x6x48xbf16> to vector<6x48xbf16>
    %2 = vector.extract_strided_slice %1 {offsets = [0, 0], sizes = [4, 48], strides = [1, 1]} : vector<6x48xbf16> to vector<4x48xbf16>
    %c0_2 = arith.constant 0 : index
    %c0_3 = arith.constant 0 : index
    %c0_4 = arith.constant 0 : index
    %3 = vector.load %arg2[%c0_2, %c0_3, %c0_4] : memref<3x48x32xbf16, #tpu.memory_space<vmem>>, vector<1x48x32xbf16>
    %4 = vector.shape_cast %3 : vector<1x48x32xbf16> to vector<48x32xbf16>
    %cst = arith.constant dense<0.000000e+00> : vector<4x32xf32>
    %5 = tpu.matmul %2, %4, %cst {dimension_numbers = #tpu.dot_dimension_numbers<[1], [0], [0], [1], [0, 0, 1, 1], [], []>} : vector<4x48xbf16>, vector<48x32xbf16>, vector<4x32xf32> -> vector<4x32xf32>
    %6 = vector.extract_strided_slice %1 {offsets = [1, 0], sizes = [4, 48], strides = [1, 1]} : vector<6x48xbf16> to vector<4x48xbf16>
    %c1 = arith.constant 1 : index
    %c0_5 = arith.constant 0 : index
    %c0_6 = arith.constant 0 : index
    %7 = vector.load %arg2[%c1, %c0_5, %c0_6] : memref<3x48x32xbf16, #tpu.memory_space<vmem>>, vector<1x48x32xbf16>
    %8 = vector.shape_cast %7 : vector<1x48x32xbf16> to vector<48x32xbf16>
    %cst_7 = arith.constant dense<0.000000e+00> : vector<4x32xf32>
    %9 = tpu.matmul %6, %8, %cst_7 {dimension_numbers = #tpu.dot_dimension_numbers<[1], [0], [0], [1], [0, 0, 1, 1], [], []>} : vector<4x48xbf16>, vector<48x32xbf16>, vector<4x32xf32> -> vector<4x32xf32>
    %10 = arith.addf %5, %9 : vector<4x32xf32>
    %11 = vector.extract_strided_slice %1 {offsets = [2, 0], sizes = [4, 48], strides = [1, 1]} : vector<6x48xbf16> to vector<4x48xbf16>
    %c2 = arith.constant 2 : index
    %c0_8 = arith.constant 0 : index
    %c0_9 = arith.constant 0 : index
    %12 = vector.load %arg2[%c2, %c0_8, %c0_9] : memref<3x48x32xbf16, #tpu.memory_space<vmem>>, vector<1x48x32xbf16>
    %13 = vector.shape_cast %12 : vector<1x48x32xbf16> to vector<48x32xbf16>
    %cst_10 = arith.constant dense<0.000000e+00> : vector<4x32xf32>
    %14 = tpu.matmul %11, %13, %cst_10 {dimension_numbers = #tpu.dot_dimension_numbers<[1], [0], [0], [1], [0, 0, 1, 1], [], []>} : vector<4x48xbf16>, vector<48x32xbf16>, vector<4x32xf32> -> vector<4x32xf32>
    %15 = arith.addf %10, %14 : vector<4x32xf32>
    %c0_11 = arith.constant 0 : index
    %c0_12 = arith.constant 0 : index
    %16 = vector.load %arg3[%c0_11, %c0_12] : memref<1x32xf32, #tpu.memory_space<vmem>>, vector<1x32xf32>
    %17 = vector.broadcast %16 : vector<1x32xf32> to vector<4x32xf32>
    %18 = arith.mulf %15, %17 : vector<4x32xf32>
    %c0_13 = arith.constant 0 : index
    %c0_14 = arith.constant 0 : index
    %19 = vector.load %arg4[%c0_13, %c0_14] : memref<1x32xf32, #tpu.memory_space<vmem>>, vector<1x32xf32>
    %20 = vector.broadcast %19 : vector<1x32xf32> to vector<4x32xf32>
    %21 = arith.addf %18, %20 : vector<4x32xf32>
    %c0_15 = arith.constant 0 : index
    %c0_16 = arith.constant 0 : index
    %c0_17 = arith.constant 0 : index
    %22 = vector.load %arg5[%c0_15, %c0_16, %c0_17] : memref<1x4x32xbf16, #tpu.memory_space<vmem>>, vector<1x4x32xbf16>
    %23 = vector.shape_cast %22 : vector<1x4x32xbf16> to vector<4x32xbf16>
    %24 = arith.extf %23 : vector<4x32xbf16> to vector<4x32xf32>
    %25 = arith.addf %21, %24 : vector<4x32xf32>
    %cst_18 = arith.constant 0.000000e+00 : f32
    %26 = vector.broadcast %cst_18 : f32 to vector<4x32xf32>
    %27 = arith.maximumf %25, %26 : vector<4x32xf32>
    %cst_19 = arith.constant dense<0.000000e+00> : vector<32xf32>
    %28 = vector.multi_reduction <add>, %27, %cst_19 [0] : vector<4x32xf32> to vector<32xf32>
    %29 = vector.shape_cast %28 : vector<32xf32> to vector<1x32xf32>
    %30 = vector.extract_strided_slice %29 {offsets = [0, 0], sizes = [1, 8], strides = [1, 1]} : vector<1x32xf32> to vector<1x8xf32>
    %31 = vector.extract_strided_slice %29 {offsets = [0, 8], sizes = [1, 8], strides = [1, 1]} : vector<1x32xf32> to vector<1x8xf32>
    %32 = arith.addf %30, %31 : vector<1x8xf32>
    %33 = vector.extract_strided_slice %29 {offsets = [0, 16], sizes = [1, 8], strides = [1, 1]} : vector<1x32xf32> to vector<1x8xf32>
    %34 = arith.addf %32, %33 : vector<1x8xf32>
    %35 = vector.extract_strided_slice %29 {offsets = [0, 24], sizes = [1, 8], strides = [1, 1]} : vector<1x32xf32> to vector<1x8xf32>
    %36 = arith.addf %34, %35 : vector<1x8xf32>
    %cst_20 = arith.constant 6.250000e-02 : f32
    %37 = vector.broadcast %cst_20 : f32 to vector<1x8xf32>
    %38 = arith.mulf %36, %37 : vector<1x8xf32>
    %c0_21 = arith.constant 0 : index
    %c0_22 = arith.constant 0 : index
    %c0_23 = arith.constant 0 : index
    %39 = vector.load %arg6[%c0_21, %c0_22, %c0_23] : memref<1x1x8xf32, #tpu.memory_space<vmem>>, vector<1x1x8xf32>
    %40 = vector.shape_cast %39 : vector<1x1x8xf32> to vector<1x8xf32>
    %41 = vector.shape_cast %38 : vector<1x8xf32> to vector<1x1x8xf32>
    tpu.vector_store %arg6[%c0_21, %c0_22, %c0_23], %41 {strides = array<i32>} : memref<1x1x8xf32, #tpu.memory_space<vmem>>, vector<1x1x8xf32>,
    return
  }
  func.func @transform_0(%arg0: i32) -> (i32, i32, i32) {
    %c0_i32 = arith.constant 0 : i32
    %c0_i32_0 = arith.constant 0 : i32
    %c0_i32_1 = arith.constant 0 : i32
    return %arg0, %c0_i32, %c0_i32_0 : i32, i32, i32
  }
  func.func @transform_1(%arg0: i32) -> (i32, i32, i32) {
    %c0_i32 = arith.constant 0 : i32
    %c0_i32_0 = arith.constant 0 : i32
    %c0_i32_1 = arith.constant 0 : i32
    %c0_i32_2 = arith.constant 0 : i32
    return %c0_i32, %c0_i32_0, %c0_i32_1 : i32, i32, i32
  }
  func.func @transform_2(%arg0: i32) -> (i32, i32) {
    %c0_i32 = arith.constant 0 : i32
    %c0_i32_0 = arith.constant 0 : i32
    %c0_i32_1 = arith.constant 0 : i32
    return %c0_i32, %c0_i32_0 : i32, i32
  }
  func.func @transform_3(%arg0: i32) -> (i32, i32) {
    %c0_i32 = arith.constant 0 : i32
    %c0_i32_0 = arith.constant 0 : i32
    %c0_i32_1 = arith.constant 0 : i32
    return %c0_i32, %c0_i32_0 : i32, i32
  }
  func.func @transform_4(%arg0: i32) -> (i32, i32, i32) {
    %c0_i32 = arith.constant 0 : i32
    %c0_i32_0 = arith.constant 0 : i32
    %c0_i32_1 = arith.constant 0 : i32
    return %arg0, %c0_i32, %c0_i32_0 : i32, i32, i32
  }
  func.func @transform_5(%arg0: i32) -> (i32, i32, i32) {
    %c0_i32 = arith.constant 0 : i32
    %c0_i32_0 = arith.constant 0 : i32
    %c0_i32_1 = arith.constant 0 : i32
    return %arg0, %c0_i32, %c0_i32_0 : i32, i32, i32
  }
}

module attributes {stable_mosaic.version = 11 : i64} {
  func.func @kernel(%arg0: i32, %arg1: i32, %arg2: i32, %arg3: memref<16x128xbf16, #tpu.memory_space<vmem>>, %arg4: memref<128x128xbf16, #tpu.memory_space<vmem>>, %arg5: memref<1x128xf32, #tpu.memory_space<vmem>>, %arg6: memref<1x128xf32, #tpu.memory_space<vmem>>, %arg7: memref<16x128xbf16, #tpu.memory_space<vmem>>, %arg8: memref<16x128xf32, #tpu.memory_space<vmem>>) attributes {dimension_semantics = [#tpu.dimension_semantics<parallel>, #tpu.dimension_semantics<parallel>, #tpu.dimension_semantics<arbitrary>], iteration_bounds = array<i64: 1, 1, 1>, scalar_prefetch = 0 : i64, scratch_operands = 1 : i64, tpu.core_type = #tpu.core_type<tc>, window_params = [{transform_indices = @transform_0, window_bounds = array<i64: 16, 128>}, {transform_indices = @transform_1, window_bounds = array<i64: 128, 128>}, {transform_indices = @transform_2, window_bounds = array<i64: 1, 128>}, {transform_indices = @transform_3, window_bounds = array<i64: 1, 128>}, {transform_indices = @transform_4, window_bounds = array<i64: 16, 128>}]} {
    %c0_i32 = arith.constant 0 : i32
    %0 = arith.cmpi eq, %arg2, %c0_i32 : i32
    %1 = arith.extui %0 : i1 to i32
    %c0_i32_0 = arith.constant 0 : i32
    %2 = arith.cmpi ne, %1, %c0_i32_0 : i32
    scf.if %2 {
      %cst_10 = arith.constant 0.000000e+00 : f32
      %12 = vector.broadcast %cst_10 : f32 to vector<16x128xf32>
      %c0_11 = arith.constant 0 : index
      %c0_12 = arith.constant 0 : index
      %13 = vector.load %arg8[%c0_11, %c0_12] : memref<16x128xf32, #tpu.memory_space<vmem>>, vector<16x128xf32>
      tpu.vector_store %arg8[%c0_11, %c0_12], %12 {strides = array<i32>} : memref<16x128xf32, #tpu.memory_space<vmem>>, vector<16x128xf32>,
    } else {
    }
    %c0 = arith.constant 0 : index
    %c0_1 = arith.constant 0 : index
    %3 = vector.load %arg8[%c0, %c0_1] : memref<16x128xf32, #tpu.memory_space<vmem>>, vector<16x128xf32>
    %c0_2 = arith.constant 0 : index
    %c0_3 = arith.constant 0 : index
    %4 = vector.load %arg3[%c0_2, %c0_3] : memref<16x128xbf16, #tpu.memory_space<vmem>>, vector<16x128xbf16>
    %c0_4 = arith.constant 0 : index
    %c0_5 = arith.constant 0 : index
    %5 = vector.load %arg4[%c0_4, %c0_5] : memref<128x128xbf16, #tpu.memory_space<vmem>>, vector<128x128xbf16>
    %cst = arith.constant dense<0.000000e+00> : vector<16x128xf32>
    %6 = tpu.matmul %4, %5, %cst {dimension_numbers = #tpu.dot_dimension_numbers<[1], [0], [0], [1], [0, 0, 1, 1], [], []>} : vector<16x128xbf16>, vector<128x128xbf16>, vector<16x128xf32> -> vector<16x128xf32>
    %7 = arith.addf %3, %6 : vector<16x128xf32>
    %c0_6 = arith.constant 0 : index
    %c0_7 = arith.constant 0 : index
    %8 = vector.load %arg8[%c0_6, %c0_7] : memref<16x128xf32, #tpu.memory_space<vmem>>, vector<16x128xf32>
    tpu.vector_store %arg8[%c0_6, %c0_7], %7 {strides = array<i32>} : memref<16x128xf32, #tpu.memory_space<vmem>>, vector<16x128xf32>,
    %c0_i32_8 = arith.constant 0 : i32
    %9 = arith.cmpi eq, %arg2, %c0_i32_8 : i32
    %10 = arith.extui %9 : i1 to i32
    %c0_i32_9 = arith.constant 0 : i32
    %11 = arith.cmpi ne, %10, %c0_i32_9 : i32
    scf.if %11 {
      %c0_10 = arith.constant 0 : index
      %c0_11 = arith.constant 0 : index
      %12 = vector.load %arg8[%c0_10, %c0_11] : memref<16x128xf32, #tpu.memory_space<vmem>>, vector<16x128xf32>
      %c0_12 = arith.constant 0 : index
      %c0_13 = arith.constant 0 : index
      %13 = vector.load %arg5[%c0_12, %c0_13] : memref<1x128xf32, #tpu.memory_space<vmem>>, vector<1x128xf32>
      %14 = vector.broadcast %13 : vector<1x128xf32> to vector<16x128xf32>
      %15 = arith.mulf %12, %14 : vector<16x128xf32>
      %c0_14 = arith.constant 0 : index
      %c0_15 = arith.constant 0 : index
      %16 = vector.load %arg6[%c0_14, %c0_15] : memref<1x128xf32, #tpu.memory_space<vmem>>, vector<1x128xf32>
      %17 = vector.broadcast %16 : vector<1x128xf32> to vector<16x128xf32>
      %18 = arith.addf %15, %17 : vector<16x128xf32>
      %19 = arith.truncf %18 : vector<16x128xf32> to vector<16x128xbf16>
      %c0_16 = arith.constant 0 : index
      %c0_17 = arith.constant 0 : index
      %20 = vector.load %arg7[%c0_16, %c0_17] : memref<16x128xbf16, #tpu.memory_space<vmem>>, vector<16x128xbf16>
      tpu.vector_store %arg7[%c0_16, %c0_17], %19 {strides = array<i32>} : memref<16x128xbf16, #tpu.memory_space<vmem>>, vector<16x128xbf16>,
    } else {
    }
    return
  }
  func.func @transform_0(%arg0: i32, %arg1: i32, %arg2: i32) -> (i32, i32) {
    %c0_i32 = arith.constant 0 : i32
    return %arg0, %arg2 : i32, i32
  }
  func.func @transform_1(%arg0: i32, %arg1: i32, %arg2: i32) -> (i32, i32) {
    %c0_i32 = arith.constant 0 : i32
    return %arg2, %arg1 : i32, i32
  }
  func.func @transform_2(%arg0: i32, %arg1: i32, %arg2: i32) -> (i32, i32) {
    %c0_i32 = arith.constant 0 : i32
    %c0_i32_0 = arith.constant 0 : i32
    return %c0_i32, %arg1 : i32, i32
  }
  func.func @transform_3(%arg0: i32, %arg1: i32, %arg2: i32) -> (i32, i32) {
    %c0_i32 = arith.constant 0 : i32
    %c0_i32_0 = arith.constant 0 : i32
    return %c0_i32, %arg1 : i32, i32
  }
  func.func @transform_4(%arg0: i32, %arg1: i32, %arg2: i32) -> (i32, i32) {
    %c0_i32 = arith.constant 0 : i32
    return %arg0, %arg1 : i32, i32
  }
}

module attributes {stable_mosaic.version = 11 : i64} {
  func.func @kernel(%arg0: i32, %arg1: i32, %arg2: i32, %arg3: memref<16x128xbf16, #tpu.memory_space<vmem>>, %arg4: memref<128x256xbf16, #tpu.memory_space<vmem>>, %arg5: memref<1x256xf32, #tpu.memory_space<vmem>>, %arg6: memref<1x256xf32, #tpu.memory_space<vmem>>, %arg7: memref<16x256xf32, #tpu.memory_space<vmem>>, %arg8: memref<16x256xf32, #tpu.memory_space<vmem>>) attributes {dimension_semantics = [#tpu.dimension_semantics<parallel>, #tpu.dimension_semantics<parallel>, #tpu.dimension_semantics<arbitrary>], iteration_bounds = array<i64: 1, 4, 1>, scalar_prefetch = 0 : i64, scratch_operands = 1 : i64, tpu.core_type = #tpu.core_type<tc>, window_params = [{transform_indices = @transform_0, window_bounds = array<i64: 16, 128>}, {transform_indices = @transform_1, window_bounds = array<i64: 128, 256>}, {transform_indices = @transform_2, window_bounds = array<i64: 1, 256>}, {transform_indices = @transform_3, window_bounds = array<i64: 1, 256>}, {transform_indices = @transform_4, window_bounds = array<i64: 16, 256>}]} {
    %c0_i32 = arith.constant 0 : i32
    %0 = arith.cmpi eq, %arg2, %c0_i32 : i32
    %1 = arith.extui %0 : i1 to i32
    %c0_i32_0 = arith.constant 0 : i32
    %2 = arith.cmpi ne, %1, %c0_i32_0 : i32
    scf.if %2 {
      %cst_10 = arith.constant 0.000000e+00 : f32
      %12 = vector.broadcast %cst_10 : f32 to vector<16x256xf32>
      %c0_11 = arith.constant 0 : index
      %c0_12 = arith.constant 0 : index
      %13 = vector.load %arg8[%c0_11, %c0_12] : memref<16x256xf32, #tpu.memory_space<vmem>>, vector<16x256xf32>
      tpu.vector_store %arg8[%c0_11, %c0_12], %12 {strides = array<i32>} : memref<16x256xf32, #tpu.memory_space<vmem>>, vector<16x256xf32>,
    } else {
    }
    %c0 = arith.constant 0 : index
    %c0_1 = arith.constant 0 : index
    %3 = vector.load %arg8[%c0, %c0_1] : memref<16x256xf32, #tpu.memory_space<vmem>>, vector<16x256xf32>
    %c0_2 = arith.constant 0 : index
    %c0_3 = arith.constant 0 : index
    %4 = vector.load %arg3[%c0_2, %c0_3] : memref<16x128xbf16, #tpu.memory_space<vmem>>, vector<16x128xbf16>
    %c0_4 = arith.constant 0 : index
    %c0_5 = arith.constant 0 : index
    %5 = vector.load %arg4[%c0_4, %c0_5] : memref<128x256xbf16, #tpu.memory_space<vmem>>, vector<128x256xbf16>
    %cst = arith.constant dense<0.000000e+00> : vector<16x256xf32>
    %6 = tpu.matmul %4, %5, %cst {dimension_numbers = #tpu.dot_dimension_numbers<[1], [0], [0], [1], [0, 0, 1, 1], [], []>} : vector<16x128xbf16>, vector<128x256xbf16>, vector<16x256xf32> -> vector<16x256xf32>
    %7 = arith.addf %3, %6 : vector<16x256xf32>
    %c0_6 = arith.constant 0 : index
    %c0_7 = arith.constant 0 : index
    %8 = vector.load %arg8[%c0_6, %c0_7] : memref<16x256xf32, #tpu.memory_space<vmem>>, vector<16x256xf32>
    tpu.vector_store %arg8[%c0_6, %c0_7], %7 {strides = array<i32>} : memref<16x256xf32, #tpu.memory_space<vmem>>, vector<16x256xf32>,
    %c0_i32_8 = arith.constant 0 : i32
    %9 = arith.cmpi eq, %arg2, %c0_i32_8 : i32
    %10 = arith.extui %9 : i1 to i32
    %c0_i32_9 = arith.constant 0 : i32
    %11 = arith.cmpi ne, %10, %c0_i32_9 : i32
    scf.if %11 {
      %c0_10 = arith.constant 0 : index
      %c0_11 = arith.constant 0 : index
      %12 = vector.load %arg8[%c0_10, %c0_11] : memref<16x256xf32, #tpu.memory_space<vmem>>, vector<16x256xf32>
      %c0_12 = arith.constant 0 : index
      %c0_13 = arith.constant 0 : index
      %13 = vector.load %arg5[%c0_12, %c0_13] : memref<1x256xf32, #tpu.memory_space<vmem>>, vector<1x256xf32>
      %14 = vector.broadcast %13 : vector<1x256xf32> to vector<16x256xf32>
      %15 = arith.mulf %12, %14 : vector<16x256xf32>
      %c0_14 = arith.constant 0 : index
      %c0_15 = arith.constant 0 : index
      %16 = vector.load %arg6[%c0_14, %c0_15] : memref<1x256xf32, #tpu.memory_space<vmem>>, vector<1x256xf32>
      %17 = vector.broadcast %16 : vector<1x256xf32> to vector<16x256xf32>
      %18 = arith.addf %15, %17 : vector<16x256xf32>
      %c0_16 = arith.constant 0 : index
      %c0_17 = arith.constant 0 : index
      %19 = vector.load %arg7[%c0_16, %c0_17] : memref<16x256xf32, #tpu.memory_space<vmem>>, vector<16x256xf32>
      tpu.vector_store %arg7[%c0_16, %c0_17], %18 {strides = array<i32>} : memref<16x256xf32, #tpu.memory_space<vmem>>, vector<16x256xf32>,
    } else {
    }
    return
  }
  func.func @transform_0(%arg0: i32, %arg1: i32, %arg2: i32) -> (i32, i32) {
    %c0_i32 = arith.constant 0 : i32
    return %arg0, %arg2 : i32, i32
  }
  func.func @transform_1(%arg0: i32, %arg1: i32, %arg2: i32) -> (i32, i32) {
    %c0_i32 = arith.constant 0 : i32
    return %arg2, %arg1 : i32, i32
  }
  func.func @transform_2(%arg0: i32, %arg1: i32, %arg2: i32) -> (i32, i32) {
    %c0_i32 = arith.constant 0 : i32
    %c0_i32_0 = arith.constant 0 : i32
    return %c0_i32, %arg1 : i32, i32
  }
  func.func @transform_3(%arg0: i32, %arg1: i32, %arg2: i32) -> (i32, i32) {
    %c0_i32 = arith.constant 0 : i32
    %c0_i32_0 = arith.constant 0 : i32
    return %c0_i32, %arg1 : i32, i32
  }
  func.func @transform_4(%arg0: i32, %arg1: i32, %arg2: i32) -> (i32, i32) {
    %c0_i32 = arith.constant 0 : i32
    return %arg0, %arg1 : i32, i32
  }
}

module attributes {stable_mosaic.version = 11 : i64} {
  func.func @_bilstm_kernel(%arg0: memref<6x8x512xf32, #tpu.memory_space<vmem>>, %arg1: memref<6x8x512xf32, #tpu.memory_space<vmem>>, %arg2: memref<128x512xbf16, #tpu.memory_space<vmem>>, %arg3: memref<128x512xbf16, #tpu.memory_space<vmem>>, %arg4: memref<6x8x128xbf16, #tpu.memory_space<vmem>>, %arg5: memref<6x8x128xbf16, #tpu.memory_space<vmem>>, %arg6: memref<8x128xf32, #tpu.memory_space<vmem>>, %arg7: memref<8x128xf32, #tpu.memory_space<vmem>>, %arg8: memref<8x128xf32, #tpu.memory_space<vmem>>, %arg9: memref<8x128xf32, #tpu.memory_space<vmem>>) attributes {dimension_semantics = [], scalar_prefetch = 0 : i64, scratch_operands = 4 : i64, tpu.core_type = #tpu.core_type<tc>} {
    %cst = arith.constant 0.000000e+00 : f32
    %0 = vector.broadcast %cst : f32 to vector<8x128xf32>
    %c0 = arith.constant 0 : index
    %c0_0 = arith.constant 0 : index
    %1 = vector.load %arg6[%c0, %c0_0] : memref<8x128xf32, #tpu.memory_space<vmem>>, vector<8x128xf32>
    tpu.vector_store %arg6[%c0, %c0_0], %0 {strides = array<i32>} : memref<8x128xf32, #tpu.memory_space<vmem>>, vector<8x128xf32>,
    %cst_1 = arith.constant 0.000000e+00 : f32
    %2 = vector.broadcast %cst_1 : f32 to vector<8x128xf32>
    %c0_2 = arith.constant 0 : index
    %c0_3 = arith.constant 0 : index
    %3 = vector.load %arg7[%c0_2, %c0_3] : memref<8x128xf32, #tpu.memory_space<vmem>>, vector<8x128xf32>
    tpu.vector_store %arg7[%c0_2, %c0_3], %2 {strides = array<i32>} : memref<8x128xf32, #tpu.memory_space<vmem>>, vector<8x128xf32>,
    %cst_4 = arith.constant 0.000000e+00 : f32
    %4 = vector.broadcast %cst_4 : f32 to vector<8x128xf32>
    %c0_5 = arith.constant 0 : index
    %c0_6 = arith.constant 0 : index
    %5 = vector.load %arg8[%c0_5, %c0_6] : memref<8x128xf32, #tpu.memory_space<vmem>>, vector<8x128xf32>
    tpu.vector_store %arg8[%c0_5, %c0_6], %4 {strides = array<i32>} : memref<8x128xf32, #tpu.memory_space<vmem>>, vector<8x128xf32>,
    %cst_7 = arith.constant 0.000000e+00 : f32
    %6 = vector.broadcast %cst_7 : f32 to vector<8x128xf32>
    %c0_8 = arith.constant 0 : index
    %c0_9 = arith.constant 0 : index
    %7 = vector.load %arg9[%c0_8, %c0_9] : memref<8x128xf32, #tpu.memory_space<vmem>>, vector<8x128xf32>
    tpu.vector_store %arg9[%c0_8, %c0_9], %6 {strides = array<i32>} : memref<8x128xf32, #tpu.memory_space<vmem>>, vector<8x128xf32>,
    %c0_i32 = arith.constant 0 : i32
    %c6_i32 = arith.constant 6 : i32
    %8 = arith.addi %c0_i32, %c6_i32 : i32
    %c1_i32 = arith.constant 1 : i32
    scf.for %arg10 = %c0_i32 to %8 step %c1_i32  : i32 {
      %9 = arith.index_cast %arg10 : i32 to index
      %c0_11 = arith.constant 0 : index
      %c0_12 = arith.constant 0 : index
      %10 = vector.load %arg0[%9, %c0_11, %c0_12] : memref<6x8x512xf32, #tpu.memory_space<vmem>>, vector<1x8x512xf32>
      %11 = vector.shape_cast %10 : vector<1x8x512xf32> to vector<8x512xf32>
      %c0_13 = arith.constant 0 : index
      %c0_14 = arith.constant 0 : index
      %12 = vector.load %arg6[%c0_13, %c0_14] : memref<8x128xf32, #tpu.memory_space<vmem>>, vector<8x128xf32>
      %13 = arith.truncf %12 : vector<8x128xf32> to vector<8x128xbf16>
      %c0_15 = arith.constant 0 : index
      %c0_16 = arith.constant 0 : index
      %14 = vector.load %arg2[%c0_15, %c0_16] : memref<128x512xbf16, #tpu.memory_space<vmem>>, vector<128x512xbf16>
      %cst_17 = arith.constant dense<0.000000e+00> : vector<8x512xf32>
      %15 = tpu.matmul %13, %14, %cst_17 {dimension_numbers = #tpu.dot_dimension_numbers<[1], [0], [0], [1], [0, 0, 1, 1], [], []>} : vector<8x128xbf16>, vector<128x512xbf16>, vector<8x512xf32> -> vector<8x512xf32>
      %16 = arith.addf %11, %15 : vector<8x512xf32>
      %17 = arith.index_cast %arg10 : i32 to index
      %c0_18 = arith.constant 0 : index
      %c0_19 = arith.constant 0 : index
      %18 = vector.load %arg1[%17, %c0_18, %c0_19] : memref<6x8x512xf32, #tpu.memory_space<vmem>>, vector<1x8x512xf32>
      %19 = vector.shape_cast %18 : vector<1x8x512xf32> to vector<8x512xf32>
      %c0_20 = arith.constant 0 : index
      %c0_21 = arith.constant 0 : index
      %20 = vector.load %arg8[%c0_20, %c0_21] : memref<8x128xf32, #tpu.memory_space<vmem>>, vector<8x128xf32>
      %21 = arith.truncf %20 : vector<8x128xf32> to vector<8x128xbf16>
      %c0_22 = arith.constant 0 : index
      %c0_23 = arith.constant 0 : index
      %22 = vector.load %arg3[%c0_22, %c0_23] : memref<128x512xbf16, #tpu.memory_space<vmem>>, vector<128x512xbf16>
      %cst_24 = arith.constant dense<0.000000e+00> : vector<8x512xf32>
      %23 = tpu.matmul %21, %22, %cst_24 {dimension_numbers = #tpu.dot_dimension_numbers<[1], [0], [0], [1], [0, 0, 1, 1], [], []>} : vector<8x128xbf16>, vector<128x512xbf16>, vector<8x512xf32> -> vector<8x512xf32>
      %24 = arith.addf %19, %23 : vector<8x512xf32>
      %25 = vector.extract_strided_slice %16 {offsets = [0, 0], sizes = [8, 128], strides = [1, 1]} : vector<8x512xf32> to vector<8x128xf32>
      %cst_25 = arith.constant 0.000000e+00 : f32
      %26 = vector.broadcast %cst_25 : f32 to vector<8x128xf32>
      %27 = arith.subf %26, %25 : vector<8x128xf32>
      %28 = math.exp %27 : vector<8x128xf32>
      %cst_26 = arith.constant 1.000000e+00 : f32
      %29 = vector.broadcast %cst_26 : f32 to vector<8x128xf32>
      %30 = arith.addf %29, %28 : vector<8x128xf32>
      %cst_27 = arith.constant 1.000000e+00 : f32
      %31 = vector.broadcast %cst_27 : f32 to vector<8x128xf32>
      %32 = arith.divf %31, %30 : vector<8x128xf32>
      %33 = vector.extract_strided_slice %16 {offsets = [0, 128], sizes = [8, 128], strides = [1, 1]} : vector<8x512xf32> to vector<8x128xf32>
      %cst_28 = arith.constant 0.000000e+00 : f32
      %34 = vector.broadcast %cst_28 : f32 to vector<8x128xf32>
      %35 = arith.subf %34, %33 : vector<8x128xf32>
      %36 = math.exp %35 : vector<8x128xf32>
      %cst_29 = arith.constant 1.000000e+00 : f32
      %37 = vector.broadcast %cst_29 : f32 to vector<8x128xf32>
      %38 = arith.addf %37, %36 : vector<8x128xf32>
      %cst_30 = arith.constant 1.000000e+00 : f32
      %39 = vector.broadcast %cst_30 : f32 to vector<8x128xf32>
      %40 = arith.divf %39, %38 : vector<8x128xf32>
      %41 = vector.extract_strided_slice %16 {offsets = [0, 256], sizes = [8, 128], strides = [1, 1]} : vector<8x512xf32> to vector<8x128xf32>
      %42 = math.tanh %41 : vector<8x128xf32>
      %43 = vector.extract_strided_slice %16 {offsets = [0, 384], sizes = [8, 128], strides = [1, 1]} : vector<8x512xf32> to vector<8x128xf32>
      %cst_31 = arith.constant 0.000000e+00 : f32
      %44 = vector.broadcast %cst_31 : f32 to vector<8x128xf32>
      %45 = arith.subf %44, %43 : vector<8x128xf32>
      %46 = math.exp %45 : vector<8x128xf32>
      %cst_32 = arith.constant 1.000000e+00 : f32
      %47 = vector.broadcast %cst_32 : f32 to vector<8x128xf32>
      %48 = arith.addf %47, %46 : vector<8x128xf32>
      %cst_33 = arith.constant 1.000000e+00 : f32
      %49 = vector.broadcast %cst_33 : f32 to vector<8x128xf32>
      %50 = arith.divf %49, %48 : vector<8x128xf32>
      %51 = vector.extract_strided_slice %24 {offsets = [0, 0], sizes = [8, 128], strides = [1, 1]} : vector<8x512xf32> to vector<8x128xf32>
      %cst_34 = arith.constant 0.000000e+00 : f32
      %52 = vector.broadcast %cst_34 : f32 to vector<8x128xf32>
      %53 = arith.subf %52, %51 : vector<8x128xf32>
      %54 = math.exp %53 : vector<8x128xf32>
      %cst_35 = arith.constant 1.000000e+00 : f32
      %55 = vector.broadcast %cst_35 : f32 to vector<8x128xf32>
      %56 = arith.addf %55, %54 : vector<8x128xf32>
      %cst_36 = arith.constant 1.000000e+00 : f32
      %57 = vector.broadcast %cst_36 : f32 to vector<8x128xf32>
      %58 = arith.divf %57, %56 : vector<8x128xf32>
      %59 = vector.extract_strided_slice %24 {offsets = [0, 128], sizes = [8, 128], strides = [1, 1]} : vector<8x512xf32> to vector<8x128xf32>
      %cst_37 = arith.constant 0.000000e+00 : f32
      %60 = vector.broadcast %cst_37 : f32 to vector<8x128xf32>
      %61 = arith.subf %60, %59 : vector<8x128xf32>
      %62 = math.exp %61 : vector<8x128xf32>
      %cst_38 = arith.constant 1.000000e+00 : f32
      %63 = vector.broadcast %cst_38 : f32 to vector<8x128xf32>
      %64 = arith.addf %63, %62 : vector<8x128xf32>
      %cst_39 = arith.constant 1.000000e+00 : f32
      %65 = vector.broadcast %cst_39 : f32 to vector<8x128xf32>
      %66 = arith.divf %65, %64 : vector<8x128xf32>
      %67 = vector.extract_strided_slice %24 {offsets = [0, 256], sizes = [8, 128], strides = [1, 1]} : vector<8x512xf32> to vector<8x128xf32>
      %68 = math.tanh %67 : vector<8x128xf32>
      %69 = vector.extract_strided_slice %24 {offsets = [0, 384], sizes = [8, 128], strides = [1, 1]} : vector<8x512xf32> to vector<8x128xf32>
      %cst_40 = arith.constant 0.000000e+00 : f32
      %70 = vector.broadcast %cst_40 : f32 to vector<8x128xf32>
      %71 = arith.subf %70, %69 : vector<8x128xf32>
      %72 = math.exp %71 : vector<8x128xf32>
      %cst_41 = arith.constant 1.000000e+00 : f32
      %73 = vector.broadcast %cst_41 : f32 to vector<8x128xf32>
      %74 = arith.addf %73, %72 : vector<8x128xf32>
      %cst_42 = arith.constant 1.000000e+00 : f32
      %75 = vector.broadcast %cst_42 : f32 to vector<8x128xf32>
      %76 = arith.divf %75, %74 : vector<8x128xf32>
      %c0_43 = arith.constant 0 : index
      %c0_44 = arith.constant 0 : index
      %77 = vector.load %arg7[%c0_43, %c0_44] : memref<8x128xf32, #tpu.memory_space<vmem>>, vector<8x128xf32>
      %78 = arith.mulf %40, %77 : vector<8x128xf32>
      %79 = arith.mulf %32, %42 : vector<8x128xf32>
      %80 = arith.addf %78, %79 : vector<8x128xf32>
      %c0_45 = arith.constant 0 : index
      %c0_46 = arith.constant 0 : index
      %81 = vector.load %arg9[%c0_45, %c0_46] : memref<8x128xf32, #tpu.memory_space<vmem>>, vector<8x128xf32>
      %82 = arith.mulf %66, %81 : vector<8x128xf32>
      %83 = arith.mulf %58, %68 : vector<8x128xf32>
      %84 = arith.addf %82, %83 : vector<8x128xf32>
      %85 = math.tanh %80 : vector<8x128xf32>
      %86 = arith.mulf %50, %85 : vector<8x128xf32>
      %87 = math.tanh %84 : vector<8x128xf32>
      %88 = arith.mulf %76, %87 : vector<8x128xf32>
      %c0_47 = arith.constant 0 : index
      %c0_48 = arith.constant 0 : index
      %89 = vector.load %arg7[%c0_47, %c0_48] : memref<8x128xf32, #tpu.memory_space<vmem>>, vector<8x128xf32>
      tpu.vector_store %arg7[%c0_47, %c0_48], %80 {strides = array<i32>} : memref<8x128xf32, #tpu.memory_space<vmem>>, vector<8x128xf32>,
      %c0_49 = arith.constant 0 : index
      %c0_50 = arith.constant 0 : index
      %90 = vector.load %arg9[%c0_49, %c0_50] : memref<8x128xf32, #tpu.memory_space<vmem>>, vector<8x128xf32>
      tpu.vector_store %arg9[%c0_49, %c0_50], %84 {strides = array<i32>} : memref<8x128xf32, #tpu.memory_space<vmem>>, vector<8x128xf32>,
      %c0_51 = arith.constant 0 : index
      %c0_52 = arith.constant 0 : index
      %91 = vector.load %arg6[%c0_51, %c0_52] : memref<8x128xf32, #tpu.memory_space<vmem>>, vector<8x128xf32>
      tpu.vector_store %arg6[%c0_51, %c0_52], %86 {strides = array<i32>} : memref<8x128xf32, #tpu.memory_space<vmem>>, vector<8x128xf32>,
      %c0_53 = arith.constant 0 : index
      %c0_54 = arith.constant 0 : index
      %92 = vector.load %arg8[%c0_53, %c0_54] : memref<8x128xf32, #tpu.memory_space<vmem>>, vector<8x128xf32>
      tpu.vector_store %arg8[%c0_53, %c0_54], %88 {strides = array<i32>} : memref<8x128xf32, #tpu.memory_space<vmem>>, vector<8x128xf32>,
      %93 = arith.truncf %86 : vector<8x128xf32> to vector<8x128xbf16>
      %94 = arith.index_cast %arg10 : i32 to index
      %c0_55 = arith.constant 0 : index
      %c0_56 = arith.constant 0 : index
      %95 = vector.load %arg4[%94, %c0_55, %c0_56] : memref<6x8x128xbf16, #tpu.memory_space<vmem>>, vector<1x8x128xbf16>
      %96 = vector.shape_cast %95 : vector<1x8x128xbf16> to vector<8x128xbf16>
      %97 = vector.shape_cast %93 : vector<8x128xbf16> to vector<1x8x128xbf16>
      tpu.vector_store %arg4[%94, %c0_55, %c0_56], %97 {strides = array<i32>} : memref<6x8x128xbf16, #tpu.memory_space<vmem>>, vector<1x8x128xbf16>,
      %98 = arith.truncf %88 : vector<8x128xf32> to vector<8x128xbf16>
      %c5_i32 = arith.constant 5 : i32
      %99 = arith.subi %c5_i32, %arg10 : i32
      %100 = arith.index_cast %99 : i32 to index
      %c0_57 = arith.constant 0 : index
      %c0_58 = arith.constant 0 : index
      %101 = vector.load %arg5[%100, %c0_57, %c0_58] : memref<6x8x128xbf16, #tpu.memory_space<vmem>>, vector<1x8x128xbf16>
      %102 = vector.shape_cast %101 : vector<1x8x128xbf16> to vector<8x128xbf16>
      %103 = vector.shape_cast %98 : vector<8x128xbf16> to vector<1x8x128xbf16>
      tpu.vector_store %arg5[%100, %c0_57, %c0_58], %103 {strides = array<i32>} : memref<6x8x128xbf16, #tpu.memory_space<vmem>>, vector<1x8x128xbf16>,
    }
    %c6_i32_10 = arith.constant 6 : i32
    return
  }
}

module attributes {stable_mosaic.version = 11 : i64} {
  func.func @kernel(%arg0: i32, %arg1: i32, %arg2: i32, %arg3: memref<16x128xbf16, #tpu.memory_space<vmem>>, %arg4: memref<128x128xbf16, #tpu.memory_space<vmem>>, %arg5: memref<1x128xf32, #tpu.memory_space<vmem>>, %arg6: memref<1x128xf32, #tpu.memory_space<vmem>>, %arg7: memref<16x128xf32, #tpu.memory_space<vmem>>, %arg8: memref<16x128xf32, #tpu.memory_space<vmem>>) attributes {dimension_semantics = [#tpu.dimension_semantics<parallel>, #tpu.dimension_semantics<parallel>, #tpu.dimension_semantics<arbitrary>], iteration_bounds = array<i64: 1, 1, 1>, scalar_prefetch = 0 : i64, scratch_operands = 1 : i64, tpu.core_type = #tpu.core_type<tc>, window_params = [{transform_indices = @transform_0, window_bounds = array<i64: 16, 128>}, {transform_indices = @transform_1, window_bounds = array<i64: 128, 128>}, {transform_indices = @transform_2, window_bounds = array<i64: 1, 128>}, {transform_indices = @transform_3, window_bounds = array<i64: 1, 128>}, {transform_indices = @transform_4, window_bounds = array<i64: 16, 128>}]} {
    %c0_i32 = arith.constant 0 : i32
    %0 = arith.cmpi eq, %arg2, %c0_i32 : i32
    %1 = arith.extui %0 : i1 to i32
    %c0_i32_0 = arith.constant 0 : i32
    %2 = arith.cmpi ne, %1, %c0_i32_0 : i32
    scf.if %2 {
      %cst_10 = arith.constant 0.000000e+00 : f32
      %12 = vector.broadcast %cst_10 : f32 to vector<16x128xf32>
      %c0_11 = arith.constant 0 : index
      %c0_12 = arith.constant 0 : index
      %13 = vector.load %arg8[%c0_11, %c0_12] : memref<16x128xf32, #tpu.memory_space<vmem>>, vector<16x128xf32>
      tpu.vector_store %arg8[%c0_11, %c0_12], %12 {strides = array<i32>} : memref<16x128xf32, #tpu.memory_space<vmem>>, vector<16x128xf32>,
    } else {
    }
    %c0 = arith.constant 0 : index
    %c0_1 = arith.constant 0 : index
    %3 = vector.load %arg8[%c0, %c0_1] : memref<16x128xf32, #tpu.memory_space<vmem>>, vector<16x128xf32>
    %c0_2 = arith.constant 0 : index
    %c0_3 = arith.constant 0 : index
    %4 = vector.load %arg3[%c0_2, %c0_3] : memref<16x128xbf16, #tpu.memory_space<vmem>>, vector<16x128xbf16>
    %c0_4 = arith.constant 0 : index
    %c0_5 = arith.constant 0 : index
    %5 = vector.load %arg4[%c0_4, %c0_5] : memref<128x128xbf16, #tpu.memory_space<vmem>>, vector<128x128xbf16>
    %cst = arith.constant dense<0.000000e+00> : vector<16x128xf32>
    %6 = tpu.matmul %4, %5, %cst {dimension_numbers = #tpu.dot_dimension_numbers<[1], [0], [0], [1], [0, 0, 1, 1], [], []>} : vector<16x128xbf16>, vector<128x128xbf16>, vector<16x128xf32> -> vector<16x128xf32>
    %7 = arith.addf %3, %6 : vector<16x128xf32>
    %c0_6 = arith.constant 0 : index
    %c0_7 = arith.constant 0 : index
    %8 = vector.load %arg8[%c0_6, %c0_7] : memref<16x128xf32, #tpu.memory_space<vmem>>, vector<16x128xf32>
    tpu.vector_store %arg8[%c0_6, %c0_7], %7 {strides = array<i32>} : memref<16x128xf32, #tpu.memory_space<vmem>>, vector<16x128xf32>,
    %c0_i32_8 = arith.constant 0 : i32
    %9 = arith.cmpi eq, %arg2, %c0_i32_8 : i32
    %10 = arith.extui %9 : i1 to i32
    %c0_i32_9 = arith.constant 0 : i32
    %11 = arith.cmpi ne, %10, %c0_i32_9 : i32
    scf.if %11 {
      %c0_10 = arith.constant 0 : index
      %c0_11 = arith.constant 0 : index
      %12 = vector.load %arg8[%c0_10, %c0_11] : memref<16x128xf32, #tpu.memory_space<vmem>>, vector<16x128xf32>
      %c0_12 = arith.constant 0 : index
      %c0_13 = arith.constant 0 : index
      %13 = vector.load %arg5[%c0_12, %c0_13] : memref<1x128xf32, #tpu.memory_space<vmem>>, vector<1x128xf32>
      %14 = vector.broadcast %13 : vector<1x128xf32> to vector<16x128xf32>
      %15 = arith.mulf %12, %14 : vector<16x128xf32>
      %c0_14 = arith.constant 0 : index
      %c0_15 = arith.constant 0 : index
      %16 = vector.load %arg6[%c0_14, %c0_15] : memref<1x128xf32, #tpu.memory_space<vmem>>, vector<1x128xf32>
      %17 = vector.broadcast %16 : vector<1x128xf32> to vector<16x128xf32>
      %18 = arith.addf %15, %17 : vector<16x128xf32>
      %19 = tpu.iota {dimensions = array<i32: 1>} : vector<16x128xi32>
      %c10_i32 = arith.constant 10 : i32
      %20 = vector.broadcast %c10_i32 : i32 to vector<16x128xi32>
      %21 = arith.cmpi slt, %19, %20 : vector<16x128xi32>
      %cst_16 = arith.constant -1.000000e+30 : f32
      %22 = vector.broadcast %cst_16 : f32 to vector<16x128xf32>
      %23 = arith.select %21, %18, %22 : vector<16x128xi1>, vector<16x128xf32>
      %cst_17 = arith.constant dense<0xFF800000> : vector<16xf32>
      %24 = vector.multi_reduction <maximumf>, %23, %cst_17 [1] : vector<16x128xf32> to vector<16xf32>
      %25 = vector.shape_cast %24 : vector<16xf32> to vector<16x1xf32>
      %26 = vector.broadcast %25 : vector<16x1xf32> to vector<16x128xf32>
      %27 = arith.subf %23, %26 : vector<16x128xf32>
      %28 = math.exp %27 : vector<16x128xf32>
      %cst_18 = arith.constant dense<0.000000e+00> : vector<16xf32>
      %29 = vector.multi_reduction <add>, %28, %cst_18 [1] : vector<16x128xf32> to vector<16xf32>
      %30 = vector.shape_cast %29 : vector<16xf32> to vector<16x1xf32>
      %31 = math.log %30 : vector<16x1xf32>
      %32 = vector.broadcast %31 : vector<16x1xf32> to vector<16x128xf32>
      %33 = arith.subf %27, %32 : vector<16x128xf32>
      %c0_19 = arith.constant 0 : index
      %c0_20 = arith.constant 0 : index
      %34 = vector.load %arg7[%c0_19, %c0_20] : memref<16x128xf32, #tpu.memory_space<vmem>>, vector<16x128xf32>
      tpu.vector_store %arg7[%c0_19, %c0_20], %33 {strides = array<i32>} : memref<16x128xf32, #tpu.memory_space<vmem>>, vector<16x128xf32>,
    } else {
    }
    return
  }
  func.func @transform_0(%arg0: i32, %arg1: i32, %arg2: i32) -> (i32, i32) {
    %c0_i32 = arith.constant 0 : i32
    return %arg0, %arg2 : i32, i32
  }
  func.func @transform_1(%arg0: i32, %arg1: i32, %arg2: i32) -> (i32, i32) {
    %c0_i32 = arith.constant 0 : i32
    return %arg2, %arg1 : i32, i32
  }
  func.func @transform_2(%arg0: i32, %arg1: i32, %arg2: i32) -> (i32, i32) {
    %c0_i32 = arith.constant 0 : i32
    %c0_i32_0 = arith.constant 0 : i32
    return %c0_i32, %arg1 : i32, i32
  }
  func.func @transform_3(%arg0: i32, %arg1: i32, %arg2: i32) -> (i32, i32) {
    %c0_i32 = arith.constant 0 : i32
    %c0_i32_0 = arith.constant 0 : i32
    return %c0_i32, %arg1 : i32, i32
  }
  func.func @transform_4(%arg0: i32, %arg1: i32, %arg2: i32) -> (i32, i32) {
    %c0_i32 = arith.constant 0 : i32
    return %arg0, %arg1 : i32, i32
  }
}

</mosaic_0001>

<bundles_post_ra>
// kernel: tile.13
= control target key start
LH: loop header
LB: loop body
LE: loop exit
PB: predicated region body
PF: predicated region fallthrough
CT: control target
= control target key end

     0   :  { %s22_s0 = inlined_call_operand.vmem [shape: f32[8], index: 0, kind: input, shape index: {}]   ;;  %s23_s1 = inlined_call_operand.vmem [shape: f32[8,8], index: 1, kind: output, shape index: {}]  }
   0x1   :  { %v4_v0 = vld [vmem:[%s22_s0] ss:$0 sm:$0xff] }
   0x2   :  { %5 = vst [vmem:[%s23_s1] sm:$0xff] %v4_v0 }

// kernel: tile.14
= control target key start
LH: loop header
LB: loop body
LE: loop exit
PB: predicated region body
PF: predicated region fallthrough
CT: control target
= control target key end

     0   :  { %s67_s10 = smov 56   ;;  %s68_s11 = smov 40   ;;  %vm3_vm0 = vcmask 64512   ;;  %vm9_vm1 = vcmask 523712   ;;  %vm15_vm2 = vcmask 458112   ;;  %vm21_vm3 = vcmask 392512   ;;  %s111_s0 = inlined_call_operand.vmem [shape: f32[8,8], index: 0, kind: input, shape index: {}]   ;;  %s112_s1 = inlined_call_operand.vmem [shape: f32[1,64], index: 1, kind: output, shape index: {}]  }
   0x1   :  { %v53_v0 = vld [vmem:[%s111_s0 + $0x7] sm:$0x1]   ;;  %v55_v1 = vld [vmem:[%s111_s0 + $0x5] sm:$0x1]   ;;  %v54_v2 = vld [vmem:[%s111_s0 + $0x6] sm:$0x1]  }
   0x2   :  { %7 = vrot.lane.b32.xlu0 %v53_v0, %s67_s10  ;;  %19 = vrot.lane.b32.xlu1 %v55_v1, %s68_s11  ;;  %v56_v3 = vld [vmem:[%s111_s0 + $0x4] sm:$0x1]   ;;  %v2_v4 = vld [vmem:[%s111_s0] sm:$0x1]   ;;  %s69_s18 = smov 48   ;;  %s70_s19 = smov 32  }
   0x3   :  { %4 = vst.msk [vmem:[#allocation0] sm:$0x1] %vm3_vm0, %v2_v4   ;;  %v57_v5 = vld [vmem:[%s111_s0 + $0x3] sm:$0x1]   ;;  %v58_v6 = vld [vmem:[%s111_s0 + $0x2] sm:$0x1]  }
   0x4   :  { %s71_s24 = smov 24   ;;  %s72_s25 = smov 16   ;;  %v59_v7 = vld [vmem:[%s111_s0 + $0x1] sm:$0x1]   ;;  %vm27_vm4 = vcmask 326912   ;;  %vm33_vm5 = vcmask 261312  }
   0x5   :  { %s73_s0 = smov 8   ;;  %vm39_vm6 = vcmask 195712   ;;  %vm45_vm7 = vcmask 130112  }
   0x6   :  { %13 = vrot.lane.b32.xlu0 %v54_v2, %s69_s18  ;;  %25 = vrot.lane.b32.xlu1 %v56_v3, %s70_s19 }
   0xa   :  { %31 = vrot.lane.b32.xlu0 %v57_v5, %s71_s24  ;;  %37 = vrot.lane.b32.xlu1 %v58_v6, %s72_s25 }
   0xe   :  { %43 = vrot.lane.b32.xlu0 %v59_v7, %s73_s0 }
  0x74   :  { %v8_v8 = vpop.permute.xlu0 %7   ;;  %v20_v9 = vpop.permute.xlu1 %19  }
  0x75   :  { %10 = vst.msk [vmem:[#allocation0] sm:$0x1] %vm9_vm1, %v8_v8  }
  0x78   :  { %v14_v10 = vpop.permute.xlu0 %13   ;;  %v26_v11 = vpop.permute.xlu1 %25  }
  0x79   :  { %16 = vst.msk [vmem:[#allocation0] sm:$0x1] %vm15_vm2, %v14_v10  }
  0x7a   :  { %22 = vst.msk [vmem:[#allocation0] sm:$0x1] %vm21_vm3, %v20_v9  }
  0x7b   :  { %28 = vst.msk [vmem:[#allocation0] sm:$0x1] %vm27_vm4, %v26_v11  }
  0x7c   :  { %v32_v12 = vpop.permute.xlu0 %31   ;;  %v38_v13 = vpop.permute.xlu1 %37  }
  0x7d   :  { %34 = vst.msk [vmem:[#allocation0] sm:$0x1] %vm33_vm5, %v32_v12  }
  0x7e   :  { %40 = vst.msk [vmem:[#allocation0] sm:$0x1] %vm39_vm6, %v38_v13  }
  0x80   :  { %v44_v14 = vpop.permute.xlu0 %43  }
  0x81   :  { %46 = vst.msk [vmem:[#allocation0] sm:$0x1] %vm45_vm7, %v44_v14  }
  0x88   :  { %v50_v15 = vld [vmem:[#allocation0] sm:$0x1] }
  0x89   :  { %52 = vst [vmem:[%s112_s1] sm:$0x1] %v50_v15 }

// kernel: lipread_forward.9
= control target key start
LH: loop header
LB: loop body
LE: loop exit
PB: predicated region body
PF: predicated region fallthrough
CT: control target
= control target key end

     0   :  { %s433_s15 = smov 0   ;;  %s463_s0 = inlined_call_operand.vmem [shape: bf16[12,5,40], index: 0, kind: input, shape index: {}]   ;;  %s464_s1 = inlined_call_operand.vmem [shape: bf16[12,5,40], index: 1, kind: input, shape index: {}]   ;;  %s465_s2 = inlined_call_operand.vmem [shape: bf16[12,5,40], index: 2, kind: input, shape index: {}]   ;;  %s466_s3 = inlined_call_operand.vmem [shape: bf16[12,5,40], index: 3, kind: input, shape index: {}]   ;;  %s467_s4 = inlined_call_operand.vmem [shape: bf16[12,4,32], index: 4, kind: output, shape index: {}]  }
   0x1 LB: > { %s378_s16 = sadd.s32 4294967295, %s405_s15   ;;  %p382_p0 = scmp.ge.s32.totalorder %s405_s15, 1  ;;  %s405_s15 = sphi %s433_s15, %s14_s15  }
   0x2   : > { %p188_p1 = scmp.lt.s32.totalorder %s405_s15, 13 }
   0x4   : > { %p189_p2 = pnand %p382_p0, %p188_p1 }
   0x5   : > { %p224_p3 = scmp.lt.s32.totalorder (!%p189_p2), %s378_s16, 11  ;;  %s407_s27 = smov (!%p189_p2), 120   ;;  %vm287_vm0 = vcmask (!%p189_p2), 254976  }
   0x6   : > { %192 = sbr.rel (%p189_p2) target bundleno = 147 (0x93), region = 36 }
   0xd   : > { %s469_s16 = smov (!%p224_p3, %s378_s16), 11 }
   0xe   : > { %s383_s17 = sshll.u32 %s469_s16, 2  ;;  %s387_s5 = sshll.u32 %s469_s16, 1 }
   0xf   : > { %s227_s20 = scalar_lea.vmem %s463_s0, %s383_s17  ;;  %s235_s23 = scalar_lea.vmem %s465_s2, %s383_s17 }
  0x10   : > { %v244_v0 = vld [vmem:[%s227_s20] sm:$0x7]  ;;  %s231_s26 = scalar_lea.vmem %s464_s1, %s383_s17  ;;  %s239_s30 = scalar_lea.vmem %s466_s3, %s383_s17 }
  0x11   : > { %250 = vrot.lane.b32.xlu0 %v244_v0, %s407_s27  ;;  %v262_v1 = vshrl.u32 %v244_v0, 16  ;;  %v265_v2 = vshll.u32 %v244_v0, 16  ;;  %v245_v3 = vld [vmem:[%s231_s26] sm:$0x7]  ;;  %s243_s8 = scalar_lea.vmem %s467_s4, %s387_s5 }
  0x12   : > { %v246_v4 = vld [vmem:[%s235_s23] sm:$0x7]  ;;  %v248_v5 = vmax.bf16 %v245_v3, %v244_v0  ;;  %v273_v10 = vshrl.u32 %v245_v3, 16  ;;  %v276_v11 = vshll.u32 %v245_v3, 16 }
  0x13   : > { %v264_v6 = vrot.slane %v262_v1, 4  ;;  %v267_v7 = vrot.slane %v265_v2, 5  ;;  %v247_v16 = vld [vmem:[%s239_s30] sm:$0x7] }
  0x14   : > { %v275_v12 = vrot.slane %v273_v10, 4  ;;  %v278_v13 = vrot.slane %v276_v11, 5 }
  0x15   : > { %257 = vrot.lane.b32.xlu0 %v246_v4, %s407_s27  ;;  %v268_v8 = vor.u32 %v267_v7, %v264_v6 }
  0x16   : > { %v279_v18 = vor.u32 %v278_v13, %v275_v12 }
  0x17   : > { %v269_v9 = vrot.slane %v268_v8, 4 }
  0x18   : > { %v280_v22 = vrot.slane %v279_v18, 4 }
  0x19   : > { %283 = vrot.lane.b32.xlu1 %v269_v9, %s407_s27 }
  0x83   : > { %v251_v14 = vpop.permute.xlu0 %250 }
  0x84   : > { %v253_v15 = vmax.bf16 %v251_v14, %v248_v5 }
  0x86   : > { %v254_v17 = vmax.bf16 %v253_v15, %v246_v4 }
  0x87   : > { %v258_v19 = vpop.permute.xlu0 %257 }
  0x88   : > { %v255_v20 = vmax.bf16 %v254_v17, %v247_v16 }
  0x8a   : > { %v260_v21 = vmax.bf16 %v258_v19, %v255_v20 }
  0x8b   : > { %v284_v24 = vpop.permute.xlu1 %283 }
  0x8c   : > { %v271_v23 = vmax.bf16 %v269_v9, %v260_v21 }
  0x8e   : > { %v282_v25 = vmax.bf16 %v280_v22, %v271_v23 }
  0x90   : > { %v286_v26 = vmax.bf16 %v284_v24, %v282_v25 }
  0x92   : > { %288 = vst.msk [vmem:[%s243_s8] sm:$0x3] %vm287_vm0, %v286_v26 }
  0x93 PF: > { %s14_s15 = sadd.s32 1, %s405_s15  }
  0x94   : > { %p11_p4 = scmp.ge.s32.totalorder %s14_s15, 14  }
  0x96   :  { %13 = sbr.rel (!%p11_p4) target bundleno = 1 (0x1), region = 75 }

// kernel: lipread_forward.8
= control target key start
LH: loop header
LB: loop body
LE: loop exit
PB: predicated region body
PF: predicated region fallthrough
CT: control target
= control target key end

     0   :  { %s5646_s18 = smov 0   ;;  %s7125_s0 = inlined_call_operand.vmem [shape: bf16[2,10,11,22], index: 0, kind: input, shape index: {}]   ;;  %s7126_s1 = inlined_call_operand.vmem [shape: bf16[2,10,11,22], index: 1, kind: input, shape index: {}]   ;;  %s7127_s2 = inlined_call_operand.vmem [shape: bf16[35,22,64], index: 2, kind: input, shape index: {}]   ;;  %s7128_s3 = inlined_call_operand.vmem [shape: f32[1,64], index: 3, kind: input, shape index: {}]   ;;  %s7129_s4 = inlined_call_operand.vmem [shape: f32[1,64], index: 4, kind: input, shape index: {}]   ;;  %s7130_s5 = inlined_call_operand.vmem [shape: bf16[2,6,8,64], index: 5, kind: output, shape index: {}]  }
   0x1 LB: > { %s3983_s19 = sadd.s32 4294967295, %s5612_s18   ;;  %p3987_p0 = scmp.ge.s32.totalorder %s5612_s18, 1  ;;  %s5612_s18 = sphi %s5646_s18, %s15_s18  }
   0x2   : > { %p197_p1 = scmp.lt.s32.totalorder %s5612_s18, 3 }
   0x4   : > { %p198_p2 = pnand %p3987_p0, %p197_p1 }
   0x6   : > { %201 = sbr.rel (%p198_p2) target bundleno = 672 (0x2a0), region = 40 }
   0xd   : > { %v5508_v0 = vld [vmem:[%s7127_s2 + $0xc] sm:$0xff]   ;;  %v7142_v1 = vmov 0.0   ;;  %v5509_v2 = vld [vmem:[%s7127_s2 + $0x14] ss:$0 sps:$4 sm:$0x77]   ;;  %vm327_vm0 = vcmask 1042432  }
   0xe   : > { %4530 = vmatprep.subr.bf16.mxu1 %v7142_v1  ;;  %4802 = vmatprep.subr.bf16.mxu0 %v7142_v1  ;;  %p230_p3 = scmp.lt.s32.totalorder %s3983_s19, 1  ;;  %v5511_v3 = vld [vmem:[%s7127_s2 + $0xcc] sm:$0xff]   ;;  %v329_v4 = vsel %vm327_vm0, %v5509_v2, 0  ;;  %vm5615_vm1 = vmmov 0   ;;  %vm317_vm2 = vcmask 179200   ;;  %v5512_v9 = vld [vmem:[%s7127_s2] sm:$0xff]  }
   0xf   : > { %4531 = vmatpush3.bf16.msra.mxu1 %v5508_v0  ;;  %4534 = vmatprep.mubr.msk.bf16.mxu1 %vm5615_vm1, %v7142_v1  ;;  %v5513_v5 = vld [vmem:[%s7127_s2 + $0xd4] ss:$0 sps:$4 sm:$0x77]   ;;  %vm481_vm3 = vsmask.f32 3328  ;;  %vm853_vm6 = vcmask 1046532  }
  0x10   : > { %4532 = vmatprep.subr.bf16.mxu1 %v7142_v1  ;;  %s7261_s19 = smov (!%p230_p3, %s3983_s19), 1  ;;  %4803 = vmatpush3.bf16.msra.mxu0 %v5511_v3  ;;  %v5680_v6 = vsel %vm327_vm0, %v5513_v5, 0  ;;  %vm482_vm4 = vsmask.f32 7440  ;;  %vm5789_vm7 = vmor %vm327_vm0, %vm853_vm6  ;;  %v5515_v3 = vld [vmem:[%s7127_s2 + $0xd8] sm:$0xff]   ;;  %vm3909_vm11 = vcmask 519168  }
  0x11   : > { %4806 = vmatprep.mubr.msk.bf16.mxu0 %vm5615_vm1, %v7142_v1  ;;  %4804 = vmatprep.subr.bf16.mxu0 %v7142_v1  ;;  %s5496_s28 = smul.u32 80, %s7261_s19  ;;  %7174 = vst [vmem:[#allocation2_spill] sm:$0xff] %v5680_v6  ;;  %v5518_v31 = vld [vmem:[%s7127_s2 + $0x8] ss:$0 sps:$4 sm:$0x77]   ;;  %vm5737_vm5 = vmor %vm481_vm3, %vm482_vm4 }
  0x12   : > { %v422_v48 = vsel %vm327_vm0, %v5518_v31, 0  ;;  %vm1103_vm8 = vsmask.f32 2304  ;;  %vm1104_vm9 = vsmask.f32 6416  ;;  %s5497_s21 = smul.u32 24, %s7261_s19 }
  0x13   : > { %4533 = vmatpush3.bf16.msra.mxu1 %v329_v4  ;;  %s5687_s6 = scalar_lea.vmem %s7126_s1, %s5496_s28  ;;  %s5728_s11 = scalar_lea.vmem %s7125_s0, %s5496_s28  ;;  %vm6081_vm10 = vmor %vm1103_vm8, %vm1104_vm9  ;;  %v5593_v35 = vld [vmem:[%s7127_s2 + $0xc8] ss:$0 sps:$4 sm:$0x77]  }
  0x14   : > { %4546 = vmatprep.subr.bf16.mxu1 %v7142_v1  ;;  %4805 = vmatpush3.bf16.msra.mxu0 %v5680_v6  ;;  %v5691_v7 = vld [vmem:[%s5687_s6] sm:$0xf]  ;;  %v268_v8 = vld [vmem:[%s5687_s6 + $0x8] sm:$0xf]  ;;  %v5700_v11 = vld [vmem:[%s5687_s6 + $0x10] sm:$0xf]  ;;  %s7108_s24 = scalar_lea.vmem %s7130_s5, %s5497_s21 }
  0x15   : > { %4818 = vmatprep.subr.bf16.mxu0 %v7142_v1  ;;  %v3994_v10 = vcombine.low %v5691_v7, %v268_v8  ;;  %v269_v12 = vld [vmem:[%s5687_s6 + $0xc] sm:$0x3]  ;;  %v5705_v13 = vld [vmem:[%s5687_s6 + $0x14] sm:$0x3]  ;;  %v5710_v14 = vld [vmem:[%s5687_s6 + $0x18] sm:$0xf] }
  0x16   : > { %v680_v15 = vshrl.u32 %v268_v8, 16  ;;  %v683_v16 = vshll.u32 %v268_v8, 16  ;;  %v5713_v17 = vld [vmem:[%s5687_s6 + $0x1c] sm:$0x3]  ;;  %v689_v18 = vshll.u32 %v269_v12, 16  ;;  %v694_v19 = vshrl.u32 %v5700_v11, 16 }
  0x17   : > { %4535 = vmatmul.mubr.msk.bf16.vlgmr.msra.gmra.mrb[0].mxu1 %vm317_vm2, %v3994_v10  ;;  %v697_v20 = vshll.u32 %v5700_v11, 16  ;;  %v703_v21 = vshll.u32 %v5705_v13, 16  ;;  %v5721_v24 = vcombine.low %v5700_v11, %v5710_v14  ;;  %v708_v28 = vshrl.u32 %v5710_v14, 16  ;;  %v5742_v39 = vld [vmem:[%s5687_s6 + $0x20] sm:$0xf] }
  0x18   : > { %4547 = vmatpush3.bf16.msra.mxu1 %v5512_v9  ;;  %4538 = vmatprep.mubr.msk.bf16.mxu1 %vm5615_vm1, %v7142_v1  ;;  %v682_v22 = vrot.slane %v680_v15, 4  ;;  %v685_v23 = vrot.slane %v683_v16, 5  ;;  %v696_v25 = vrot.slane %v694_v19, 4  ;;  %v711_v29 = vshll.u32 %v5710_v14, 16  ;;  %v5745_v40 = vld [vmem:[%s5687_s6 + $0x28] sm:$0xf] }
  0x19   : > { %4548 = vmatprep.subr.bf16.mxu1 %v7142_v1  ;;  %7175 = vst [vmem:[#allocation3_spill] sm:$0xff] %v5721_v24  ;;  %v699_v26 = vrot.slane %v697_v20, 5  ;;  %v717_v30 = vshll.u32 %v5713_v17, 16  ;;  %v691_v32 = vrot.slane %v689_v18, 5  ;;  %v705_v34 = vrot.slane %v703_v21, 5 }
  0x1a   : > { %v686_v27 = vor.u32 %v685_v23, %v682_v22  ;;  %v710_v37 = vrot.slane %v708_v28, 4  ;;  %v713_v38 = vrot.slane %v711_v29, 5  ;;  %v5748_v41 = vld [vmem:[%s5728_s11] sm:$0xf]  ;;  %v5753_v43 = vld [vmem:[%s5728_s11 + $0x4] sm:$0x3]  ;;  %v5798_v61 = vcombine.low %v5742_v39, %v5745_v40 }
  0x1b   : > { %v700_v33 = vor.u32 %v699_v26, %v696_v25  ;;  %v5756_v44 = vld [vmem:[%s5728_s11 + $0x8] sm:$0xf]  ;;  %v5759_v45 = vld [vmem:[%s5728_s11 + $0x10] sm:$0xf]  ;;  %v719_v47 = vrot.slane %v717_v30, 5  ;;  %v4032_v55 = vrot.slane %v5748_v41, 9 }
  0x1c   : > { %v687_v36 = vrot.slane %v686_v27, 4  ;;  %v714_v46 = vor.u32 %v713_v38, %v710_v37  ;;  %v5765_v49 = vld [vmem:[%s5728_s11 + $0xc] sm:$0x3]  ;;  %v5768_v50 = vld [vmem:[%s5728_s11 + $0x14] sm:$0x3]  ;;  %4549 = vmatpush3.bf16.msra.mxu1 %v422_v48  ;;  %v857_v59 = vrot.slane %v5753_v43, 5  ;;  %v4002_v37 = vcombine.low %v5748_v41, %v5756_v44 }
  0x1d   : > { %v701_v42 = vrot.slane %v700_v33, 4  ;;  %v5771_v51 = vld [vmem:[%s5728_s11 + $0x18] sm:$0xf]  ;;  %v5782_v54 = vld [vmem:[%s5728_s11 + $0x1c] sm:$0x3]  ;;  %v4033_v60 = vrot.slane %v5756_v44, 9  ;;  %4562 = vmatprep.subr.bf16.mxu1 %v7142_v1 }
  0x1e   : > { %v5775_v52 = vsel %vm5737_vm5, %v687_v36, %v691_v32  ;;  %v715_v56 = vrot.slane %v714_v46, 4  ;;  %7182 = vst [vmem:[#allocation6_spill] sm:$0xff] %v5798_v61  ;;  %v861_v62 = vrot.slane %v5765_v49, 5  ;;  %v4034_v63 = vrot.slane %v5759_v45, 9  ;;  %v5816_v8 = vld [vmem:[%s5728_s11 + $0x20] sm:$0xf] }
  0x1f   : > { %4539 = vmatmul.mubr.msk.bf16.gmra.mrb[4].mxu1 %vm317_vm2, %v5721_v24  ;;  %7178 = vst [vmem:[#allocation4_spill] sm:$0xff] %v5775_v52  ;;  %v5779_v53 = vsel %vm5737_vm5, %v701_v42, %v705_v34  ;;  %v865_v0 = vrot.slane %v5768_v50, 5  ;;  %v5812_v4 = vsel %vm5789_vm7, %v4032_v55, %v857_v59  ;;  %v4035_v5 = vrot.slane %v5771_v51, 9  ;;  %v5516_v10 = vld [vmem:[%s7127_s2 + $0xe0] ss:$0 sps:$4 sm:$0x77]  }
  0x20   : > { %4542 = vmatprep.mubr.msk.bf16.mxu1 %vm5615_vm1, %v7142_v1  ;;  %7179 = vst [vmem:[#allocation5_spill] sm:$0xff] %v5779_v53  ;;  %v5805_v2 = vsel %vm5737_vm5, %v715_v56, %v719_v47  ;;  %v5827_v12 = vsel %vm5789_vm7, %v4033_v60, %v861_v62  ;;  %v869_v16 = vrot.slane %v5782_v54, 5  ;;  %v5835_v18 = vld [vmem:[%s5728_s11 + $0x24] sm:$0x3]  ;;  %v4036_v21 = vrot.slane %v5816_v8, 9  ;;  %v5521_v32 = vld [vmem:[%s7127_s2 + $0x18] sm:$0xff]  }
  0x21   : > { %v5820_v9 = vcombine.low %v5779_v53, %v5805_v2  ;;  %v5831_v15 = vsel %vm5789_vm7, %v4034_v63, %v865_v0  ;;  %v873_v22 = vrot.slane %v5835_v18, 5  ;;  %v5849_v25 = vld [vmem:[%s5687_s6 + $0x4] sm:$0x3]  ;;  %v2347_v27 = vsel %vm327_vm0, %v5516_v10, 0  ;;  %v5861_v29 = vld [vmem:[%s5728_s11 + $0x28] sm:$0xf] }
  0x22   : > { %7183 = vst [vmem:[#allocation7_spill] sm:$0xff] %v5831_v15  ;;  %7184 = vst [vmem:[#allocation8_spill] sm:$0xff] %v5849_v25  ;;  %v870_v28 = vsel %vm5789_vm7, %v4035_v5, %v869_v16  ;;  %v4052_v31 = vrot.slane %v5710_v14, 9  ;;  %v5523_v34 = vld [vmem:[%s7127_s2 + $0xec] ss:$0 sps:$4 sm:$0x77]  }
  0x23   : > { %4807 = vmatmul.mubr.msk.bf16.vlgmr.msra.gmra.mrb[0].mxu0 %vm317_vm2, %v5820_v9  ;;  %v5865_v30 = vsel %vm5789_vm7, %v4036_v21, %v873_v22  ;;  %v7134_v38 = vshrl.u32 %v5748_v41, 16  ;;  %v996_v42 = vrot.slane %v5713_v17, 5  ;;  %v7133_v46 = vshll.u32 %v5748_v41, 16  ;;  %v5886_v48 = vld [vmem:[%s5728_s11 + $0x2c] sm:$0x3]  ;;  %v5519_v16 = vld [vmem:[%s7127_s2 + $0xe4] sm:$0xff]  }
  0x24   : > { %4819 = vmatpush3.bf16.msra.mxu0 %v5515_v3  ;;  %4822 = vmatprep.mubr.msk.bf16.mxu0 %vm5615_vm1, %v7142_v1  ;;  %v5872_v33 = vcombine.low %v870_v28, %v5865_v30  ;;  %v7137_v47 = vshll.u32 %v5765_v49, 16  ;;  %v7132_v55 = vshrl.u32 %v5756_v44, 16  ;;  %v5890_v56 = vld [vmem:[%s5687_s6 + $0x24] sm:$0x3]  ;;  %v5893_v59 = vcombine.low %v5831_v15, %v870_v28  ;;  %v5934_v19 = vld [vmem:[%s5728_s11 + $0x34] sm:$0x3] }
  0x25   : > { %4820 = vmatprep.subr.bf16.mxu0 %v7142_v1  ;;  %v4037_v60 = vrot.slane %v5861_v29, 9  ;;  %v5525_v17 = vld [vmem:[%s7127_s2 + $0x20] ss:$0 sps:$4 sm:$0x77]   ;;  %v7131_v62 = vshll.u32 %v5756_v44, 16  ;;  %v4053_v63 = vrot.slane %v5742_v39, 9 }
  0x26   : > { %7185 = vst [vmem:[#allocation9_spill] sm:$0xff] %v5872_v33  ;;  %7186 = vst [vmem:[#allocation10_spill] sm:$0xff] %v5893_v59  ;;  %v487_v0 = vrot.slane %v7134_v38, 4  ;;  %v490_v3 = vrot.slane %v7133_v46, 5  ;;  %v501_v5 = vrot.slane %v7132_v55, 4  ;;  %v1000_v10 = vrot.slane %v5890_v56, 5 }
  0x27   : > { %4543 = vmatmul.mubr.msk.bf16.gmra.mrb[8].mxu1 %vm317_vm2, %v5798_v61  ;;  %v877_v21 = vrot.slane %v5886_v48, 5  ;;  %v2436_v22 = vsel %vm327_vm0, %v5523_v34, 0  ;;  %v7136_v28 = vshrl.u32 %v5759_v45, 16  ;;  %v7135_v34 = vshll.u32 %v5759_v45, 16 }
  0x28   : > { %4550 = vmatprep.mubr.msk.bf16.mxu1 %vm5615_vm1, %v7142_v1  ;;  %4821 = vmatpush3.bf16.msra.mxu0 %v2347_v27  ;;  %v504_v27 = vrot.slane %v7131_v62, 5  ;;  %v5929_v20 = vsel %vm5789_vm7, %v4053_v63, %v1000_v10  ;;  %v7138_v57 = vshll.u32 %v5768_v50, 16  ;;  %v600_v62 = vsel %vm327_vm0, %v5525_v17, 0  ;;  %v5952_v63 = vld [vmem:[%s5728_s11 + $0x3c] sm:$0x3] }
  0x29   : > { %4834 = vmatprep.subr.bf16.mxu0 %v7142_v1  ;;  %v7141_v55 = vshll.u32 %v5753_v43, 16  ;;  %v491_v10 = vor.u32 %v490_v3, %v487_v0  ;;  %v515_v17 = vrot.slane %v7136_v28, 4  ;;  %v510_v26 = vrot.slane %v7137_v47, 5 }
  0x2a   : > { %v505_v46 = vor.u32 %v504_v27, %v501_v5  ;;  %v518_v5 = vrot.slane %v7135_v34, 5  ;;  %v5962_v27 = vsel %vm5789_vm7, %v4037_v60, %v877_v21  ;;  %v527_v0 = vshrl.u32 %v5771_v51, 16 }
  0x2b   : > { %v530_v28 = vshll.u32 %v5771_v51, 16  ;;  %v1664_v60 = vrot.slane %v5934_v19, 5  ;;  %v2326_v23 = vrot.slane %v5952_v63, 5  ;;  %v496_v47 = vrot.slane %v7141_v55, 5 }
  0x2c   : > { %v506_v3 = vrot.slane %v505_v46, 4  ;;  %v519_v34 = vor.u32 %v518_v5, %v515_v17  ;;  %v5980_v46 = vcombine.low %v5865_v30, %v5962_v27  ;;  %v7190_v5 = vshrl.u32 %v5691_v7, 16 }
  0x2d   : > { %v7191_v6 = vshll.u32 %v5691_v7, 16  ;;  %v4051_v55 = vrot.slane %v5700_v11, 9  ;;  %v7192_v30 = vmov 0.0   ;;  %v532_v7 = vrot.slane %v530_v28, 5 }
  0x2e   : > { %7189 = vst [vmem:[#allocation13_spill] sm:$0xff] %v5980_v46  ;;  %v520_v17 = vrot.slane %v519_v34, 4  ;;  %v5999_v34 = vsel %vm5737_vm5, %v506_v3, %v510_v26  ;;  %v7195_v11 = vshll.u32 %v5849_v25, 16  ;;  %v6023_v3 = vcombine.low %v5816_v8, %v5861_v29 }
  0x2f   : > { %4551 = vmatmul.mubr.msk.bf16.vlgmr.msra.gmra.mrb[0].mxu1 %vm317_vm2, %v4002_v37  ;;  %v5920_v37 = vld [vmem:[%s5728_s11 + $0x30] sm:$0xf]  ;;  %4823 = vmatmul.mubr.msk.bf16.vlgmr.msra.gmra.mrb[0].mxu0 %vm317_vm2, %v5893_v59  ;;  %v5990_v24 = vrot.slane %v7191_v6, 5  ;;  %7193 = vst [vmem:[#allocation14_spill] sm:$0xff] %v5999_v34  ;;  %v529_v6 = vrot.slane %v527_v0, 4  ;;  %v7203_v33 = vshll.u32 %v5861_v29, 16 }
  0x30   : > { %4563 = vmatpush3.bf16.msra.mxu1 %v5521_v32  ;;  %4554 = vmatprep.mubr.msk.bf16.mxu1 %vm5615_vm1, %v7142_v1  ;;  %v5925_v32 = vsel %vm5789_vm7, %v4052_v31, %v996_v42  ;;  %v5946_v31 = vcombine.low %v5759_v45, %v5771_v51  ;;  %v5949_v42 = vld [vmem:[%s5728_s11 + $0x38] sm:$0xf]  ;;  %v4121_v36 = vrot.slane %v5920_v37, 9  ;;  %7197 = vst [vmem:[#allocation17_spill] sm:$0xff] %v6023_v3 }
  0x31   : > { %4564 = vmatprep.subr.bf16.mxu1 %v7142_v1  ;;  %v5940_v38 = vcombine.low %v5925_v32, %v5929_v20  ;;  %4835 = vmatpush3.bf16.msra.mxu0 %v5519_v16  ;;  %v524_v16 = vrot.slane %v7138_v57, 5  ;;  %v4192_v21 = vrot.slane %v5949_v42, 9  ;;  %v5986_v57 = vrot.slane %v7190_v5, 4 }
  0x32   : > { %7188 = vst [vmem:[#allocation12_spill] sm:$0xff] %v5946_v31  ;;  %4826 = vmatprep.mubr.msk.bf16.mxu0 %vm5615_vm1, %v7142_v1  ;;  %4836 = vmatprep.subr.bf16.mxu0 %v7142_v1  ;;  %v6007_v5 = vrot.slane %v7195_v11, 5  ;;  %v1140_v11 = vshrl.u32 %v5782_v54, 16 }
  0x33   : > { %7187 = vst [vmem:[#allocation11_spill] sm:$0xff] %v5940_v38 }
  0x34   : > { %4565 = vmatpush3.bf16.msra.mxu1 %v600_v62  ;;  %v492_v62 = vrot.slane %v491_v10, 4  ;;  %v6003_v10 = vsel %vm5737_vm5, %v520_v17, %v524_v16  ;;  %v1136_v17 = vrot.slane %v527_v0, 5 }
  0x35   : > { %4578 = vmatprep.subr.bf16.mxu1 %v7142_v1  ;;  %v992_v1 = vrot.slane %v5705_v13, 5  ;;  %4837 = vmatpush3.bf16.msra.mxu0 %v2436_v22  ;;  %7194 = vst [vmem:[#allocation15_spill] sm:$0xff] %v6003_v10  ;;  %v6011_v13 = vsel %vm5789_vm7, %v4121_v36, %v1664_v60  ;;  %v6015_v22 = vsel %vm5789_vm7, %v4192_v21, %v2326_v23  ;;  %v1137_v36 = vrot.slane %v530_v28, 6 }
  0x36   : > { %4850 = vmatprep.subr.bf16.mxu0 %v7192_v30  ;;  %7196 = vst [vmem:[#allocation16_spill] sm:$0xff] %v6015_v22  ;;  %v497_v16 = vsel %vm5737_vm5, %v492_v62, %v496_v47  ;;  %v536_v21 = vshll.u32 %v5782_v54, 16  ;;  %v6038_v26 = vcombine.low %v6011_v13, %v6015_v22  ;;  %v533_v47 = vor.u32 %v532_v7, %v529_v6 }
  0x37   : > { %4555 = vmatmul.mubr.msk.bf16.gmra.mrb[4].mxu1 %vm317_vm2, %v5946_v31  ;;  %4827 = vmatmul.mubr.msk.bf16.gmra.mrb[4].mxu0 %vm317_vm2, %v5980_v46  ;;  %v6031_v23 = vsel %vm5789_vm7, %v4051_v55, %v992_v1  ;;  %v7200_v28 = vshrl.u32 %v5759_v45, 16  ;;  %v541_v62 = vshrl.u32 %v5816_v8, 16  ;;  %v4013_v1 = vcombine.low %v497_v16, %v5999_v34 }
  0x38   : > { %4558 = vmatprep.mubr.msk.bf16.mxu1 %vm5615_vm1, %v7192_v30  ;;  %4830 = vmatprep.mubr.msk.bf16.mxu0 %vm5615_vm1, %v7192_v30  ;;  %7198 = vst [vmem:[#allocation18_spill] sm:$0xff] %v6031_v23  ;;  %7199 = vst [vmem:[#allocation19_spill] sm:$0xff] %v6038_v26  ;;  %v7201_v55 = vshll.u32 %v5759_v45, 16  ;;  %v544_v31 = vshll.u32 %v5816_v8, 16  ;;  %v550_v54 = vshll.u32 %v5835_v18, 16  ;;  %v1138_v6 = vor.u32 %v1137_v36, %v1136_v17  ;;  %v5527_v17 = vld [vmem:[%s7127_s2 + $0x24] sm:$0xff]  }
  0x39   : > { %v6042_v0 = vrot.slane %v7200_v28, 5  ;;  %v543_v7 = vrot.slane %v541_v62, 4  ;;  %v538_v16 = vrot.slane %v536_v21, 5  ;;  %v1143_v15 = vrot.slane %v536_v21, 6  ;;  %v6062_v36 = vld [vmem:[%s5687_s6 + $0x2c] sm:$0x3] }
  0x3a   : > { %v6048_v60 = vrot.slane %v7201_v55, 6  ;;  %v1142_v55 = vrot.slane %v1140_v11, 5  ;;  %v546_v53 = vrot.slane %v544_v31, 5  ;;  %v534_v38 = vrot.slane %v533_v47, 4 }
  0x3b   : > { %v552_v34 = vrot.slane %v550_v54, 5  ;;  %v1147_v61 = vrot.slane %v544_v31, 6  ;;  %v1150_v22 = vshrl.u32 %v5835_v18, 16  ;;  %v1139_v21 = vrot.slane %v1138_v6, 4 }
  0x3c   : > { %v547_v28 = vor.u32 %v546_v53, %v543_v7  ;;  %v7202_v11 = vshrl.u32 %v5861_v29, 16  ;;  %v560_v46 = vrot.slane %v7203_v33, 5  ;;  %v1153_v25 = vrot.slane %v550_v54, 6  ;;  %v5529_v7 = vld [vmem:[%s7127_s2 + $0x2c] ss:$0 sps:$4 sm:$0x77]  }
  0x3d   : > { %v1144_v59 = vor.u32 %v1143_v15, %v1142_v55  ;;  %v672_v18 = vor.u32 %v5990_v24, %v5986_v57  ;;  %v1130_v6 = vshrl.u32 %v5768_v50, 16  ;;  %v539_v15 = vsel %vm5737_vm5, %v534_v38, %v538_v16  ;;  %v6103_v54 = vld [vmem:[%s5687_s6 + $0x30] sm:$0xf]  ;;  %v6121_v16 = vld [vmem:[%s5687_s6 + $0x34] sm:$0x3] }
  0x3e   : > { %v557_v47 = vrot.slane %v7202_v11, 4  ;;  %v548_v53 = vrot.slane %v547_v28, 4  ;;  %v1128_v38 = vor.u32 %v6048_v60, %v6042_v0  ;;  %v564_v60 = vshll.u32 %v5886_v48, 16  ;;  %v6124_v55 = vld [vmem:[%s5687_s6 + $0x38] sm:$0xf] }
  0x3f   : > { %4559 = vmatmul.mubr.msk.bf16.gmra.mrb[8].mxu1 %vm317_vm2, %v6023_v3  ;;  %v1146_v3 = vrot.slane %v541_v62, 5  ;;  %4831 = vmatmul.mubr.msk.bf16.gmra.mrb[8].mxu0 %vm317_vm2, %v6038_v26  ;;  %v1152_v62 = vrot.slane %v1150_v22, 5  ;;  %v6093_v22 = vcombine.low %v6031_v23, %v5925_v32  ;;  %v5526_v32 = vld [vmem:[%s7127_s2 + $0xf0] sm:$0xff]   ;;  %v1145_v0 = vsel %vm6081_vm10, %v1139_v21, %v1144_v59  ;;  %v6127_v11 = vld [vmem:[%s5687_s6 + $0x3c] sm:$0x3] }
  0x40   : > { %4566 = vmatprep.mubr.msk.bf16.mxu1 %vm5615_vm1, %v7192_v30  ;;  %4838 = vmatprep.mubr.msk.bf16.mxu0 %vm5615_vm1, %v7192_v30  ;;  %7206 = vst [vmem:[#allocation20_spill] sm:$0xff] %v6127_v11  ;;  %v781_v21 = vsel %vm327_vm0, %v5529_v7, 0  ;;  %v722_v23 = vshrl.u32 %v5742_v39, 16 }
  0x41   : > { %v1148_v31 = vor.u32 %v1147_v61, %v1146_v3  ;;  %v6089_v61 = vsel %vm5737_vm5, %v548_v53, %v552_v34  ;;  %v1154_v57 = vor.u32 %v1153_v25, %v1152_v62  ;;  %v1004_v3 = vrot.slane %v6062_v36, 5  ;;  %v5528_v34 = vld [vmem:[%s7127_s2 + $0xf8] ss:$0 sps:$4 sm:$0x77]  }
  0x42   : > { %v6106_v25 = vcombine.low %v539_v15, %v6089_v61  ;;  %v7208_v53 = vshll.u32 %v5768_v50, 16  ;;  %v4133_v50 = vrot.slane %v6103_v54, 9 }
  0x43   : > { %v1149_v24 = vrot.slane %v1148_v31, 4  ;;  %v7209_v31 = vrot.slane %v5745_v40, 9 }
  0x44   : > { %v1133_v59 = vrot.slane %v7208_v53, 6  ;;  %v566_v53 = vrot.slane %v564_v60, 5 }
  0x45   : > { %v6118_v28 = vsel %vm6081_vm10, %v1149_v24, %v1154_v57  ;;  %v6142_v62 = vsel %vm5789_vm7, %v7209_v31, %v1004_v3  ;;  %v6145_v24 = vcombine.low %v6003_v10, %v539_v15  ;;  %v1129_v57 = vrot.slane %v1128_v38, 4 }
  0x46   : > { %7210 = vst [vmem:[#allocation22_spill] sm:$0xff] %v6142_v62  ;;  %v4202_v3 = vrot.slane %v6124_v55, 9  ;;  %v2415_v15 = vrot.slane %v6127_v11, 5  ;;  %v7212_v38 = vshrl.u32 %v5861_v29, 16  ;;  %v6165_v10 = vcombine.low %v5929_v20, %v6142_v62 }
  0x47   : > { %4567 = vmatmul.mubr.msk.bf16.vlgmr.msra.gmra.mrb[0].mxu1 %vm317_vm2, %v4013_v1  ;;  %v561_v1 = vor.u32 %v560_v46, %v557_v47  ;;  %v673_v46 = vrot.slane %v672_v18, 4  ;;  %v1132_v47 = vrot.slane %v1130_v6, 5  ;;  %4839 = vmatmul.mubr.msk.bf16.vlgmr.msra.gmra.mrb[0].mxu0 %vm317_vm2, %v6093_v22  ;;  %7211 = vst [vmem:[#allocation23_spill] sm:$0xff] %v6145_v24  ;;  %v2530_v18 = vsel %vm327_vm0, %v5528_v34, 0 }
  0x48   : > { %4579 = vmatpush3.bf16.msra.mxu1 %v5527_v17  ;;  %4570 = vmatprep.mubr.msk.bf16.mxu1 %vm5615_vm1, %v7192_v30  ;;  %v6131_v17 = vcombine.low %v1145_v0, %v6118_v28  ;;  %v1761_v6 = vrot.slane %v6121_v16, 5  ;;  %v1156_v34 = vrot.slane %v7212_v38, 5  ;;  %v1120_v38 = vshrl.u32 %v5765_v49, 16 }
  0x49   : > { %4580 = vmatprep.subr.bf16.mxu1 %v7192_v30  ;;  %4851 = vmatpush3.bf16.msra.mxu0 %v5526_v32  ;;  %v562_v7 = vrot.slane %v561_v1, 4  ;;  %v7213_v32 = vshll.u32 %v5861_v29, 16  ;;  %v1134_v26 = vor.u32 %v1133_v59, %v1132_v47  ;;  %v725_v1 = vshll.u32 %v5742_v39, 16 }
  0x4a   : > { %7207 = vst [vmem:[#allocation21_spill] sm:$0xff] %v6131_v17  ;;  %4842 = vmatprep.mubr.msk.bf16.mxu0 %vm5615_vm1, %v7192_v30  ;;  %4852 = vmatprep.subr.bf16.mxu0 %v7192_v30  ;;  %v731_v17 = vshll.u32 %v5890_v56, 16  ;;  %v724_v56 = vrot.slane %v722_v23, 4  ;;  %v678_v20 = vsel %vm5737_vm5, %v673_v46, %v6007_v5  ;;  %v1450_v23 = vshrl.u32 %v5920_v37, 16 }
  0x4b   : > { %v1157_v31 = vrot.slane %v7213_v32, 6  ;;  %v6175_v47 = vsel %vm5737_vm5, %v562_v7, %v566_v53  ;;  %v727_v59 = vrot.slane %v725_v1, 5  ;;  %v6182_v32 = vsel %vm5789_vm7, %v4133_v50, %v1761_v6 }
  0x4c   : > { %4581 = vmatpush3.bf16.msra.mxu1 %v781_v21  ;;  %v1160_v21 = vshrl.u32 %v5886_v48, 16  ;;  %7214 = vst [vmem:[#allocation24_spill] sm:$0xff] %v6182_v32  ;;  %v6186_v48 = vsel %vm5789_vm7, %v4202_v3, %v2415_v15  ;;  %v6191_v7 = vsel %vm6081_vm10, %v1129_v57, %v1134_v26  ;;  %v733_v1 = vrot.slane %v731_v17, 5 }
  0x4d   : > { %4594 = vmatprep.subr.bf16.mxu1 %v7192_v30  ;;  %4853 = vmatpush3.bf16.msra.mxu0 %v2530_v18  ;;  %7215 = vst [vmem:[#allocation25_spill] sm:$0xff] %v6186_v48  ;;  %v1158_v18 = vor.u32 %v1157_v31, %v1156_v34  ;;  %7216 = vst [vmem:[#allocation26_spill] sm:$0xff] %v6191_v7  ;;  %v728_v53 = vor.u32 %v727_v59, %v724_v56  ;;  %v6202_v50 = vrot.slane %v564_v60, 6 }
  0x4e   : > { %4866 = vmatprep.subr.bf16.mxu0 %v7192_v30  ;;  %v6198_v5 = vcombine.low %v6089_v61, %v6175_v47  ;;  %v6200_v46 = vrot.slane %v1160_v21, 5  ;;  %v6206_v6 = vcombine.low %v5771_v51, %v5816_v8  ;;  %v4024_v26 = vcombine.low %v678_v20, %v5775_v52 }
  0x4f   : > { %4571 = vmatmul.mubr.msk.bf16.gmra.mrb[4].mxu1 %vm317_vm2, %v6145_v24  ;;  %4843 = vmatmul.mubr.msk.bf16.gmra.mrb[4].mxu0 %vm317_vm2, %v6165_v10  ;;  %v6209_v57 = vrot.slane %v1120_v38, 5  ;;  %v6215_v17 = vcombine.low %v6182_v32, %v6186_v48  ;;  %v729_v61 = vrot.slane %v728_v53, 4  ;;  %v6218_v3 = vcombine.low %v6191_v7, %v1145_v0 }
  0x50   : > { %4574 = vmatprep.mubr.msk.bf16.mxu1 %vm5615_vm1, %v7192_v30  ;;  %7217 = vst [vmem:[#allocation27_spill] sm:$0xff] %v6198_v5  ;;  %4846 = vmatprep.mubr.msk.bf16.mxu0 %vm5615_vm1, %v7192_v30  ;;  %v6220_v60 = vrot.slane %v1158_v18, 4  ;;  %v1453_v51 = vshll.u32 %v5920_v37, 16  ;;  %v6225_v8 = vcombine.low %v5710_v14, %v5742_v39  ;;  %v6228_v34 = vrot.slane %v1450_v23, 5 }
  0x51   : > { %7218 = vst [vmem:[#allocation28_spill] sm:$0xff] %v6215_v17  ;;  %v1859_v31 = vshrl.u32 %v5934_v19, 16  ;;  %v6233_v21 = vsel %vm5737_vm5, %v729_v61, %v733_v1  ;;  %v1164_v0 = vor.u32 %v6202_v50, %v6200_v46  ;;  %v736_v38 = vshrl.u32 %v5745_v40, 16 }
  0x52   : > { %v739_v14 = vshll.u32 %v5745_v40, 16  ;;  %v6243_v39 = vcombine.low %v5805_v2, %v6233_v21  ;;  %v2128_v56 = vshrl.u32 %v5949_v42, 16  ;;  %v2131_v59 = vshll.u32 %v5949_v42, 16 }
  0x53   : > { %v7220_v20 = vshrl.u32 %v5748_v41, 16  ;;  %v7221_v53 = vshll.u32 %v5748_v41, 16  ;;  %v2137_v46 = vshll.u32 %v5952_v63, 16  ;;  %v1110_v40 = vshrl.u32 %v5753_v43, 16 }
  0x54   : > { %7219 = vst [vmem:[#allocation29_spill] sm:$0xff] %v6243_v39  ;;  %v7222_v2 = vshll.u32 %v5753_v43, 16  ;;  %v7223_v61 = vshrl.u32 %v5756_v44, 16  ;;  %v7225_v52 = vshll.u32 %v5765_v49, 16  ;;  %v1452_v48 = vrot.slane %v1450_v23, 4  ;;  %v5531_v43 = vld [vmem:[%s7127_s2 + $0x30] sm:$0xff]  }
  0x55   : > { %v1106_v18 = vrot.slane %v7220_v20, 5  ;;  %v1107_v1 = vrot.slane %v7221_v53, 6  ;;  %v738_v41 = vrot.slane %v736_v38, 4  ;;  %v741_v53 = vrot.slane %v739_v14, 5 }
  0x56   : > { %v1113_v50 = vrot.slane %v7222_v2, 6  ;;  %v1116_v15 = vrot.slane %v7223_v61, 5  ;;  %v1123_v20 = vrot.slane %v7225_v52, 6  ;;  %v1112_v62 = vrot.slane %v1110_v40, 5 }
  0x57   : > { %4575 = vmatmul.mubr.msk.bf16.gmra.mrb[8].mxu1 %vm317_vm2, %v6198_v5  ;;  %v1108_v24 = vor.u32 %v1107_v1, %v1106_v18  ;;  %v7224_v5 = vshll.u32 %v5756_v44, 16  ;;  %4847 = vmatmul.mubr.msk.bf16.gmra.mrb[8].mxu0 %vm317_vm2, %v6215_v17  ;;  %v1455_v32 = vrot.slane %v1453_v51, 5  ;;  %v5533_v49 = vld [vmem:[%s7127_s2 + $0x38] ss:$0 sps:$4 sm:$0x77]   ;;  %v2130_v18 = vrot.slane %v2128_v56, 4 }
  0x58   : > { %4582 = vmatprep.mubr.msk.bf16.mxu1 %vm5615_vm1, %v7192_v30  ;;  %4854 = vmatprep.mubr.msk.bf16.mxu0 %vm5615_vm1, %v7192_v30  ;;  %v1114_v38 = vor.u32 %v1113_v50, %v1112_v62  ;;  %v7226_v1 = vshll.u32 %v5934_v19, 16  ;;  %v2133_v2 = vrot.slane %v2131_v59, 5  ;;  %v1856_v61 = vrot.slane %v1453_v51, 6 }
  0x59   : > { %v1117_v7 = vrot.slane %v7224_v5, 6  ;;  %v1109_v52 = vrot.slane %v1108_v24, 4  ;;  %v1124_v5 = vor.u32 %v1123_v20, %v6209_v57  ;;  %v1456_v14 = vor.u32 %v1455_v32, %v1452_v48  ;;  %v5532_v24 = vld [vmem:[%s7127_s2 + $0x104] ss:$0 sps:$4 sm:$0x77]   ;;  %v5530_v57 = vld [vmem:[%s7127_s2 + $0xfc] sm:$0xff]  }
  0x5a   : > { %v1461_v40 = vrot.slane %v7226_v1, 5  ;;  %v2501_v17 = vrot.slane %v2128_v56, 5  ;;  %v2502_v11 = vrot.slane %v2131_v59, 6  ;;  %v2134_v32 = vor.u32 %v2133_v2, %v2130_v18  ;;  %v5538_v2 = vld [vmem:[%s7127_s2 + $0x110] ss:$0 sps:$4 sm:$0x77]  }
  0x5b   : > { %v1118_v23 = vor.u32 %v1117_v7, %v1116_v15  ;;  %v6282_v7 = vsel %vm6081_vm10, %v1109_v52, %v1114_v38  ;;  %v1457_v62 = vrot.slane %v1456_v14, 4  ;;  %v2139_v48 = vrot.slane %v2137_v46, 5 }
  0x5c   : > { %v742_v51 = vor.u32 %v741_v53, %v738_v41  ;;  %v745_v15 = vshll.u32 %v6062_v36, 16  ;;  %v2135_v50 = vrot.slane %v2134_v32, 4  ;;  %v4080_v20 = vcombine.low %v5756_v44, %v5759_v45  ;;  %v5596_v32 = vld [vmem:[%s5687_s6] sm:$0xf]  ;;  %v6571_v45 = vld [vmem:[%s5687_s6 + $0x44] sm:$0x3] }
  0x5d   : > { %v1119_v39 = vrot.slane %v1118_v23, 4  ;;  %v6298_v59 = vsel %vm5737_vm5, %v1457_v62, %v1461_v40  ;;  %v1861_v36 = vrot.slane %v1859_v31, 5  ;;  %v911_v41 = vsel %vm327_vm0, %v5533_v49, 0  ;;  %v5535_v40 = vld [vmem:[%s7127_s2 + $0x108] sm:$0xff]   ;;  %v7229_v62 = vld [vmem:[#allocation10_spill] sm:$0xff] }
  0x5e   : > { %v7227_v53 = vmov %v7226_v1  ;;  %v2508_v52 = vrot.slane %v2137_v46, 6  ;;  %v6315_v23 = vsel %vm5737_vm5, %v2135_v50, %v2139_v48  ;;  %v747_v49 = vrot.slane %v745_v15, 5  ;;  %v6412_v50 = vld [vmem:[%s5728_s11 + $0x40] sm:$0xf] }
  0x5f   : > { %4583 = vmatmul.mubr.msk.bf16.vlgmr.msra.gmra.mrb[0].mxu1 %vm317_vm2, %v4024_v26  ;;  %v2505_v26 = vshrl.u32 %v5952_v63, 16  ;;  %v6293_v56 = vsel %vm6081_vm10, %v1119_v39, %v1124_v5  ;;  %v6305_v63 = vsel %vm6081_vm10, %v6220_v60, %v1164_v0  ;;  %4855 = vmatmul.mubr.msk.bf16.vlgmr.msra.gmra.mrb[0].mxu0 %vm317_vm2, %v6218_v3  ;;  %v1857_v39 = vor.u32 %v1856_v61, %v6228_v34  ;;  %v5555_v44 = vld [vmem:[%s7127_s2 + $0x134] ss:$0 sps:$4 sm:$0x77]  }
  0x60   : > { %4595 = vmatpush3.bf16.msra.mxu1 %v5531_v43  ;;  %4586 = vmatprep.mubr.msk.bf16.mxu1 %vm5615_vm1, %v7192_v30  ;;  %v1862_v43 = vrot.slane %v7227_v53, 6  ;;  %v2503_v60 = vor.u32 %v2502_v11, %v2501_v17  ;;  %v743_v0 = vrot.slane %v742_v51, 4  ;;  %v2615_v34 = vsel %vm327_vm0, %v5532_v24, 0  ;;  %v5598_v51 = vld [vmem:[%s5687_s6 + $0xc] sm:$0x3] }
  0x61   : > { %4596 = vmatprep.subr.bf16.mxu1 %v7192_v30  ;;  %4867 = vmatpush3.bf16.msra.mxu0 %v5530_v57  ;;  %v2507_v31 = vrot.slane %v2505_v26, 5  ;;  %v6324_v19 = vcombine.low %v6118_v28, %v6305_v63  ;;  %v1858_v11 = vrot.slane %v1857_v39, 4  ;;  %v6337_v28 = vcombine.low %v5962_v27, %v6011_v13  ;;  %v5536_v13 = vld [vmem:[%s7127_s2 + $0x3c] sm:$0xff]   ;;  %v6404_v57 = vld [vmem:[%s5687_s6 + $0x8] sm:$0xf] }
  0x62   : > { %4858 = vmatprep.mubr.msk.bf16.mxu0 %vm5615_vm1, %v7192_v30  ;;  %4868 = vmatprep.subr.bf16.mxu0 %v7192_v30  ;;  %v1863_v46 = vor.u32 %v1862_v43, %v1861_v36  ;;  %v2504_v17 = vrot.slane %v2503_v60, 4  ;;  %v6332_v18 = vsel %vm5737_vm5, %v743_v0, %v747_v49  ;;  %v7228_v1 = vcombine.low %v5812_v4, %v5827_v12  ;;  %v5547_v60 = vld [vmem:[%s7127_s2 + $0x50] ss:$0 sps:$4 sm:$0x77]   ;;  %v5542_v0 = vld [vmem:[%s7127_s2 + $0x114] sm:$0xff]  }
  0x63   : > { %v2509_v5 = vor.u32 %v2508_v52, %v2507_v31  ;;  %v2700_v4 = vsel %vm327_vm0, %v5538_v2, 0  ;;  %v6393_v24 = vcombine.low %v5861_v29, %v5920_v37  ;;  %v4049_v48 = vrot.slane %v5596_v32, 9  ;;  %v7230_v29 = vld [vmem:[#allocation8_spill] sm:$0xff]  ;;  %v6441_v31 = vld [vmem:[%s5728_s11 + $0x44] sm:$0x3] }
  0x64   : > { %4597 = vmatpush3.bf16.msra.mxu1 %v911_v41  ;;  %v1864_v38 = vsel %vm6081_vm10, %v1858_v11, %v1863_v46  ;;  %v4050_v26 = vrot.slane %v6404_v57, 9  ;;  %v984_v37 = vrot.slane %v7230_v29, 5  ;;  %v988_v15 = vrot.slane %v5598_v51, 5  ;;  %v7231_v41 = vld [vmem:[#allocation13_spill] sm:$0xff]  ;;  %v5548_v51 = vld [vmem:[%s7127_s2 + $0x120] sm:$0xff]  }
  0x65   : > { %4610 = vmatprep.subr.bf16.mxu1 %v7192_v30  ;;  %4869 = vmatpush3.bf16.msra.mxu0 %v2615_v34  ;;  %v6351_v14 = vsel %vm6081_vm10, %v2504_v17, %v2509_v5  ;;  %v4224_v36 = vcombine.low %v5949_v42, %v6412_v50  ;;  %v5543_v42 = vld [vmem:[%s7127_s2 + $0x48] sm:$0xff]   ;;  %v6434_v52 = vcombine.low %v6305_v63, %v1864_v38  ;;  %v2766_v49 = vshrl.u32 %v6412_v50, 16  ;;  %v5545_v34 = vld [vmem:[%s7127_s2 + $0x11c] ss:$0 sps:$4 sm:$0x77]   ;;  %v5549_v29 = vld [vmem:[%s7127_s2 + $0x54] sm:$0xff]  }
  0x66   : > { %4882 = vmatprep.subr.bf16.mxu0 %v7192_v30  ;;  %v6354_v27 = vcombine.low %v1864_v38, %v6351_v14  ;;  %v985_v39 = vsel %vm5789_vm7, %v4049_v48, %v984_v37  ;;  %v6424_v53 = vsel %vm5789_vm7, %v4050_v26, %v988_v15  ;;  %v2769_v63 = vshll.u32 %v6412_v50, 16  ;;  %v6482_v48 = vld [vmem:[%s5687_s6 + $0x40] sm:$0xf]  ;;  %v5551_v37 = vld [vmem:[%s7127_s2 + $0x5c] ss:$0 sps:$4 sm:$0x77]  }
  0x67   : > { %4587 = vmatmul.mubr.msk.bf16.gmra.mrb[4].mxu1 %vm317_vm2, %v5820_v9  ;;  %4859 = vmatmul.mubr.msk.bf16.gmra.mrb[4].mxu0 %vm317_vm2, %v6324_v19  ;;  %v6343_v9 = vcombine.low %v6233_v21, %v6332_v18  ;;  %v5540_v21 = vld [vmem:[%s7127_s2 + $0x44] ss:$0 sps:$4 sm:$0x77]   ;;  %v4058_v43 = vcombine.low %v985_v39, %v6424_v53  ;;  %v1198_v46 = vsel %vm327_vm0, %v5547_v60, 0  ;;  %v2775_v11 = vshll.u32 %v6441_v31, 16 }
  0x68   : > { %4590 = vmatprep.mubr.msk.bf16.mxu1 %vm5615_vm1, %v7192_v30  ;;  %4862 = vmatprep.mubr.msk.bf16.mxu0 %vm5615_vm1, %v7192_v30  ;;  %v1038_v61 = vsel %vm327_vm0, %v5540_v21, 0  ;;  %v3139_v17 = vrot.slane %v2766_v49, 5  ;;  %v3140_v5 = vrot.slane %v2769_v63, 6  ;;  %v3143_v38 = vshrl.u32 %v6441_v31, 16 }
  0x69   : > { %v4069_v26 = vcombine.low %v6282_v7, %v6293_v56  ;;  %v2768_v7 = vrot.slane %v2766_v49, 4  ;;  %v2771_v15 = vrot.slane %v2769_v63, 5  ;;  %v1291_v39 = vsel %vm327_vm0, %v5551_v37, 0  ;;  %v7233_v37 = vld [vmem:[#allocation20_spill] sm:$0xff] }
  0x6a   : > { %v3145_v21 = vrot.slane %v3143_v38, 5  ;;  %v6521_v60 = vcombine.low %v6175_v47, %v6298_v59  ;;  %v2777_v49 = vrot.slane %v2775_v11, 5  ;;  %v1559_v63 = vshll.u32 %v6103_v54, 16 }
  0x6f   : > { %4591 = vmatmul.mubr.msk.bf16.gmra.mrb[8].mxu1 %vm317_vm2, %v6343_v9  ;;  %4863 = vmatmul.mubr.msk.bf16.gmra.mrb[8].mxu0 %vm317_vm2, %v6354_v27 }
  0x70   : > { %4598 = vmatprep.mubr.msk.bf16.mxu1 %vm5615_vm1, %v7192_v30  ;;  %4870 = vmatprep.mubr.msk.bf16.mxu0 %vm5615_vm1, %v7192_v30 }
  0x77   : > { %4599 = vmatmul.mubr.msk.bf16.vlgmr.msra.gmra.mrb[0].mxu1 %vm317_vm2, %v7228_v1  ;;  %4871 = vmatmul.mubr.msk.bf16.vlgmr.msra.gmra.mrb[0].mxu0 %vm317_vm2, %v6206_v6  ;;  %v3146_v1 = vrot.slane %v2775_v11, 6  ;;  %v1561_v11 = vrot.slane %v1559_v63, 5 }
  0x78   : > { %4611 = vmatpush3.bf16.msra.mxu1 %v5536_v13  ;;  %4602 = vmatprep.mubr.msk.bf16.mxu1 %vm5615_vm1, %v7192_v30  ;;  %v3141_v13 = vor.u32 %v3140_v5, %v3139_v17  ;;  %v1565_v17 = vshll.u32 %v6121_v16, 16  ;;  %v2226_v5 = vshrl.u32 %v6124_v55, 16  ;;  %v5556_v16 = vld [vmem:[%s7127_s2 + $0x68] ss:$0 sps:$4 sm:$0x77]  }
  0x79   : > { %4612 = vmatprep.subr.bf16.mxu1 %v7192_v30  ;;  %4883 = vmatpush3.bf16.msra.mxu0 %v5535_v40  ;;  %v2798_v40 = vsel %vm327_vm0, %v5545_v34, 0 }
  0x7a   : > { %4874 = vmatprep.mubr.msk.bf16.mxu0 %vm5615_vm1, %v7192_v30  ;;  %4884 = vmatprep.subr.bf16.mxu0 %v7192_v30  ;;  %v3142_v2 = vrot.slane %v3141_v13, 4  ;;  %v2229_v13 = vshll.u32 %v6124_v55, 16 }
  0x7c   : > { %4613 = vmatpush3.bf16.msra.mxu1 %v1038_v61  ;;  %v3147_v61 = vor.u32 %v3146_v1, %v3145_v21  ;;  %v2864_v21 = vshrl.u32 %v6482_v48, 16  ;;  %v2867_v1 = vshll.u32 %v6482_v48, 16 }
  0x7d   : > { %4626 = vmatprep.subr.bf16.mxu1 %v7192_v30  ;;  %4885 = vmatpush3.bf16.msra.mxu0 %v2700_v4  ;;  %v5599_v4 = vld [vmem:[%s5687_s6 + $0x28] sm:$0xf] }
  0x7e   : > { %4898 = vmatprep.subr.bf16.mxu0 %v7192_v30  ;;  %v6474_v32 = vsel %vm6081_vm10, %v3142_v2, %v3147_v61  ;;  %v2228_v2 = vrot.slane %v2226_v5, 4  ;;  %v5552_v61 = vld [vmem:[%s7127_s2 + $0x12c] sm:$0xff]   ;;  %v5561_v5 = vld [vmem:[%s7127_s2 + $0x74] ss:$0 sps:$4 sm:$0x77]  }
  0x7f   : > { %4603 = vmatmul.mubr.msk.bf16.gmra.mrb[4].mxu1 %vm317_vm2, %v7229_v62  ;;  %4875 = vmatmul.mubr.msk.bf16.gmra.mrb[4].mxu0 %vm317_vm2, %v6393_v24  ;;  %v6466_v62 = vcombine.low %v5599_v4, %v6103_v54  ;;  %v2231_v4 = vrot.slane %v2229_v13, 5 }
  0x80   : > { %4606 = vmatprep.mubr.msk.bf16.mxu1 %vm5615_vm1, %v7192_v30  ;;  %4878 = vmatprep.mubr.msk.bf16.mxu0 %vm5615_vm1, %v7192_v30 }
  0x87   : > { %4607 = vmatmul.mubr.msk.bf16.gmra.mrb[8].mxu1 %vm317_vm2, %v7231_v41  ;;  %4879 = vmatmul.mubr.msk.bf16.gmra.mrb[8].mxu0 %vm317_vm2, %v4224_v36  ;;  %v5550_v36 = vld [vmem:[%s7127_s2 + $0x128] ss:$0 sps:$4 sm:$0x77]  }
  0x88   : > { %4614 = vmatprep.mubr.msk.bf16.mxu1 %vm5615_vm1, %v7192_v30  ;;  %4886 = vmatprep.mubr.msk.bf16.mxu0 %vm5615_vm1, %v7192_v30 }
  0x8f   : > { %4615 = vmatmul.mubr.msk.bf16.vlgmr.msra.gmra.mrb[0].mxu1 %vm317_vm2, %v4058_v43  ;;  %4887 = vmatmul.mubr.msk.bf16.vlgmr.msra.gmra.mrb[0].mxu0 %vm317_vm2, %v6225_v8  ;;  %v2772_v43 = vor.u32 %v2771_v15, %v2768_v7  ;;  %v2232_v15 = vor.u32 %v2231_v4, %v2228_v2  ;;  %v5565_v2 = vld [vmem:[%s7127_s2 + $0x80] ss:$0 sps:$4 sm:$0x77]  }
  0x90   : > { %4627 = vmatpush3.bf16.msra.mxu1 %v5543_v42  ;;  %4618 = vmatprep.mubr.msk.bf16.mxu1 %vm5615_vm1, %v7192_v30  ;;  %v2896_v42 = vsel %vm327_vm0, %v5550_v36, 0 }
  0x91   : > { %4628 = vmatprep.subr.bf16.mxu1 %v7192_v30  ;;  %4899 = vmatpush3.bf16.msra.mxu0 %v5542_v0  ;;  %v2773_v0 = vrot.slane %v2772_v43, 4  ;;  %v2985_v43 = vsel %vm327_vm0, %v5555_v44, 0  ;;  %v7239_v44 = vld [vmem:[#allocation11_spill] sm:$0xff] }
  0x92   : > { %4890 = vmatprep.mubr.msk.bf16.mxu0 %vm5615_vm1, %v7192_v30  ;;  %4900 = vmatprep.subr.bf16.mxu0 %v7192_v30 }
  0x93   : > { %v6534_v47 = vsel %vm5737_vm5, %v2773_v0, %v2777_v49  ;;  %v2233_v0 = vrot.slane %v2232_v15, 4 }
  0x94   : > { %4629 = vmatpush3.bf16.msra.mxu1 %v1198_v46  ;;  %v4242_v34 = vcombine.low %v6315_v23, %v6534_v47 }
  0x95   : > { %4642 = vmatprep.subr.bf16.mxu1 %v7192_v30  ;;  %4901 = vmatpush3.bf16.msra.mxu0 %v2798_v40  ;;  %v1567_v40 = vrot.slane %v1565_v17, 5  ;;  %v5559_v17 = vld [vmem:[%s7127_s2 + $0x6c] sm:$0xff]  }
  0x96   : > { %4914 = vmatprep.subr.bf16.mxu0 %v7192_v30 }
  0x97   : > { %4619 = vmatmul.mubr.msk.bf16.gmra.mrb[4].mxu1 %vm317_vm2, %v6093_v22  ;;  %4891 = vmatmul.mubr.msk.bf16.gmra.mrb[4].mxu0 %vm317_vm2, %v6466_v62  ;;  %v4233_v22 = vcombine.low %v6124_v55, %v6482_v48 }
  0x98   : > { %4622 = vmatprep.mubr.msk.bf16.mxu1 %vm5615_vm1, %v7192_v30  ;;  %4894 = vmatprep.mubr.msk.bf16.mxu0 %vm5615_vm1, %v7192_v30 }
  0x9f   : > { %4623 = vmatmul.mubr.msk.bf16.gmra.mrb[8].mxu1 %vm317_vm2, %v6165_v10  ;;  %4895 = vmatmul.mubr.msk.bf16.gmra.mrb[8].mxu0 %vm317_vm2, %v4233_v22  ;;  %v2866_v22 = vrot.slane %v2864_v21, 4  ;;  %v4257_v21 = vrot.slane %v6412_v50, 9 }
  0xa0   : > { %4630 = vmatprep.mubr.msk.bf16.mxu1 %vm5615_vm1, %v7192_v30  ;;  %4902 = vmatprep.mubr.msk.bf16.mxu0 %vm5615_vm1, %v7192_v30 }
  0xa7   : > { %4631 = vmatmul.mubr.msk.bf16.vlgmr.msra.gmra.mrb[0].mxu1 %vm317_vm2, %v4069_v26  ;;  %4903 = vmatmul.mubr.msk.bf16.vlgmr.msra.gmra.mrb[0].mxu0 %vm317_vm2, %v6106_v25  ;;  %v2869_v26 = vrot.slane %v2867_v1, 5  ;;  %v2964_v1 = vrot.slane %v6441_v31, 5  ;;  %v5563_v31 = vld [vmem:[%s7127_s2 + $0x78] sm:$0xff]  }
  0xa8   : > { %4643 = vmatpush3.bf16.msra.mxu1 %v5549_v29  ;;  %4634 = vmatprep.mubr.msk.bf16.mxu1 %vm5615_vm1, %v7192_v30  ;;  %v7232_v29 = vld [vmem:[#allocation29_spill] sm:$0xff] }
  0xa9   : > { %4644 = vmatprep.subr.bf16.mxu1 %v7192_v30  ;;  %4915 = vmatpush3.bf16.msra.mxu0 %v5548_v51  ;;  %v2235_v51 = vshll.u32 %v7233_v37, 16  ;;  %v2870_v36 = vor.u32 %v2869_v26, %v2866_v22  ;;  %v5564_v22 = vld [vmem:[%s7127_s2 + $0x14c] ss:$0 sps:$4 sm:$0x77]   ;;  %v1596_v26 = vsel %vm327_vm0, %v5565_v2, 0  ;;  %v7240_v37 = vld [vmem:[#allocation24_spill] sm:$0xff] }
  0xaa   : > { %4906 = vmatprep.mubr.msk.bf16.mxu0 %vm5615_vm1, %v7192_v30  ;;  %4916 = vmatprep.subr.bf16.mxu0 %v7192_v30  ;;  %v6809_v2 = vld [vmem:[%s5728_s11 + $0x48] sm:$0xf] }
  0xab   : > { %v2237_v49 = vrot.slane %v2235_v51, 5  ;;  %v7241_v51 = vld [vmem:[#allocation22_spill] sm:$0xff] }
  0xac   : > { %4645 = vmatpush3.bf16.msra.mxu1 %v1291_v39  ;;  %v2873_v39 = vshll.u32 %v6571_v45, 16  ;;  %v6697_v15 = vcombine.low %v7241_v51, %v7240_v37  ;;  %v5604_v37 = vld [vmem:[%s5687_s6 + $0x38] sm:$0xf] }
  0xad   : > { %4658 = vmatprep.subr.bf16.mxu1 %v7192_v30  ;;  %4917 = vmatpush3.bf16.msra.mxu0 %v2896_v42 }
  0xae   : > { %4930 = vmatprep.subr.bf16.mxu0 %v7192_v30  ;;  %v2875_v63 = vrot.slane %v2873_v39, 5  ;;  %v3053_v39 = vrot.slane %v6571_v45, 5  ;;  %v5567_v45 = vld [vmem:[%s7127_s2 + $0x84] sm:$0xff]  }
  0xaf   : > { %4635 = vmatmul.mubr.msk.bf16.gmra.mrb[4].mxu1 %vm317_vm2, %v6218_v3  ;;  %4907 = vmatmul.mubr.msk.bf16.gmra.mrb[4].mxu0 %vm317_vm2, %v6521_v60  ;;  %v1556_v3 = vshrl.u32 %v6103_v54, 16  ;;  %v5554_v54 = vld [vmem:[%s7127_s2 + $0x60] sm:$0xff]  }
  0xb0   : > { %4638 = vmatprep.mubr.msk.bf16.mxu1 %vm5615_vm1, %v7192_v30  ;;  %4910 = vmatprep.mubr.msk.bf16.mxu0 %vm5615_vm1, %v7192_v30 }
  0xb1   : > { %v1558_v46 = vrot.slane %v1556_v3, 4  ;;  %v2871_v3 = vrot.slane %v2870_v36, 4  ;;  %v4267_v36 = vrot.slane %v6482_v48, 9 }
  0xb3   : > { %v1562_v38 = vor.u32 %v1561_v11, %v1558_v46  ;;  %v5600_v46 = vld [vmem:[%s5687_s6 + $0x10] sm:$0xf] }
  0xb4   : > { %v4091_v11 = vcombine.low %v6404_v57, %v5600_v46  ;;  %v5560_v57 = vld [vmem:[%s7127_s2 + $0x140] ss:$0 sps:$4 sm:$0x77]   ;;  %v5568_v46 = vld [vmem:[%s7127_s2 + $0x158] ss:$0 sps:$4 sm:$0x77]  }
  0xb5   : > { %v1563_v55 = vrot.slane %v1562_v38, 4  ;;  %v7234_v38 = vld [vmem:[#allocation9_spill] sm:$0xff]  ;;  %v3074_v13 = vsel %vm327_vm0, %v5560_v57, 0  ;;  %v7247_v57 = vld [vmem:[#allocation7_spill] sm:$0xff] }
  0xb7   : > { %4639 = vmatmul.mubr.msk.bf16.gmra.mrb[8].mxu1 %vm317_vm2, %v6324_v19  ;;  %4911 = vmatmul.mubr.msk.bf16.gmra.mrb[8].mxu0 %vm317_vm2, %v4242_v34  ;;  %v6582_v7 = vsel %vm5737_vm5, %v1563_v55, %v1567_v40  ;;  %v7237_v55 = vld [vmem:[#allocation15_spill] sm:$0xff] }
  0xb8   : > { %4646 = vmatprep.mubr.msk.bf16.mxu1 %vm5615_vm1, %v7192_v30  ;;  %4918 = vmatprep.mubr.msk.bf16.mxu0 %vm5615_vm1, %v7192_v30  ;;  %v6590_v42 = vcombine.low %v6332_v18, %v6582_v7  ;;  %v6607_v18 = vsel %vm5737_vm5, %v2871_v3, %v2875_v63  ;;  %v7243_v3 = vld [vmem:[#allocation4_spill] sm:$0xff]  ;;  %v7244_v63 = vld [vmem:[#allocation5_spill] sm:$0xff] }
  0xbf   : > { %4647 = vmatmul.mubr.msk.bf16.vlgmr.msra.gmra.mrb[0].mxu1 %vm317_vm2, %v4080_v20  ;;  %v1384_v20 = vsel %vm327_vm0, %v5556_v16, 0  ;;  %4919 = vmatmul.mubr.msk.bf16.vlgmr.msra.gmra.mrb[0].mxu0 %vm317_vm2, %v7232_v29  ;;  %v6657_v16 = vsel %vm5789_vm7, %v4257_v21, %v2964_v1 }
  0xc0   : > { %4659 = vmatpush3.bf16.msra.mxu1 %v5554_v54  ;;  %4650 = vmatprep.mubr.msk.bf16.mxu1 %vm5615_vm1, %v7192_v30  ;;  %v1490_v54 = vsel %vm327_vm0, %v5561_v5, 0  ;;  %v3253_v5 = vsel %vm327_vm0, %v5568_v46, 0  ;;  %v7253_v46 = vld [vmem:[#allocation27_spill] sm:$0xff] }
  0xc1   : > { %4660 = vmatprep.subr.bf16.mxu1 %v7192_v30  ;;  %4931 = vmatpush3.bf16.msra.mxu0 %v5552_v61  ;;  %v7236_v61 = vld [vmem:[#allocation14_spill] sm:$0xff] }
  0xc2   : > { %4922 = vmatprep.mubr.msk.bf16.mxu0 %vm5615_vm1, %v7192_v30  ;;  %4932 = vmatprep.subr.bf16.mxu0 %v7192_v30  ;;  %v7238_v4 = vcombine.low %v7236_v61, %v7237_v55  ;;  %v4289_v61 = vcombine.low %v6412_v50, %v6809_v2  ;;  %v5576_v50 = vld [vmem:[%s7127_s2 + $0x168] sm:$0xff]  }
  0xc4   : > { %4661 = vmatpush3.bf16.msra.mxu1 %v1384_v20  ;;  %v3168_v20 = vsel %vm327_vm0, %v5564_v22, 0  ;;  %v7251_v22 = vld [vmem:[#allocation6_spill] sm:$0xff] }
  0xc5   : > { %4674 = vmatprep.subr.bf16.mxu1 %v7192_v30  ;;  %4933 = vmatpush3.bf16.msra.mxu0 %v2985_v43  ;;  %v6712_v43 = vsel %vm5789_vm7, %v4267_v36, %v3053_v39  ;;  %v6860_v36 = vld [vmem:[%s5687_s6 + $0x48] sm:$0xf] }
  0xc6   : > { %4946 = vmatprep.subr.bf16.mxu0 %v7192_v30  ;;  %v4298_v39 = vcombine.low %v6482_v48, %v6860_v36  ;;  %v5583_v48 = vld [vmem:[%s7127_s2 + $0xa8] sm:$0xff]  }
  0xc7   : > { %4651 = vmatmul.mubr.msk.bf16.gmra.mrb[4].mxu1 %vm317_vm2, %v6206_v6  ;;  %4923 = vmatmul.mubr.msk.bf16.gmra.mrb[4].mxu0 %vm317_vm2, %v6590_v42  ;;  %v6603_v6 = vsel %vm5737_vm5, %v2233_v0, %v2237_v49  ;;  %v5569_v49 = vld [vmem:[%s7127_s2 + $0x8c] ss:$0 sps:$4 sm:$0x77]  }
  0xc8   : > { %4654 = vmatprep.mubr.msk.bf16.mxu1 %vm5615_vm1, %v7192_v30  ;;  %4926 = vmatprep.mubr.msk.bf16.mxu0 %vm5615_vm1, %v7192_v30  ;;  %v4251_v34 = vcombine.low %v6603_v6, %v6607_v18 }
  0xcf   : > { %4655 = vmatmul.mubr.msk.bf16.gmra.mrb[8].mxu1 %vm317_vm2, %v6393_v24  ;;  %4927 = vmatmul.mubr.msk.bf16.gmra.mrb[8].mxu0 %vm317_vm2, %v4251_v34  ;;  %v5557_v24 = vld [vmem:[%s7127_s2 + $0x138] sm:$0xff]   ;;  %v7245_v34 = vcombine.low %v7243_v3, %v7244_v63 }
  0xd0   : > { %4662 = vmatprep.mubr.msk.bf16.mxu1 %vm5615_vm1, %v7192_v30  ;;  %4934 = vmatprep.mubr.msk.bf16.mxu0 %vm5615_vm1, %v7192_v30  ;;  %v5584_v63 = vld [vmem:[%s7127_s2 + $0x17c] ss:$0 sps:$4 sm:$0x77]  }
  0xd7   : > { %4663 = vmatmul.mubr.msk.bf16.vlgmr.msra.gmra.mrb[0].mxu1 %vm317_vm2, %v4091_v11  ;;  %4935 = vmatmul.mubr.msk.bf16.vlgmr.msra.gmra.mrb[0].mxu0 %vm317_vm2, %v7234_v38  ;;  %v1693_v11 = vsel %vm327_vm0, %v5569_v49, 0 }
  0xd8   : > { %4675 = vmatpush3.bf16.msra.mxu1 %v5559_v17  ;;  %4666 = vmatprep.mubr.msk.bf16.mxu1 %vm5615_vm1, %v7192_v30  ;;  %v7246_v17 = vld [vmem:[#allocation21_spill] sm:$0xff] }
  0xd9   : > { %4676 = vmatprep.subr.bf16.mxu1 %v7192_v30  ;;  %4947 = vmatpush3.bf16.msra.mxu0 %v5557_v24  ;;  %v4280_v24 = vcombine.low %v6351_v14, %v6474_v32  ;;  %v5575_v14 = vld [vmem:[%s7127_s2 + $0x98] ss:$0 sps:$4 sm:$0x77]  }
  0xda   : > { %4938 = vmatprep.mubr.msk.bf16.mxu0 %vm5615_vm1, %v7192_v30  ;;  %4948 = vmatprep.subr.bf16.mxu0 %v7192_v30  ;;  %v1790_v21 = vsel %vm327_vm0, %v5575_v14, 0 }
  0xdc   : > { %4677 = vmatpush3.bf16.msra.mxu1 %v1490_v54  ;;  %v5570_v54 = vld [vmem:[%s7127_s2 + $0x15c] sm:$0xff]  }
  0xdd   : > { %4690 = vmatprep.subr.bf16.mxu1 %v7192_v30  ;;  %4949 = vmatpush3.bf16.msra.mxu0 %v3074_v13  ;;  %v5573_v13 = vld [vmem:[%s7127_s2 + $0x164] ss:$0 sps:$4 sm:$0x77]  }
  0xde   : > { %4962 = vmatprep.subr.bf16.mxu0 %v7192_v30  ;;  %v3338_v1 = vsel %vm327_vm0, %v5573_v13, 0  ;;  %v5586_v13 = vld [vmem:[%s7127_s2 + $0x180] sm:$0xff]  }
  0xdf   : > { %4667 = vmatmul.mubr.msk.bf16.gmra.mrb[4].mxu1 %vm317_vm2, %v6225_v8  ;;  %4939 = vmatmul.mubr.msk.bf16.gmra.mrb[4].mxu0 %vm317_vm2, %v6337_v28  ;;  %v7235_v8 = vld [vmem:[#allocation16_spill] sm:$0xff] }
  0xe0   : > { %4670 = vmatprep.mubr.msk.bf16.mxu1 %vm5615_vm1, %v7192_v30  ;;  %4942 = vmatprep.mubr.msk.bf16.mxu0 %vm5615_vm1, %v7192_v30  ;;  %v4261_v40 = vcombine.low %v7235_v8, %v6657_v16  ;;  %v5601_v8 = vld [vmem:[%s5728_s11 + $0x30] sm:$0xf] }
  0xe7   : > { %4671 = vmatmul.mubr.msk.bf16.gmra.mrb[8].mxu1 %vm317_vm2, %v6466_v62  ;;  %4943 = vmatmul.mubr.msk.bf16.gmra.mrb[8].mxu0 %vm317_vm2, %v4261_v40  ;;  %v5562_v62 = vld [vmem:[%s7127_s2 + $0x144] sm:$0xff]   ;;  %v5602_v40 = vld [vmem:[%s5728_s11 + $0x38] sm:$0xf] }
  0xe8   : > { %4678 = vmatprep.mubr.msk.bf16.mxu1 %vm5615_vm1, %v7192_v30  ;;  %4950 = vmatprep.mubr.msk.bf16.mxu0 %vm5615_vm1, %v7192_v30 }
  0xef   : > { %4679 = vmatmul.mubr.msk.bf16.vlgmr.msra.gmra.mrb[0].mxu1 %vm317_vm2, %v7238_v4  ;;  %4951 = vmatmul.mubr.msk.bf16.vlgmr.msra.gmra.mrb[0].mxu0 %vm317_vm2, %v7239_v44  ;;  %v5577_v4 = vld [vmem:[%s7127_s2 + $0x9c] sm:$0xff]  }
  0xf0   : > { %4691 = vmatpush3.bf16.msra.mxu1 %v5563_v31  ;;  %4682 = vmatprep.mubr.msk.bf16.mxu1 %vm5615_vm1, %v7192_v30  ;;  %v6797_v31 = vcombine.low %v5601_v8, %v5602_v40  ;;  %v5588_v8 = vld [vmem:[%s7127_s2 + $0x188] ss:$0 sps:$4 sm:$0x77]   ;;  %v6951_v40 = vld [vmem:[%s5687_s6 + $0x4c] sm:$0x3] }
  0xf1   : > { %4692 = vmatprep.subr.bf16.mxu1 %v7192_v30  ;;  %4963 = vmatpush3.bf16.msra.mxu0 %v5562_v62 }
  0xf2   : > { %4954 = vmatprep.mubr.msk.bf16.mxu0 %vm5615_vm1, %v7192_v30  ;;  %4964 = vmatprep.subr.bf16.mxu0 %v7192_v30 }
  0xf4   : > { %4693 = vmatpush3.bf16.msra.mxu1 %v1596_v26 }
  0xf5   : > { %4706 = vmatprep.subr.bf16.mxu1 %v7192_v30  ;;  %4965 = vmatpush3.bf16.msra.mxu0 %v3168_v20  ;;  %v5603_v20 = vld [vmem:[%s5687_s6 + $0x30] sm:$0xf] }
  0xf6   : > { %4978 = vmatprep.subr.bf16.mxu0 %v7192_v30  ;;  %v6848_v51 = vcombine.low %v5603_v20, %v5604_v37  ;;  %v4322_v37 = vrot.slane %v6809_v2, 9 }
  0xf7   : > { %4683 = vmatmul.mubr.msk.bf16.gmra.mrb[4].mxu1 %vm317_vm2, %v6106_v25  ;;  %4955 = vmatmul.mubr.msk.bf16.gmra.mrb[4].mxu0 %vm317_vm2, %v6697_v15  ;;  %v7242_v25 = vld [vmem:[#allocation25_spill] sm:$0xff] }
  0xf8   : > { %4686 = vmatprep.mubr.msk.bf16.mxu1 %vm5615_vm1, %v7192_v30  ;;  %4958 = vmatprep.mubr.msk.bf16.mxu0 %vm5615_vm1, %v7192_v30  ;;  %v4271_v0 = vcombine.low %v7242_v25, %v6712_v43 }
  0xff   : > { %4687 = vmatmul.mubr.msk.bf16.gmra.mrb[8].mxu1 %vm317_vm2, %v6521_v60  ;;  %4959 = vmatmul.mubr.msk.bf16.gmra.mrb[8].mxu0 %vm317_vm2, %v4271_v0  ;;  %v5566_v60 = vld [vmem:[%s7127_s2 + $0x150] sm:$0xff]   ;;  %v3404_v0 = vshrl.u32 %v6809_v2, 16 }
 0x100   : > { %4694 = vmatprep.mubr.msk.bf16.mxu1 %vm5615_vm1, %v7192_v30  ;;  %4966 = vmatprep.mubr.msk.bf16.mxu0 %vm5615_vm1, %v7192_v30 }
 0x101   : > { %v3406_v49 = vrot.slane %v3404_v0, 4  ;;  %v3777_v58 = vrot.slane %v3404_v0, 5 }
 0x107   : > { %4695 = vmatmul.mubr.msk.bf16.vlgmr.msra.gmra.mrb[0].mxu1 %vm317_vm2, %v7245_v34  ;;  %4967 = vmatmul.mubr.msk.bf16.vlgmr.msra.gmra.mrb[0].mxu0 %vm317_vm2, %v7246_v17  ;;  %v6895_v34 = vld [vmem:[%s5728_s11 + $0x4c] sm:$0x3] }
 0x108   : > { %4707 = vmatpush3.bf16.msra.mxu1 %v5567_v45  ;;  %4698 = vmatprep.mubr.msk.bf16.mxu1 %vm5615_vm1, %v7192_v30  ;;  %v3407_v45 = vshll.u32 %v6809_v2, 16 }
 0x109   : > { %4708 = vmatprep.subr.bf16.mxu1 %v7192_v30  ;;  %4979 = vmatpush3.bf16.msra.mxu0 %v5566_v60 }
 0x10a   : > { %4970 = vmatprep.mubr.msk.bf16.mxu0 %vm5615_vm1, %v7192_v30  ;;  %4980 = vmatprep.subr.bf16.mxu0 %v7192_v30  ;;  %v3409_v3 = vrot.slane %v3407_v45, 5 }
 0x10c   : > { %4709 = vmatpush3.bf16.msra.mxu1 %v1693_v11  ;;  %v3410_v11 = vor.u32 %v3409_v3, %v3406_v49  ;;  %v4332_v49 = vrot.slane %v6860_v36, 9  ;;  %v3691_v3 = vrot.slane %v6951_v40, 5 }
 0x10d   : > { %4722 = vmatprep.subr.bf16.mxu1 %v7192_v30  ;;  %4981 = vmatpush3.bf16.msra.mxu0 %v3253_v5  ;;  %v3413_v5 = vshll.u32 %v6895_v34, 16 }
 0x10e   : > { %4994 = vmatprep.subr.bf16.mxu0 %v7192_v30  ;;  %v3411_v14 = vrot.slane %v3410_v11, 4 }
 0x10f   : > { %4699 = vmatmul.mubr.msk.bf16.gmra.mrb[4].mxu1 %vm317_vm2, %v7232_v29  ;;  %4971 = vmatmul.mubr.msk.bf16.gmra.mrb[4].mxu0 %vm317_vm2, %v6434_v52  ;;  %v5571_v29 = vld [vmem:[%s7127_s2 + $0x90] sm:$0xff]  }
 0x110   : > { %4702 = vmatprep.mubr.msk.bf16.mxu1 %vm5615_vm1, %v7192_v30  ;;  %4974 = vmatprep.mubr.msk.bf16.mxu0 %vm5615_vm1, %v7192_v30 }
 0x117   : > { %4703 = vmatmul.mubr.msk.bf16.gmra.mrb[8].mxu1 %vm317_vm2, %v6590_v42  ;;  %4975 = vmatmul.mubr.msk.bf16.gmra.mrb[8].mxu0 %vm317_vm2, %v4280_v24  ;;  %v7248_v42 = vcombine.low %v5827_v12, %v7247_v57  ;;  %v7249_v12 = vld [vmem:[#allocation17_spill] sm:$0xff]  ;;  %v3534_v24 = vsel %vm327_vm0, %v5584_v63, 0  ;;  %v3415_v57 = vrot.slane %v3413_v5, 5  ;;  %v3692_v63 = vsel %vm5789_vm7, %v4332_v49, %v3691_v3 }
 0x118   : > { %4710 = vmatprep.mubr.msk.bf16.mxu1 %vm5615_vm1, %v7192_v30  ;;  %4982 = vmatprep.mubr.msk.bf16.mxu0 %vm5615_vm1, %v7192_v30 }
 0x11f   : > { %4711 = vmatmul.mubr.msk.bf16.vlgmr.msra.gmra.mrb[0].mxu1 %vm317_vm2, %v7248_v42  ;;  %4983 = vmatmul.mubr.msk.bf16.vlgmr.msra.gmra.mrb[0].mxu0 %vm317_vm2, %v7249_v12  ;;  %v3505_v42 = vshll.u32 %v6860_v36, 16 }
 0x120   : > { %4723 = vmatpush3.bf16.msra.mxu1 %v5571_v29  ;;  %4714 = vmatprep.mubr.msk.bf16.mxu1 %vm5615_vm1, %v7192_v30  ;;  %v6909_v29 = vcombine.low %v6298_v59, %v6315_v23  ;;  %v3416_v59 = vsel %vm5737_vm5, %v3411_v14, %v3415_v57 }
 0x121   : > { %4724 = vmatprep.subr.bf16.mxu1 %v7192_v30  ;;  %4995 = vmatpush3.bf16.msra.mxu0 %v5570_v54  ;;  %v4307_v23 = vcombine.low %v6534_v47, %v3416_v59  ;;  %v5587_v47 = vld [vmem:[%s7127_s2 + $0xb4] sm:$0xff]  }
 0x122   : > { %4986 = vmatprep.mubr.msk.bf16.mxu0 %vm5615_vm1, %v7192_v30  ;;  %4996 = vmatprep.subr.bf16.mxu0 %v7192_v30  ;;  %v7254_v54 = vld [vmem:[#allocation12_spill] sm:$0xff] }
 0x124   : > { %4725 = vmatpush3.bf16.msra.mxu1 %v1790_v21 }
 0x125   : > { %4738 = vmatprep.subr.bf16.mxu1 %v7192_v30  ;;  %4997 = vmatpush3.bf16.msra.mxu0 %v3338_v1  ;;  %v3507_v1 = vrot.slane %v3505_v42, 5 }
 0x126   : > { %5010 = vmatprep.subr.bf16.mxu0 %v7192_v30 }
 0x127   : > { %4715 = vmatmul.mubr.msk.bf16.gmra.mrb[4].mxu1 %vm317_vm2, %v7234_v38  ;;  %4987 = vmatmul.mubr.msk.bf16.gmra.mrb[4].mxu0 %vm317_vm2, %v6797_v31  ;;  %v7250_v38 = vld [vmem:[#allocation18_spill] sm:$0xff] }
 0x128   : > { %4718 = vmatprep.mubr.msk.bf16.mxu1 %vm5615_vm1, %v7192_v30  ;;  %4990 = vmatprep.mubr.msk.bf16.mxu0 %vm5615_vm1, %v7192_v30  ;;  %v4137_v55 = vcombine.low %v6424_v53, %v7250_v38  ;;  %v5579_v53 = vld [vmem:[%s7127_s2 + $0x170] ss:$0 sps:$4 sm:$0x77]  }
 0x129   : > { %v3436_v26 = vsel %vm327_vm0, %v5579_v53, 0 }
 0x12f   : > { %4719 = vmatmul.mubr.msk.bf16.gmra.mrb[8].mxu1 %vm317_vm2, %v6337_v28  ;;  %4991 = vmatmul.mubr.msk.bf16.gmra.mrb[8].mxu0 %vm317_vm2, %v4289_v61  ;;  %v5581_v28 = vld [vmem:[%s7127_s2 + $0xa4] ss:$0 sps:$4 sm:$0x77]  }
 0x130   : > { %4726 = vmatprep.mubr.msk.bf16.mxu1 %vm5615_vm1, %v7192_v30  ;;  %4998 = vmatprep.mubr.msk.bf16.mxu0 %vm5615_vm1, %v7192_v30  ;;  %v1892_v62 = vsel %vm327_vm0, %v5581_v28, 0  ;;  %v6965_v28 = vcombine.low %v6582_v7, %v6603_v6 }
 0x137   : > { %4727 = vmatmul.mubr.msk.bf16.vlgmr.msra.gmra.mrb[0].mxu1 %vm317_vm2, %v4137_v55  ;;  %4999 = vmatmul.mubr.msk.bf16.vlgmr.msra.gmra.mrb[0].mxu0 %vm317_vm2, %v7251_v22  ;;  %v3511_v55 = vshll.u32 %v6951_v40, 16 }
 0x138   : > { %4739 = vmatpush3.bf16.msra.mxu1 %v5577_v4  ;;  %4730 = vmatprep.mubr.msk.bf16.mxu1 %vm5615_vm1, %v7192_v30  ;;  %v3623_v4 = vsel %vm327_vm0, %v5588_v8, 0 }
 0x139   : > { %4740 = vmatprep.subr.bf16.mxu1 %v7192_v30  ;;  %5011 = vmatpush3.bf16.msra.mxu0 %v5576_v50  ;;  %v3513_v53 = vrot.slane %v3511_v55, 5 }
 0x13a   : > { %5002 = vmatprep.mubr.msk.bf16.mxu0 %vm5615_vm1, %v7192_v30  ;;  %5012 = vmatprep.subr.bf16.mxu0 %v7192_v30 }
 0x13c   : > { %4741 = vmatpush3.bf16.msra.mxu1 %v1892_v62  ;;  %v5592_v62 = vld [vmem:[%s7127_s2 + $0x194] ss:$0 sps:$4 sm:$0x77]  }
 0x13d   : > { %4754 = vmatprep.subr.bf16.mxu1 %v7192_v30  ;;  %5013 = vmatpush3.bf16.msra.mxu0 %v3436_v26  ;;  %v2160_v26 = vsel %vm327_vm0, %v5593_v35, 0  ;;  %v3712_v20 = vsel %vm327_vm0, %v5592_v62, 0 }
 0x13e   : > { %5026 = vmatprep.subr.bf16.mxu0 %v7192_v30 }
 0x13f   : > { %4731 = vmatmul.mubr.msk.bf16.gmra.mrb[4].mxu1 %vm317_vm2, %v7239_v44  ;;  %5003 = vmatmul.mubr.msk.bf16.gmra.mrb[4].mxu0 %vm317_vm2, %v6848_v51  ;;  %v7252_v44 = vld [vmem:[#allocation26_spill] sm:$0xff] }
 0x140   : > { %4734 = vmatprep.mubr.msk.bf16.mxu1 %vm5615_vm1, %v7192_v30  ;;  %5006 = vmatprep.mubr.msk.bf16.mxu0 %vm5615_vm1, %v7192_v30  ;;  %v4148_v25 = vcombine.low %v6293_v56, %v7252_v44  ;;  %v5582_v56 = vld [vmem:[%s7127_s2 + $0x174] sm:$0xff]  }
 0x147   : > { %4735 = vmatmul.mubr.msk.bf16.gmra.mrb[8].mxu1 %vm317_vm2, %v6697_v15  ;;  %5007 = vmatmul.mubr.msk.bf16.gmra.mrb[8].mxu0 %vm317_vm2, %v4298_v39  ;;  %v5585_v15 = vld [vmem:[%s7127_s2 + $0xb0] ss:$0 sps:$4 sm:$0x77]   ;;  %v3602_v39 = vrot.slane %v6895_v34, 5 }
 0x148   : > { %4742 = vmatprep.mubr.msk.bf16.mxu1 %vm5615_vm1, %v7192_v30  ;;  %5014 = vmatprep.mubr.msk.bf16.mxu0 %vm5615_vm1, %v7192_v30  ;;  %v1977_v60 = vsel %vm327_vm0, %v5585_v15, 0 }
 0x149   : > { %v3603_v44 = vsel %vm5789_vm7, %v4322_v37, %v3602_v39 }
 0x14f   : > { %4743 = vmatmul.mubr.msk.bf16.vlgmr.msra.gmra.mrb[0].mxu1 %vm317_vm2, %v4148_v25  ;;  %5015 = vmatmul.mubr.msk.bf16.vlgmr.msra.gmra.mrb[0].mxu0 %vm317_vm2, %v7253_v46  ;;  %v7257_v25 = vld [vmem:[#allocation23_spill] sm:$0xff] }
 0x150   : > { %4755 = vmatpush3.bf16.msra.mxu1 %v5583_v48  ;;  %4746 = vmatprep.mubr.msk.bf16.mxu1 %vm5615_vm1, %v7192_v30  ;;  %v5594_v48 = vld [vmem:[%s7127_s2 + $0x198] sm:$0xff]  }
 0x151   : > { %4756 = vmatprep.subr.bf16.mxu1 %v7192_v30  ;;  %5027 = vmatpush3.bf16.msra.mxu0 %v5582_v56  ;;  %v7258_v56 = vld [vmem:[#allocation2_spill] sm:$0xff] }
 0x152   : > { %5018 = vmatprep.mubr.msk.bf16.mxu0 %vm5615_vm1, %v7192_v30  ;;  %5028 = vmatprep.subr.bf16.mxu0 %v7192_v30 }
 0x154   : > { %4757 = vmatpush3.bf16.msra.mxu1 %v1977_v60  ;;  %v4336_v60 = vcombine.low %v6712_v43, %v3692_v63  ;;  %v3778_v43 = vrot.slane %v3407_v45, 6 }
 0x155   : > { %4770 = vmatprep.subr.bf16.mxu1 %v7192_v30  ;;  %5029 = vmatpush3.bf16.msra.mxu0 %v3534_v24 }
 0x156   : > { %5042 = vmatprep.subr.bf16.mxu0 %v7192_v30 }
 0x157   : > { %4747 = vmatmul.mubr.msk.bf16.gmra.mrb[4].mxu1 %vm317_vm2, %v7246_v17  ;;  %5019 = vmatmul.mubr.msk.bf16.gmra.mrb[4].mxu0 %vm317_vm2, %v6909_v29  ;;  %v3502_v17 = vshrl.u32 %v6860_v36, 16  ;;  %v3781_v36 = vshrl.u32 %v6895_v34, 16 }
 0x158   : > { %4750 = vmatprep.mubr.msk.bf16.mxu1 %vm5615_vm1, %v7192_v30  ;;  %5022 = vmatprep.mubr.msk.bf16.mxu0 %vm5615_vm1, %v7192_v30 }
 0x159   : > { %v3504_v21 = vrot.slane %v3502_v17, 4  ;;  %v3783_v11 = vrot.slane %v3781_v36, 5 }
 0x15b   : > { %v3508_v38 = vor.u32 %v3507_v1, %v3504_v21 }
 0x15d   : > { %v3509_v50 = vrot.slane %v3508_v38, 4 }
 0x15f   : > { %4751 = vmatmul.mubr.msk.bf16.gmra.mrb[8].mxu1 %vm317_vm2, %v6434_v52  ;;  %5023 = vmatmul.mubr.msk.bf16.gmra.mrb[8].mxu0 %vm317_vm2, %v4307_v23  ;;  %v5589_v52 = vld [vmem:[%s7127_s2 + $0xbc] ss:$0 sps:$4 sm:$0x77]   ;;  %v3514_v7 = vsel %vm5737_vm5, %v3509_v50, %v3513_v53 }
 0x160   : > { %4758 = vmatprep.mubr.msk.bf16.mxu1 %vm5615_vm1, %v7192_v30  ;;  %5030 = vmatprep.mubr.msk.bf16.mxu0 %vm5615_vm1, %v7192_v30  ;;  %v2062_v61 = vsel %vm327_vm0, %v5589_v52, 0  ;;  %v4316_v6 = vcombine.low %v6607_v18, %v3514_v7  ;;  %v7255_v18 = vld [vmem:[#allocation3_spill] sm:$0xff] }
 0x167   : > { %4759 = vmatmul.mubr.msk.bf16.vlgmr.msra.gmra.mrb[0].mxu1 %vm317_vm2, %v7254_v54  ;;  %5031 = vmatmul.mubr.msk.bf16.vlgmr.msra.gmra.mrb[0].mxu0 %vm317_vm2, %v6343_v9 }
 0x168   : > { %4771 = vmatpush3.bf16.msra.mxu1 %v5587_v47  ;;  %4762 = vmatprep.mubr.msk.bf16.mxu1 %vm5615_vm1, %v7192_v30 }
 0x169   : > { %4772 = vmatprep.subr.bf16.mxu1 %v7192_v30  ;;  %5043 = vmatpush3.bf16.msra.mxu0 %v5586_v13 }
 0x16a   : > { %5034 = vmatprep.mubr.msk.bf16.mxu0 %vm5615_vm1, %v7192_v30  ;;  %5044 = vmatprep.subr.bf16.mxu0 %v7192_v30 }
 0x16c   : > { %4773 = vmatpush3.bf16.msra.mxu1 %v2062_v61 }
 0x16d   : > { %4786 = vmatprep.subr.bf16.mxu1 %v7192_v30  ;;  %5045 = vmatpush3.bf16.msra.mxu0 %v3623_v4 }
 0x16e   : > { %5058 = vmatprep.subr.bf16.mxu0 %v7192_v30 }
 0x16f   : > { %4763 = vmatmul.mubr.msk.bf16.gmra.mrb[4].mxu1 %vm317_vm2, %v7249_v12  ;;  %5035 = vmatmul.mubr.msk.bf16.gmra.mrb[4].mxu0 %vm317_vm2, %v6965_v28  ;;  %v5591_v12 = vld [vmem:[%s7127_s2 + $0xc0] sm:$0xff]  }
 0x170   : > { %4766 = vmatprep.mubr.msk.bf16.mxu1 %vm5615_vm1, %v7192_v30  ;;  %5038 = vmatprep.mubr.msk.bf16.mxu0 %vm5615_vm1, %v7192_v30 }
 0x177   : > { %4767 = vmatmul.mubr.msk.bf16.gmra.mrb[8].mxu1 %vm317_vm2, %v6797_v31  ;;  %5039 = vmatmul.mubr.msk.bf16.gmra.mrb[8].mxu0 %vm317_vm2, %v4316_v6  ;;  %v5590_v31 = vld [vmem:[%s7127_s2 + $0x18c] sm:$0xff]  }
 0x178   : > { %4774 = vmatprep.mubr.msk.bf16.mxu1 %vm5615_vm1, %v7192_v30  ;;  %5046 = vmatprep.mubr.msk.bf16.mxu0 %vm5615_vm1, %v7192_v30 }
 0x17f   : > { %4775 = vmatmul.mubr.msk.bf16.vlgmr.msra.gmra.mrb[0].mxu1 %vm317_vm2, %v7255_v18  ;;  %5047 = vmatmul.mubr.msk.bf16.vlgmr.msra.gmra.mrb[0].mxu0 %vm317_vm2, %v7231_v41  ;;  %v7256_v41 = vld [vmem:[#allocation19_spill] sm:$0xff] }
 0x180   : > { %4787 = vmatpush3.bf16.msra.mxu1 %v5591_v12  ;;  %4778 = vmatprep.mubr.msk.bf16.mxu1 %vm5615_vm1, %v7192_v30 }
 0x181   : > { %4788 = vmatprep.subr.bf16.mxu1 %v7192_v30  ;;  %5059 = vmatpush3.bf16.msra.mxu0 %v5590_v31 }
 0x182   : > { %5050 = vmatprep.mubr.msk.bf16.mxu0 %vm5615_vm1, %v7192_v30  ;;  %5060 = vmatprep.subr.bf16.mxu0 %v7192_v30 }
 0x184   : > { %4789 = vmatpush3.bf16.msra.mxu1 %v2160_v26 }
 0x185   : > { %5090 = vmatprep.subr.bf16.mxu1 %v7192_v30  ;;  %5061 = vmatpush3.bf16.msra.mxu0 %v3712_v20 }
 0x186   : > { %5074 = vmatprep.subr.bf16.mxu0 %v7192_v30 }
 0x187   : > { %4779 = vmatmul.mubr.msk.bf16.gmra.mrb[4].mxu1 %vm317_vm2, %v7251_v22  ;;  %5051 = vmatmul.mubr.msk.bf16.gmra.mrb[4].mxu0 %vm317_vm2, %v7256_v41  ;;  %v4326_v22 = vcombine.low %v6657_v16, %v3603_v44  ;;  %v5605_v16 = vld [vmem:[%s7127_s2 + $0xcc] sm:$0xff]  }
 0x188   : > { %4782 = vmatprep.mubr.msk.bf16.mxu1 %vm5615_vm1, %v7192_v30  ;;  %5054 = vmatprep.mubr.msk.bf16.mxu0 %vm5615_vm1, %v7192_v30 }
 0x18f   : > { %4783 = vmatmul.mubr.msk.bf16.gmra.mrb[8].mxu1 %vm317_vm2, %v6848_v51  ;;  %5055 = vmatmul.mubr.msk.bf16.gmra.mrb[8].mxu0 %vm317_vm2, %v4326_v22  ;;  %v5595_v51 = vld [vmem:[%s7127_s2 + $0x1a0] ss:$0 sps:$4 sm:$0x77]  }
 0x190   : > { %4790 = vmatprep.mubr.msk.bf16.mxu1 %vm5615_vm1, %v7192_v30  ;;  %5062 = vmatprep.mubr.msk.bf16.mxu0 %vm5615_vm1, %v7192_v30  ;;  %v3806_v15 = vsel %vm327_vm0, %v5595_v51, 0 }
 0x197   : > { %4791 = vmatmul.mubr.msk.bf16.vlgmr.msra.gmra.mrb[0].mxu1 %vm317_vm2, %v7257_v25  ;;  %5063 = vmatmul.mubr.msk.bf16.vlgmr.msra.gmra.mrb[0].mxu0 %vm317_vm2, %v6165_v10  ;;  %v7259_v10 = vld [vmem:[#allocation28_spill] sm:$0xff] }
 0x198   : > { %5092 = vmatpush3.bf16.msra.mxu1 %v5605_v16  ;;  %4794 = vmatprep.mubr.msk.bf16.mxu1 %vm5615_vm1, %v7192_v30 }
 0x199   : > { %5091 = vmatprep.subr.bf16.mxu1 %v7192_v30  ;;  %5075 = vmatpush3.bf16.msra.mxu0 %v5594_v48 }
 0x19a   : > { %5066 = vmatprep.mubr.msk.bf16.mxu0 %vm5615_vm1, %v7192_v30  ;;  %5076 = vmatprep.subr.bf16.mxu0 %v7192_v30 }
 0x19c   : > { %5093 = vmatpush3.bf16.msra.mxu1 %v7258_v56 }
 0x19d   : > { %5077 = vmatpush3.bf16.msra.mxu0 %v3806_v15 }
 0x19f   : > { %4795 = vmatmul.mubr.msk.bf16.gmra.mrb[4].mxu1 %vm317_vm2, %v7253_v46  ;;  %5067 = vmatmul.mubr.msk.bf16.gmra.mrb[4].mxu0 %vm317_vm2, %v7259_v10  ;;  %v3779_v46 = vor.u32 %v3778_v43, %v3777_v58 }
 0x1a0   : > { %4798 = vmatprep.mubr.msk.bf16.mxu1 %vm5615_vm1, %v7192_v30  ;;  %5070 = vmatprep.mubr.msk.bf16.mxu0 %vm5615_vm1, %v7192_v30 }
 0x1a1   : > { %v3780_v0 = vrot.slane %v3779_v46, 4 }
 0x1a7   : > { %4799 = vmatmul.mubr.msk.bf16.gmra.mrb[8].mxu1 %vm317_vm2, %v6909_v29  ;;  %5071 = vmatmul.mubr.msk.bf16.gmra.mrb[8].mxu0 %vm317_vm2, %v4336_v60 }
 0x1a8   : > { %4810 = vmatprep.mubr.msk.bf16.mxu1 %vm5615_vm1, %v7192_v30  ;;  %5078 = vmatprep.mubr.msk.bf16.mxu0 %vm5615_vm1, %v7192_v30 }
 0x1af   : > { %4811 = vmatmul.mubr.msk.bf16.vlgmr.msra.gmra.mrb[4].mxu1 %vm317_vm2, %v6343_v9  ;;  %5079 = vmatmul.mubr.msk.bf16.vlgmr.msra.gmra.mrb[0].mxu0 %vm317_vm2, %v6324_v19  ;;  %v3784_v9 = vrot.slane %v3413_v5, 6 }
 0x1b0   : > { %4814 = vmatprep.mubr.msk.bf16.mxu1 %vm5615_vm1, %v7192_v30  ;;  %5082 = vmatprep.mubr.msk.bf16.mxu0 %vm5615_vm1, %v7192_v30 }
 0x1b1   : > { %v3785_v24 = vor.u32 %v3784_v9, %v3783_v11 }
 0x1b3   : > { %v3786_v19 = vsel %vm6081_vm10, %v3780_v0, %v3785_v24 }
 0x1b4   : > { %v4345_v2 = vcombine.low %v6474_v32, %v3786_v19  ;;  %v4352_v32 = vld [vmem:[%s7129_s4] ss:$0 sm:$0xff] }
 0x1b7   : > { %4815 = vmatmul.mubr.msk.bf16.gmra.mrb[8].mxu1 %vm317_vm2, %v6965_v28  ;;  %5083 = vmatmul.mubr.msk.bf16.gmra.mrb[4].mxu0 %vm317_vm2, %v6354_v27 }
 0x1b8   : > { %5086 = vmatprep.mubr.msk.bf16.mxu0 %vm5615_vm1, %v7192_v30  ;;  %v4351_v30 = vld [vmem:[%s7128_s3] ss:$0 sm:$0xff] }
 0x1bf   : > { %5087 = vmatmul.mubr.msk.bf16.gmra.mrb[8].mxu0 %vm317_vm2, %v4345_v2 }
 0x26a   : > { %v2196_v45 = vpop.f32.mrb[0].mxu1 }
 0x26b   : > { %v4792_v34 = vpop.f32.mrb[1].mxu1 }
 0x26c   : > { %v2199_v5 = vpop.f32.mrb[2].mxu1 }
 0x26d   : > { %v4793_v29 = vpop.f32.mrb[3].mxu1 }
 0x282   : > { %v2302_v14 = vpop.f32.mrb[4].mxu1  ;;  %v3842_v27 = vpop.f32.mrb[0].mxu0 }
 0x283   : > { %v4812_v57 = vpop.f32.mrb[5].mxu1  ;;  %v5094_v33 = vadd.f32 %v3842_v27, %v2196_v45  ;;  %v5080_v17 = vpop.f32.mrb[1].mxu0 }
 0x284   : > { %v2305_v59 = vpop.f32.mrb[6].mxu1  ;;  %v3845_v42 = vpop.f32.mrb[2].mxu0 }
 0x285   : > { %v4813_v23 = vpop.f32.mrb[7].mxu1  ;;  %v3878_v47 = vmul.f32 %v5094_v33, %v4351_v30  ;;  %v5095_v52 = vadd.f32 %v3845_v42, %v2199_v5  ;;  %v5081_v54 = vpop.f32.mrb[3].mxu0 }
 0x287   : > { %v3891_v21 = vadd.f32 %v4352_v32, %v3878_v47  ;;  %v3879_v1 = vmul.f32 %v5095_v52, %v4351_v30 }
 0x289   : > { %v3897_v61 = vmax.f32 %v3891_v21, 0.0  ;;  %v3892_v38 = vadd.f32 %v4352_v32, %v3879_v1 }
 0x28a   : > { %v2310_v13 = vpop.f32.mrb[8].mxu1  ;;  %v3850_v4 = vpop.f32.mrb[4].mxu0 }
 0x28b   : > { %v4816_v8 = vpop.f32.mrb[9].mxu1  ;;  %v3903_v28 = vpack.c.bf16 %v3897_v61, %v3897_v61  ;;  %v3898_v50 = vmax.f32 %v3892_v38, 0.0  ;;  %v5096_v53 = vadd.f32 %v3850_v4, %v2302_v14  ;;  %v5084_v7 = vpop.f32.mrb[5].mxu0 }
 0x28c   : > { %v2313_v40 = vpop.f32.mrb[10].mxu1  ;;  %v3853_v6 = vpop.f32.mrb[6].mxu0 }
 0x28d   : > { %v4817_v55 = vpop.f32.mrb[11].mxu1  ;;  %3910 = vst.msk [vmem:[%s7108_s24] sm:$0xf] %vm3909_vm11, %v3903_v28  ;;  %v3904_v12 = vpack.c.bf16 %v3898_v50, %v3898_v50  ;;  %v3880_v35 = vmul.f32 %v5096_v53, %v4351_v30  ;;  %v5097_v18 = vadd.f32 %v3853_v6, %v2305_v59  ;;  %v5085_v31 = vpop.f32.mrb[7].mxu0 }
 0x28f   : > { %3911 = vst.msk [vmem:[%s7108_s24 + $0x4] sm:$0xf] %vm3909_vm11, %v3904_v12  ;;  %v3893_v62 = vadd.f32 %v4352_v32, %v3880_v35  ;;  %v3881_v26 = vmul.f32 %v5097_v18, %v4351_v30 }
 0x291   : > { %v3899_v20 = vmax.f32 %v3893_v62, 0.0  ;;  %v3894_v37 = vadd.f32 %v4352_v32, %v3881_v26 }
 0x292   : > { %v3858_v39 = vpop.f32.mrb[8].mxu0 }
 0x293   : > { %v3905_v41 = vpack.c.bf16 %v3899_v20, %v3899_v20  ;;  %v3900_v44 = vmax.f32 %v3894_v37, 0.0  ;;  %v5098_v22 = vadd.f32 %v3858_v39, %v2310_v13  ;;  %v5088_v25 = vpop.f32.mrb[9].mxu0 }
 0x294   : > { %v3861_v48 = vpop.f32.mrb[10].mxu0 }
 0x295   : > { %3912 = vst.msk [vmem:[%s7108_s24 + $0x8] sm:$0xf] %vm3909_vm11, %v3905_v41  ;;  %v3906_v16 = vpack.c.bf16 %v3900_v44, %v3900_v44  ;;  %v3882_v51 = vmul.f32 %v5098_v22, %v4351_v30  ;;  %v5099_v15 = vadd.f32 %v3861_v48, %v2313_v40  ;;  %v5089_v56 = vpop.f32.mrb[11].mxu0 }
 0x297   : > { %3913 = vst.msk [vmem:[%s7108_s24 + $0xc] sm:$0xf] %vm3909_vm11, %v3906_v16  ;;  %v3895_v49 = vadd.f32 %v4352_v32, %v3882_v51  ;;  %v3883_v3 = vmul.f32 %v5099_v15, %v4351_v30 }
 0x299   : > { %v3901_v10 = vmax.f32 %v3895_v49, 0.0  ;;  %v3896_v63 = vadd.f32 %v4352_v32, %v3883_v3 }
 0x29b   : > { %v3907_v60 = vpack.c.bf16 %v3901_v10, %v3901_v10  ;;  %v3902_v58 = vmax.f32 %v3896_v63, 0.0 }
 0x29d   : > { %3914 = vst.msk [vmem:[%s7108_s24 + $0x10] sm:$0xf] %vm3909_vm11, %v3907_v60  ;;  %v3908_v43 = vpack.c.bf16 %v3902_v58, %v3902_v58 }
 0x29f   : > { %3915 = vst.msk [vmem:[%s7108_s24 + $0x14] sm:$0xf] %vm3909_vm11, %v3908_v43 }
 0x2a0 PF: > { %s15_s18 = sadd.s32 1, %s5612_s18  }
 0x2a1   : > { %p12_p4 = scmp.ge.s32.totalorder %s15_s18, 4  }
 0x2a3   :  { %14 = sbr.rel (!%p12_p4) target bundleno = 1 (0x1), region = 107 }

// kernel: lipread_forward.10
= control target key start
LH: loop header
LB: loop body
LE: loop exit
PB: predicated region body
PF: predicated region fallthrough
CT: control target
= control target key end

     0   :  { %s622_s15 = smov 0   ;;  %s682_s0 = inlined_call_operand.vmem [shape: bf16[12,6,48], index: 0, kind: input, shape index: {}]   ;;  %s683_s1 = inlined_call_operand.vmem [shape: bf16[3,48,32], index: 1, kind: input, shape index: {}]   ;;  %s684_s2 = inlined_call_operand.vmem [shape: f32[1,32], index: 2, kind: input, shape index: {}]   ;;  %s685_s3 = inlined_call_operand.vmem [shape: f32[1,32], index: 3, kind: input, shape index: {}]   ;;  %s686_s4 = inlined_call_operand.vmem [shape: bf16[12,4,32], index: 4, kind: output, shape index: {}]  }
   0x1 LB: > { %s484_s16 = sadd.s32 4294967295, %s593_s15   ;;  %p488_p0 = scmp.ge.s32.totalorder %s593_s15, 1  ;;  %s593_s15 = sphi %s622_s15, %s14_s15  }
   0x2   : > { %p161_p1 = scmp.lt.s32.totalorder %s593_s15, 13 }
   0x4   : > { %p162_p2 = pnand %p488_p0, %p161_p1 }
   0x5   : > { %v577_v0 = vld [vmem:[%s683_s1] sm:$0xff] (!%p162_p2)   ;;  %v595_v1 = vmov (!%p162_p2), 0.0   ;;  %v578_v2 = vld [vmem:[%s683_s1 + $0x8] sm:$0xff] (!%p162_p2)   ;;  %vm596_vm0 = vmmov (!%p162_p2), 0   ;;  %p185_p3 = scmp.lt.s32.totalorder (!%p162_p2), %s484_s16, 11  ;;  %v580_v3 = vld [vmem:[%s683_s1 + $0x18] sm:$0xff] (!%p162_p2)  }
   0x6   : > { %165 = sbr.rel (%p162_p2) target bundleno = 253 (0xfd), region = 36  ;;  %542 = vmatprep.subr.bf16.mxu0 (!%p162_p2), %v595_v1  ;;  %532 = vmatprep.subr.bf16.mxu1 (!%p162_p2), %v595_v1  ;;  %v583_v4 = vld [vmem:[%s683_s1 + $0x20] sm:$0xff] (!%p162_p2)   ;;  %v579_v5 = vld [vmem:[%s683_s1 + $0x10] sm:$0xff] (!%p162_p2)   ;;  %v585_v8 = vld [vmem:[%s683_s1 + $0x28] sm:$0xff] (!%p162_p2)   ;;  %vm236_vm1 = vcmask (!%p162_p2), 392192   ;;  %vm429_vm2 = vcmask (!%p162_p2), 254976  }
   0x7   : > { %543 = vmatpush3.bf16.msra.mxu0 (!%p162_p2), %v577_v0  ;;  %548 = vmatprep.mubr.msk.bf16.mxu0 (!%p162_p2), %vm596_vm0, %v595_v1  ;;  %v582_v9 = vld [vmem:[%s683_s1 + $0x30] sm:$0xff] (!%p162_p2)   ;;  %v584_v13 = vld [vmem:[%s683_s1 + $0x38] sm:$0xff] (!%p162_p2)   ;;  %v586_v15 = vld [vmem:[%s683_s1 + $0x40] sm:$0xff] (!%p162_p2)  }
   0x8   : > { %544 = vmatprep.subr.bf16.mxu0 (!%p162_p2), %v595_v1  ;;  %538 = vmatprep.mubr.msk.bf16.mxu1 (!%p162_p2), %vm596_vm0, %v595_v1  ;;  %v516_v22 = vld [vmem:[%s684_s2] ss:$0 sm:$0xff] (!%p162_p2) }
   0x9   : > { %533 = vmatpush3.bf16.msra.mxu1 (!%p162_p2), %v580_v3  ;;  %v517_v25 = vld [vmem:[%s685_s3] ss:$0 sm:$0xff] (!%p162_p2) }
   0xa   : > { %534 = vmatprep.subr.bf16.mxu1 (!%p162_p2), %v595_v1 }
   0xb   : > { %545 = vmatpush3.bf16.msra.mxu0 (!%p162_p2), %v578_v2 }
   0xc   : > { %546 = vmatprep.subr.bf16.mxu0 (!%p162_p2), %v595_v1 }
   0xd   : > { %s688_s16 = smov (!%p185_p3, %s484_s16), 11  ;;  %535 = vmatpush3.bf16.msra.mxu1 %v583_v4 }
   0xe   : > { %s489_s27 = sshll.u32 %s688_s16, 2  ;;  %536 = vmatprep.subr.bf16.mxu1 %v595_v1  ;;  %s490_s19 = sshll.u32 %s688_s16, 1 }
   0xf   : > { %s188_s30 = scalar_lea.vmem %s682_s0, %s489_s27  ;;  %547 = vmatpush3.bf16.msra.mxu0 %v579_v5  ;;  %s192_s22 = scalar_lea.vmem %s686_s4, %s490_s19 }
  0x10   : > { %v194_v6 = vld [vmem:[%s188_s30] sm:$0x7]  ;;  %552 = vmatprep.subr.bf16.mxu0 %v595_v1 }
  0x11   : > { %v497_v7 = vcombine.low %v194_v6, %v194_v6  ;;  %537 = vmatpush3.bf16.msra.mxu1 %v585_v8 }
  0x12   : > { %549 = vmatmul.mubr.msk.bf16.vlgmr.msra.gmra.mrb[0].mxu0 %vm236_vm1, %v194_v6 }
  0x13   : > { %v212_v10 = vshrl.u32 %v497_v7, 16  ;;  %v214_v11 = vshll.u32 %v497_v7, 16  ;;  %553 = vmatpush3.bf16.msra.mxu0 %v582_v9  ;;  %558 = vmatprep.mubr.msk.bf16.mxu0 %vm596_vm0, %v595_v1  ;;  %v348_v16 = vrot.slane %v497_v7, 1 }
  0x14   : > { %554 = vmatprep.subr.bf16.mxu0 %v595_v1 }
  0x15   : > { %v216_v12 = vrot.slane %v214_v11, 1 }
  0x17   : > { %v217_v14 = vor.u32 %v216_v12, %v212_v10  ;;  %555 = vmatpush3.bf16.msra.mxu0 %v584_v13 }
  0x18   : > { %556 = vmatprep.subr.bf16.mxu0 %v595_v1 }
  0x19   : > { %539 = vmatmul.mubr.msk.bf16.vlgmr.msra.gmra.mrb[0].mxu1 %vm236_vm1, %v217_v14 }
  0x1b   : > { %557 = vmatpush3.bf16.msra.mxu0 %v586_v15 }
  0x1e   : > { %559 = vmatmul.mubr.msk.bf16.vlgmr.msra.gmra.mrb[0].mxu0 %vm236_vm1, %v348_v16 }
  0xec   : > { %v274_v17 = vpop.f32.mrb[0].mxu1 }
  0xed   : > { %v540_v18 = vpop.f32.mrb[1].mxu1 }
  0xee   : > { %v277_v19 = vpop.f32.mrb[2].mxu1 }
  0xef   : > { %v541_v20 = vpop.f32.mrb[3].mxu1 }
  0xf1   : > { %v404_v21 = vpop.f32.mrb[0].mxu0 }
  0xf2   : > { %v562_v23 = vadd.f32 %v404_v21, %v274_v17  ;;  %v560_v24 = vpop.f32.mrb[1].mxu0 }
  0xf3   : > { %v407_v26 = vpop.f32.mrb[2].mxu0 }
  0xf4   : > { %v418_v27 = vmul.f32 %v562_v23, %v516_v22  ;;  %v561_v28 = vpop.f32.mrb[3].mxu0 }
  0xf6   : > { %v426_v29 = vadd.f32 %v517_v25, %v418_v27 }
  0xf8   : > { %v427_v30 = vmax.f32 %v426_v29, 0.0 }
  0xfa   : > { %v428_v31 = vpack.c.bf16 %v427_v30, %v427_v30 }
  0xfc   : > { %430 = vst.msk [vmem:[%s192_s22] sm:$0x3] %vm429_vm2, %v428_v31 }
  0xfd PF: > { %s14_s15 = sadd.s32 1, %s593_s15  }
  0xfe   : > { %p11_p4 = scmp.ge.s32.totalorder %s14_s15, 14  }
 0x100   :  { %13 = sbr.rel (!%p11_p4) target bundleno = 1 (0x1), region = 68 }

// kernel: lipread_forward.11
= control target key start
LH: loop header
LB: loop body
LE: loop exit
PB: predicated region body
PF: predicated region fallthrough
CT: control target
= control target key end

     0   :  { %s705_s18 = smov 0   ;;  %s769_s0 = inlined_call_operand.vmem [shape: bf16[12,6,48], index: 0, kind: input, shape index: {}]   ;;  %s770_s1 = inlined_call_operand.vmem [shape: bf16[3,48,32], index: 1, kind: input, shape index: {}]   ;;  %s771_s2 = inlined_call_operand.vmem [shape: f32[1,32], index: 2, kind: input, shape index: {}]   ;;  %s772_s3 = inlined_call_operand.vmem [shape: f32[1,32], index: 3, kind: input, shape index: {}]   ;;  %s773_s4 = inlined_call_operand.vmem [shape: bf16[12,4,32], index: 4, kind: input, shape index: {}]   ;;  %s774_s5 = inlined_call_operand.vmem [shape: f32[12,1,8], index: 5, kind: output, shape index: {}]  }
   0x1 LB: > { %s556_s19 = sadd.s32 4294967295, %s668_s18   ;;  %p560_p0 = scmp.ge.s32.totalorder %s668_s18, 1  ;;  %s668_s18 = sphi %s705_s18, %s15_s18  }
   0x2   : > { %p195_p1 = scmp.lt.s32.totalorder %s668_s18, 13 }
   0x4   : > { %p196_p2 = pnand %p560_p0, %p195_p1 }
   0x5   : > { %v652_v0 = vld [vmem:[%s770_s1] sm:$0xff] (!%p196_p2)   ;;  %v670_v1 = vmov (!%p196_p2), 0.0   ;;  %v653_v2 = vld [vmem:[%s770_s1 + $0x8] sm:$0xff] (!%p196_p2)   ;;  %vm671_vm0 = vmmov (!%p196_p2), 0   ;;  %p224_p3 = scmp.lt.s32.totalorder (!%p196_p2), %s556_s19, 11  ;;  %v655_v3 = vld [vmem:[%s770_s1 + $0x18] sm:$0xff] (!%p196_p2)  }
   0x6   : > { %199 = sbr.rel (%p196_p2) target bundleno = 391 (0x187), region = 40  ;;  %614 = vmatprep.subr.bf16.mxu0 (!%p196_p2), %v670_v1  ;;  %604 = vmatprep.subr.bf16.mxu1 (!%p196_p2), %v670_v1  ;;  %v658_v4 = vld [vmem:[%s770_s1 + $0x20] sm:$0xff] (!%p196_p2)   ;;  %v654_v5 = vld [vmem:[%s770_s1 + $0x10] sm:$0xff] (!%p196_p2)   ;;  %v660_v8 = vld [vmem:[%s770_s1 + $0x28] sm:$0xff] (!%p196_p2)   ;;  %vm278_vm1 = vcmask (!%p196_p2), 392192   ;;  %vm473_vm2 = vcmask (!%p196_p2), 257024  }
   0x7   : > { %615 = vmatpush3.bf16.msra.mxu0 (!%p196_p2), %v652_v0  ;;  %620 = vmatprep.mubr.msk.bf16.mxu0 (!%p196_p2), %vm671_vm0, %v670_v1  ;;  %v657_v9 = vld [vmem:[%s770_s1 + $0x30] sm:$0xff] (!%p196_p2)   ;;  %v659_v13 = vld [vmem:[%s770_s1 + $0x38] sm:$0xff] (!%p196_p2)   ;;  %v661_v15 = vld [vmem:[%s770_s1 + $0x40] sm:$0xff] (!%p196_p2)   ;;  %s672_s27 = smov (!%p196_p2), 104   ;;  %s673_s28 = smov (!%p196_p2), 120   ;;  %vm495_vm3 = vcmask (!%p196_p2), 57344  }
   0x8   : > { %616 = vmatprep.subr.bf16.mxu0 (!%p196_p2), %v670_v1  ;;  %610 = vmatprep.mubr.msk.bf16.mxu1 (!%p196_p2), %vm671_vm0, %v670_v1  ;;  %v588_v22 = vld [vmem:[%s771_s2] ss:$0 sm:$0xff] (!%p196_p2)  ;;  %s674_s29 = smov (!%p196_p2), 112  }
   0x9   : > { %605 = vmatpush3.bf16.msra.mxu1 (!%p196_p2), %v655_v3  ;;  %v589_v26 = vld [vmem:[%s772_s3] ss:$0 sm:$0xff] (!%p196_p2) }
   0xa   : > { %606 = vmatprep.subr.bf16.mxu1 (!%p196_p2), %v670_v1 }
   0xb   : > { %617 = vmatpush3.bf16.msra.mxu0 (!%p196_p2), %v653_v2 }
   0xc   : > { %618 = vmatprep.subr.bf16.mxu0 (!%p196_p2), %v670_v1 }
   0xd   : > { %s776_s19 = smov (!%p224_p3, %s556_s19), 11  ;;  %607 = vmatpush3.bf16.msra.mxu1 %v658_v4 }
   0xe   : > { %s561_s30 = sshll.u32 %s776_s19, 2  ;;  %608 = vmatprep.subr.bf16.mxu1 %v670_v1  ;;  %s562_s17 = sshll.u32 %s776_s19, 1 }
   0xf   : > { %s227_s8 = scalar_lea.vmem %s769_s0, %s561_s30  ;;  %619 = vmatpush3.bf16.msra.mxu0 %v654_v5  ;;  %s231_s22 = scalar_lea.vmem %s773_s4, %s562_s17 }
  0x10   : > { %v236_v6 = vld [vmem:[%s227_s8] sm:$0x7]  ;;  %624 = vmatprep.subr.bf16.mxu0 %v670_v1  ;;  %s234_s7 = scalar_lea.vmem %s774_s5, %s776_s19 }
  0x11   : > { %v569_v7 = vcombine.low %v236_v6, %v236_v6  ;;  %609 = vmatpush3.bf16.msra.mxu1 %v660_v8  ;;  %v469_v23 = vld [vmem:[%s231_s22] sm:$0x3] }
  0x12   : > { %621 = vmatmul.mubr.msk.bf16.vlgmr.msra.gmra.mrb[0].mxu0 %vm278_vm1, %v236_v6  ;;  %v470_v29 = vunpack.c.l.bf16 %v469_v23 }
  0x13   : > { %v254_v10 = vshrl.u32 %v569_v7, 16  ;;  %v256_v11 = vshll.u32 %v569_v7, 16  ;;  %625 = vmatpush3.bf16.msra.mxu0 %v657_v9  ;;  %630 = vmatprep.mubr.msk.bf16.mxu0 %vm671_vm0, %v670_v1  ;;  %v390_v16 = vrot.slane %v569_v7, 1 }
  0x14   : > { %626 = vmatprep.subr.bf16.mxu0 %v670_v1 }
  0x15   : > { %v258_v12 = vrot.slane %v256_v11, 1 }
  0x17   : > { %v259_v14 = vor.u32 %v258_v12, %v254_v10  ;;  %627 = vmatpush3.bf16.msra.mxu0 %v659_v13 }
  0x18   : > { %628 = vmatprep.subr.bf16.mxu0 %v670_v1 }
  0x19   : > { %611 = vmatmul.mubr.msk.bf16.vlgmr.msra.gmra.mrb[0].mxu1 %vm278_vm1, %v259_v14 }
  0x1b   : > { %629 = vmatpush3.bf16.msra.mxu0 %v661_v15 }
  0x1e   : > { %631 = vmatmul.mubr.msk.bf16.vlgmr.msra.gmra.mrb[0].mxu0 %vm278_vm1, %v390_v16 }
  0xec   : > { %v316_v17 = vpop.f32.mrb[0].mxu1 }
  0xed   : > { %v612_v18 = vpop.f32.mrb[1].mxu1 }
  0xee   : > { %v319_v19 = vpop.f32.mrb[2].mxu1 }
  0xef   : > { %v613_v20 = vpop.f32.mrb[3].mxu1 }
  0xf1   : > { %v446_v21 = vpop.f32.mrb[0].mxu0 }
  0xf2   : > { %v634_v24 = vadd.f32 %v446_v21, %v316_v17  ;;  %v632_v25 = vpop.f32.mrb[1].mxu0 }
  0xf3   : > { %v449_v27 = vpop.f32.mrb[2].mxu0 }
  0xf4   : > { %v460_v28 = vmul.f32 %v634_v24, %v588_v22  ;;  %v633_v30 = vpop.f32.mrb[3].mxu0 }
  0xf6   : > { %v468_v31 = vadd.f32 %v589_v26, %v460_v28 }
  0xf8   : > { %v471_v32 = vadd.f32 %v470_v29, %v468_v31 }
  0xfa   : > { %v472_v33 = vmax.f32 %v471_v32, 0.0 }
  0xfc   : > { %v474_v34 = vsel %vm473_vm2, %v472_v33, 0.0 }
  0xfd   : > { %v475_v35 = vrot.slane %v474_v34, 4 }
  0xff   : > { %v476_v36 = vadd.f32 %v475_v35, %v474_v34 }
 0x101   : > { %v477_v37 = vrot.slane %v476_v36, 2 }
 0x103   : > { %v478_v38 = vadd.f32 %v477_v37, %v476_v36 }
 0x105   : > { %v479_v39 = vrot.slane %v478_v38, 1 }
 0x107   : > { %v480_v40 = vadd.f32 %v479_v39, %v478_v38 }
 0x109   : > { %490 = vrot.lane.b32.xlu1 %v480_v40, %s672_s27  ;;  %482 = vrot.lane.b32.xlu0 %v480_v40, %s673_s28 }
 0x10d   : > { %486 = vrot.lane.b32.xlu0 %v480_v40, %s674_s29 }
 0x17b   : > { %v483_v41 = vpop.permute.xlu0 %482  ;;  %v491_v45 = vpop.permute.xlu1 %490 }
 0x17c   : > { %v485_v42 = vadd.f32 %v483_v41, %v480_v40 }
 0x17f   : > { %v487_v43 = vpop.permute.xlu0 %486 }
 0x180   : > { %v489_v44 = vadd.f32 %v487_v43, %v485_v42 }
 0x182   : > { %v493_v46 = vadd.f32 %v491_v45, %v489_v44 }
 0x184   : > { %v494_v47 = vmul.f32 0.0625, %v493_v46 }
 0x186   : > { %496 = vst.msk [vmem:[%s234_s7] sm:$0x1] %vm495_vm3, %v494_v47 }
 0x187 PF: > { %s15_s18 = sadd.s32 1, %s668_s18  }
 0x188   : > { %p12_p4 = scmp.ge.s32.totalorder %s15_s18, 14  }
 0x18a   :  { %14 = sbr.rel (!%p12_p4) target bundleno = 1 (0x1), region = 75 }

// kernel: lipread_forward.12
= control target key start
LH: loop header
LB: loop body
LE: loop exit
PB: predicated region body
PF: predicated region fallthrough
CT: control target
= control target key end

     0   :  { %v240_v0 = vmov 0.0   ;;  %vm241_vm0 = vmmov 0   ;;  %s303_s1 = inlined_call_operand.vmem [shape: bf16[128,128], index: 1, kind: input, shape index: {}]   ;;  %s304_s0 = inlined_call_operand.vmem [shape: bf16[16,128], index: 0, kind: input, shape index: {}]   ;;  %s305_s2 = inlined_call_operand.vmem [shape: f32[1,128], index: 2, kind: input, shape index: {}]   ;;  %s306_s3 = inlined_call_operand.vmem [shape: f32[1,128], index: 3, kind: input, shape index: {}]   ;;  %s307_s4 = inlined_call_operand.vmem [shape: bf16[16,128], index: 4, kind: output, shape index: {}]  }
   0x1   :  { %209 = vmatprep.subr.bf16.mxu0 %v240_v0  ;;  %v231_v1 = vld [vmem:[%s303_s1] sm:$0xff]   ;;  %225 = vmatprep.mubr.msk.bf16.mxu0 %vm241_vm0, %v240_v0  ;;  %v232_v2 = vld [vmem:[%s303_s1 + $0x8] sm:$0xff]   ;;  %v233_v3 = vld [vmem:[%s303_s1 + $0x10] sm:$0xff]  }
   0x2   :  { %210 = vmatpush3.bf16.msra.mxu0 %v231_v1  ;;  %v234_v4 = vld [vmem:[%s303_s1 + $0x18] sm:$0xff]   ;;  %v235_v5 = vld [vmem:[%s303_s1 + $0x20] sm:$0xff]   ;;  %v236_v6 = vld [vmem:[%s303_s1 + $0x28] sm:$0xff]  }
   0x3   :  { %211 = vmatprep.subr.bf16.mxu0 %v240_v0  ;;  %v237_v7 = vld [vmem:[%s303_s1 + $0x30] sm:$0xff]   ;;  %v238_v8 = vld [vmem:[%s303_s1 + $0x38] sm:$0xff]   ;;  %v239_v9 = vld [vmem:[%s304_s0] sm:$0xff]  }
   0x4   :  { %v189_v10 = vld [vmem:[%s305_s2] ss:$0 sm:$0xff] }
   0x5   :  { %v190_v14 = vld [vmem:[%s306_s3] ss:$0 sm:$0xff] }
   0x6   :  { %212 = vmatpush3.bf16.msra.mxu0 %v232_v2 }
   0x7   :  { %213 = vmatprep.subr.bf16.mxu0 %v240_v0 }
   0xa   :  { %214 = vmatpush3.bf16.msra.mxu0 %v233_v3 }
   0xb   :  { %215 = vmatprep.subr.bf16.mxu0 %v240_v0 }
   0xe   :  { %216 = vmatpush3.bf16.msra.mxu0 %v234_v4 }
   0xf   :  { %217 = vmatprep.subr.bf16.mxu0 %v240_v0 }
  0x12   :  { %218 = vmatpush3.bf16.msra.mxu0 %v235_v5 }
  0x13   :  { %219 = vmatprep.subr.bf16.mxu0 %v240_v0 }
  0x16   :  { %220 = vmatpush3.bf16.msra.mxu0 %v236_v6 }
  0x17   :  { %221 = vmatprep.subr.bf16.mxu0 %v240_v0 }
  0x1a   :  { %222 = vmatpush3.bf16.msra.mxu0 %v237_v7 }
  0x1b   :  { %223 = vmatprep.subr.bf16.mxu0 %v240_v0 }
  0x1e   :  { %224 = vmatpush3.bf16.msra.mxu0 %v238_v8 }
  0x21   :  { %226 = vmatmul.mubr.bf16.vlgmr.msra.gmra.mrb[0].mxu0 %v239_v9 }
  0xf4   :  { %v132_v11 = vpop.f32.mrb[0].mxu0 }
  0xf5   :  { %v155_v12 = vmul.f32 %v189_v10, %v132_v11  ;;  %v227_v13 = vpop.f32.mrb[1].mxu0 }
  0xf6   :  { %v135_v15 = vpop.f32.mrb[2].mxu0 }
  0xf7   :  { %v156_v16 = vmul.f32 %v189_v10, %v135_v15  ;;  %v228_v17 = vpop.f32.mrb[3].mxu0  ;;  %v164_v18 = vadd.f32 %v190_v14, %v155_v12 }
  0xf9   :  { %v165_v19 = vadd.f32 %v190_v14, %v156_v16 }
  0xfb   :  { %v198_v20 = vpack.c.bf16 %v165_v19, %v164_v18 }
  0xfd   :  { %199 = vst [vmem:[%s307_s4] sm:$0xff] %v198_v20  }

// kernel: lipread_forward.13
= control target key start
LH: loop header
LB: loop body
LE: loop exit
PB: predicated region body
PF: predicated region fallthrough
CT: control target
= control target key end

     0   :  { %s914_s15 = smov 0   ;;  %s916_s16 = smov 0   ;;  %s1018_s0 = inlined_call_operand.vmem [shape: bf16[16,128], index: 0, kind: input, shape index: {}]   ;;  %s1019_s1 = inlined_call_operand.vmem [shape: bf16[128,1024], index: 1, kind: input, shape index: {}]   ;;  %s1020_s2 = inlined_call_operand.vmem [shape: f32[1,1024], index: 2, kind: input, shape index: {}]   ;;  %s1021_s3 = inlined_call_operand.vmem [shape: f32[1,1024], index: 3, kind: input, shape index: {}]   ;;  %s1022_s4 = inlined_call_operand.vmem [shape: f32[16,1024], index: 4, kind: output, shape index: {}]  }
   0x1   :  { %s918_s17 = smov 0   ;;  %s920_s18 = smov 0  }
   0x2   :  { %s922_s19 = smov 0  }
   0x3 LB: > { %s29_s20 = sadd.s32 1, %s882_s18  ;;  %s745_s21 = sadd.s32 4294967295, %s886_s19   ;;  %s886_s19 = sphi %s922_s19, %s14_s19   ;;  %s882_s18 = sphi %s920_s18, %s1027_s18   ;;  %s878_s17 = sphi %s918_s17, %s1026_s17   ;;  %s874_s16 = sphi %s916_s16, %s1025_s16   ;;  %s870_s15 = sphi %s914_s15, %s1024_s15  }
   0x4   : > { %p31_p0 = scmp.ge.s32.totalorder %s29_s20, 4  ;;  %p77_p1 = scmp.ne.s32.totalorder %s874_s16, %s870_s15 }
   0x5   : > { %p78_p2 = scmp.eq.s32.totalorder %s886_s19, 0  ;;  %p161_p4 = scmp.eq.s32.totalorder %s745_s21, 3 }
   0x6   : > { %s1029_s20 = smov (%p31_p0, %s29_s20), 0  ;;  %s70_s23 = sadd.s32 1, %s874_s16 }
   0x7   : > { %p79_p3 = por %p78_p2, %p77_p1  ;;  %s66_s22 = ssub.s32 %s882_s18, %s1029_s20 }
   0x8   : > { %p68_p5 = scmp.eq.s32.totalorder %s66_s22, 0  ;;  %p949_p6 = por %p161_p4, %p77_p1 }
   0x9   : > { %p749_p7 = scmp.ge.s32.totalorder %s886_s19, 4 }
   0xa   : > { %s954_s25 = scalar_select %p68_p5, %s874_s16, %s70_s23  }
   0xb   : > { %195 = sbr.rel (%p749_p7) target bundleno = 38 (0x26), region = 20 }
  0x12   : > { %198 = sbr.rel (!%p79_p3) target bundleno = 38 (0x26), region = 24  ;;  %s200_s26 = sand.u32 (%p79_p3), 1, %s874_s16  }
  0x13   : > { %s780_s27 = sshll.u32 (%p79_p3), %s882_s18, 3  ;;  %s750_s28 = sshll.u32 (%p79_p3), %s200_s26, 7 }
  0x14   : > { %s962_s5 = scalar_lea.vmem (%p79_p3), %s1019_s1, %s780_s27  ;;  %s202_s6 = scalar_lea.vmem (%p79_p3), [#allocation3], %s750_s28 }
  0x15   : > { %v266_v0 = vld [vmem:[%s962_s5] sm:$0xff] (%p79_p3) }
  0x16   : > { %v268_v1 = vld [vmem:[%s962_s5 + $0x20] sm:$0xff] (%p79_p3)  ;;  %267 = vst [vmem:[%s202_s6] sm:$0xff] (%p79_p3), %v266_v0 }
  0x17   : > { %v270_v2 = vld [vmem:[%s962_s5 + $0x40] sm:$0xff] (%p79_p3)  ;;  %269 = vst [vmem:[%s202_s6 + $0x8] sm:$0xff] (%p79_p3), %v268_v1 }
  0x18   : > { %271 = vst [vmem:[%s202_s6 + $0x10] sm:$0xff] (%p79_p3), %v270_v2  ;;  %v272_v3 = vld [vmem:[%s962_s5 + $0x60] sm:$0xff] (%p79_p3) }
  0x19   : > { %v274_v4 = vld [vmem:[%s962_s5 + $0x80] sm:$0xff]  ;;  %273 = vst [vmem:[%s202_s6 + $0x18] sm:$0xff] %v272_v3 }
  0x1a   : > { %v276_v5 = vld [vmem:[%s962_s5 + $0xa0] sm:$0xff]  ;;  %275 = vst [vmem:[%s202_s6 + $0x20] sm:$0xff] %v274_v4 }
  0x1b   : > { %277 = vst [vmem:[%s202_s6 + $0x28] sm:$0xff] %v276_v5  ;;  %v278_v6 = vld [vmem:[%s962_s5 + $0xc0] sm:$0xff] }
  0x1c   : > { %v280_v7 = vld [vmem:[%s962_s5 + $0xe0] sm:$0xff]  ;;  %279 = vst [vmem:[%s202_s6 + $0x30] sm:$0xff] %v278_v6 }
  0x1d   : > { %v282_v8 = vld [vmem:[%s962_s5 + $0x100] sm:$0xff]  ;;  %281 = vst [vmem:[%s202_s6 + $0x38] sm:$0xff] %v280_v7 }
  0x1e   : > { %283 = vst [vmem:[%s202_s6 + $0x40] sm:$0xff] %v282_v8  ;;  %v284_v9 = vld [vmem:[%s962_s5 + $0x120] sm:$0xff] }
  0x1f   : > { %v286_v10 = vld [vmem:[%s962_s5 + $0x140] sm:$0xff]  ;;  %285 = vst [vmem:[%s202_s6 + $0x48] sm:$0xff] %v284_v9 }
  0x20   : > { %v288_v11 = vld [vmem:[%s962_s5 + $0x160] sm:$0xff]  ;;  %287 = vst [vmem:[%s202_s6 + $0x50] sm:$0xff] %v286_v10 }
  0x21   : > { %289 = vst [vmem:[%s202_s6 + $0x58] sm:$0xff] %v288_v11  ;;  %v290_v12 = vld [vmem:[%s962_s5 + $0x180] sm:$0xff] }
  0x22   : > { %v292_v13 = vld [vmem:[%s962_s5 + $0x1a0] sm:$0xff]  ;;  %291 = vst [vmem:[%s202_s6 + $0x60] sm:$0xff] %v290_v12 }
  0x23   : > { %v294_v14 = vld [vmem:[%s962_s5 + $0x1c0] sm:$0xff]  ;;  %293 = vst [vmem:[%s202_s6 + $0x68] sm:$0xff] %v292_v13 }
  0x24   : > { %295 = vst [vmem:[%s202_s6 + $0x70] sm:$0xff] %v294_v14  ;;  %v296_v15 = vld [vmem:[%s962_s5 + $0x1e0] sm:$0xff] }
  0x25   : > { %297 = vst [vmem:[%s202_s6 + $0x78] sm:$0xff] %v296_v15 }
  0x26 PF: > { %p753_p8 = scmp.ge.s32.totalorder %s886_s19, 1  ;;  %p318_p9 = scmp.lt.s32.totalorder %s886_s19, 5 }
  0x28   : > { %p319_p10 = pnand %p753_p8, %p318_p9 }
  0x29   : > { %s325_s7 = sand.u32 (!%p319_p10), 1, %s870_s15   ;;  %v888_v16 = vmov (!%p319_p10), 0   ;;  %v847_v33 = vld [vmem:[%s1018_s0] sm:$0xff] (!%p319_p10)   ;;  %s756_s12 = sshll.u32 (!%p319_p10), %s878_s17, 1  ;;  %v565_v34 = vlaneseq (!%p319_p10) }
  0x2a   : > { %322 = sbr.rel (%p319_p10) target bundleno = 305 (0x131), region = 70  ;;  %s754_s8 = sshll.u32 (!%p319_p10), %s325_s7, 7  ;;  %537 = vmatprep.mubr.bf16.mxu0 (!%p319_p10), %v888_v16 }
  0x2b   : > { %s327_s9 = scalar_lea.vmem (!%p319_p10), [#allocation3], %s754_s8  ;;  %p377_p11 = scmp.lt.s32.totalorder (!%p319_p10), %s756_s12, 7  ;;  %v566_v35 = vshrl.u32 (!%p319_p10), %v565_v34, 7 }
  0x2c   : > { %v823_v17 = vld [vmem:[%s327_s9 + $0x4] ss:$8 sps:$4 sm:$0xff] (!%p319_p10)   ;;  %v825_v18 = vld [vmem:[%s327_s9] ss:$8 sps:$4 sm:$0xff] (!%p319_p10)   ;;  %v826_v19 = vld [vmem:[%s327_s9 + $0x14] ss:$8 sps:$4 sm:$0xff] (!%p319_p10)  }
  0x2d   : > { %505 = vmatprep.subr.bf16.mxu0 (!%p319_p10), %v823_v17  ;;  %v828_v20 = vld [vmem:[%s327_s9 + $0x10] ss:$8 sps:$4 sm:$0xff] (!%p319_p10)   ;;  %v829_v21 = vld [vmem:[%s327_s9 + $0x24] ss:$8 sps:$4 sm:$0xff] (!%p319_p10)   ;;  %v831_v22 = vld [vmem:[%s327_s9 + $0x20] ss:$8 sps:$4 sm:$0xff] (!%p319_p10)  }
  0x2e   : > { %506 = vmatpush1.bf16.msra.mxu0 (!%p319_p10), %v825_v18  ;;  %v832_v23 = vld [vmem:[%s327_s9 + $0x34] ss:$8 sps:$4 sm:$0xff] (!%p319_p10)   ;;  %v834_v24 = vld [vmem:[%s327_s9 + $0x30] ss:$8 sps:$4 sm:$0xff] (!%p319_p10)   ;;  %v835_v25 = vld [vmem:[%s327_s9 + $0x44] ss:$8 sps:$4 sm:$0xff] (!%p319_p10)  }
  0x2f   : > { %507 = vmatprep.subr.bf16.mxu0 (!%p319_p10), %v826_v19  ;;  %v837_v26 = vld [vmem:[%s327_s9 + $0x40] ss:$8 sps:$4 sm:$0xff] (!%p319_p10)   ;;  %v838_v27 = vld [vmem:[%s327_s9 + $0x54] ss:$8 sps:$4 sm:$0xff] (!%p319_p10)   ;;  %v840_v28 = vld [vmem:[%s327_s9 + $0x50] ss:$8 sps:$4 sm:$0xff] (!%p319_p10)  }
  0x30   : > { %v841_v29 = vld [vmem:[%s327_s9 + $0x64] ss:$8 sps:$4 sm:$0xff] (!%p319_p10)   ;;  %v843_v30 = vld [vmem:[%s327_s9 + $0x60] ss:$8 sps:$4 sm:$0xff] (!%p319_p10)   ;;  %v844_v31 = vld [vmem:[%s327_s9 + $0x74] ss:$8 sps:$4 sm:$0xff] (!%p319_p10)  }
  0x31   : > { %v846_v32 = vld [vmem:[%s327_s9 + $0x70] ss:$8 sps:$4 sm:$0xff]   ;;  %s1031_s12 = smov (!%p377_p11, %s756_s12), 7  ;;  %v567_v36 = vsub.s32 0, %v566_v35  ;;  %v571_v38 = vsub.s32 1, %v566_v35  ;;  %s755_s27 = sshll.u32 %s325_s7, 5 }
  0x32   : > { %508 = vmatpush1.bf16.msra.mxu0 %v828_v20  ;;  %s379_s21 = scalar_lea.vmem %s1020_s2, %s1031_s12  ;;  %s384_s26 = scalar_lea.vmem %s1021_s3, %s1031_s12 }
  0x33   : > { %509 = vmatprep.subr.bf16.mxu0 %v829_v21  ;;  %v563_v37 = vld [vmem:[%s379_s21] sm:$0x3]  ;;  %s364_s28 = scalar_lea.vmem [#allocation4], %s755_s27  ;;  %s781_s15 = sshll.u32 (%p949_p6), %s878_s17, 4 }
  0x34   : > { %v579_v39 = vld [vmem:[%s384_s26] sm:$0x3]  ;;  %v568_v40 = vrot.slane %v563_v37, %v567_v36  ;;  %v572_v41 = vrot.slane %v563_v37, %v571_v38  ;;  %s611_s5 = scalar_lea.vmem (%p949_p6), %s1022_s4, %s781_s15 }
  0x35   : > { %v584_v42 = vrot.slane %v579_v39, %v567_v36  ;;  %v588_v44 = vrot.slane %v579_v39, %v571_v38 }
  0x36   : > { %510 = vmatpush1.bf16.msra.mxu0 %v831_v22 }
  0x37   : > { %511 = vmatprep.subr.bf16.mxu0 %v832_v23 }
  0x3a   : > { %512 = vmatpush1.bf16.msra.mxu0 %v834_v24 }
  0x3b   : > { %513 = vmatprep.subr.bf16.mxu0 %v835_v25 }
  0x3e   : > { %514 = vmatpush1.bf16.msra.mxu0 %v837_v26 }
  0x3f   : > { %515 = vmatprep.subr.bf16.mxu0 %v838_v27 }
  0x42   : > { %516 = vmatpush1.bf16.msra.mxu0 %v840_v28 }
  0x43   : > { %517 = vmatprep.subr.bf16.mxu0 %v841_v29 }
  0x46   : > { %518 = vmatpush1.bf16.msra.mxu0 %v843_v30 }
  0x47   : > { %519 = vmatprep.subr.bf16.mxu0 %v844_v31 }
  0x4a   : > { %520 = vmatpush1.bf16.msra.mxu0 %v846_v32 }
  0x4d   : > { %538 = vmatmul.mubr.bf16.vlgmr.msra.gmra.mrb[0].mxu0 %v847_v33 }
 0x120   : > { %v539_v43 = vpop.f32.mrb[0].mxu0 }
 0x121   : > { %v575_v45 = vmul.f32 %v568_v40, %v539_v43  ;;  %v541_v46 = vpop.f32.mrb[1].mxu0 }
 0x122   : > { %v576_v47 = vmul.f32 %v572_v41, %v541_v46  ;;  %v543_v48 = vpop.f32.mrb[2].mxu0  ;;  %605 = sbr.rel (!%p949_p6) target bundleno = 305 (0x131), region = 86 }
 0x123   : > { %v591_v49 = vadd.f32 %v584_v42, %v575_v45  ;;  %v577_v50 = vmul.f32 %v568_v40, %v543_v48  ;;  %v545_v51 = vpop.f32.mrb[3].mxu0 }
 0x124   : > { %v592_v52 = vadd.f32 %v588_v44, %v576_v47  ;;  %v578_v53 = vmul.f32 %v572_v41, %v545_v51 }
 0x125   : > { %595 = vst [vmem:[%s364_s28] sm:$0xff] %v591_v49  ;;  %v593_v54 = vadd.f32 %v584_v42, %v577_v50 }
 0x126   : > { %596 = vst [vmem:[%s364_s28 + $0x8] sm:$0xff] %v592_v52  ;;  %v594_v55 = vadd.f32 %v588_v44, %v578_v53 }
 0x127   : > { %597 = vst [vmem:[%s364_s28 + $0x10] sm:$0xff] %v593_v54 }
 0x128   : > { %598 = vst [vmem:[%s364_s28 + $0x18] sm:$0xff] %v594_v55 }
 0x12c   : > { %v624_v56 = vld [vmem:[%s364_s28] sm:$0xff] }
 0x12d   : > { %v626_v57 = vld [vmem:[%s364_s28 + $0x8] sm:$0xff]  ;;  %625 = vst [vmem:[%s611_s5] sm:$0xff] %v624_v56 }
 0x12e   : > { %v628_v58 = vld [vmem:[%s364_s28 + $0x10] sm:$0xff]  ;;  %627 = vst [vmem:[%s611_s5 + $0x8] sm:$0xff] %v626_v57 }
 0x12f   : > { %v630_v59 = vld [vmem:[%s364_s28 + $0x18] sm:$0xff]  ;;  %629 = vst [vmem:[%s611_s5 + $0x40] sm:$0xff] %v628_v58 }
 0x130   : > { %631 = vst [vmem:[%s611_s5 + $0x48] sm:$0xff] %v630_v59 }
 0x131 PF: > { %s14_s19 = sadd.s32 1, %s886_s19   ;;  %s1024_s15 = smov %s874_s16 }
 0x132   : > { %p11_p12 = scmp.ge.s32.totalorder %s14_s19, 6   ;;  %s1025_s16 = smov %s954_s25 }
 0x133   : > { %s1026_s17 = smov %s882_s18  ;;  %s1027_s18 = smov %s1029_s20 }
 0x134   :  { %13 = sbr.rel (!%p11_p12) target bundleno = 3 (0x3), region = 149 }

// kernel: lipread_forward.14
= control target key start
LH: loop header
LB: loop body
LE: loop exit
PB: predicated region body
PF: predicated region fallthrough
CT: control target
= control target key end

     0   :  { %11 = vsyncpa [#allocation7], 0  ;;  %s1284_s0 = inlined_call_operand.hbm [shape: f32[6,8,512], index: 0, kind: input, shape index: {}]   ;;  %s1285_s1 = inlined_call_operand.hbm [shape: f32[6,8,512], index: 1, kind: input, shape index: {}]   ;;  %s1286_s2 = inlined_call_operand.hbm [shape: bf16[128,512], index: 2, kind: input, shape index: {}]   ;;  %s1287_s3 = inlined_call_operand.hbm [shape: bf16[128,512], index: 3, kind: input, shape index: {}]   ;;  %s1288_s4 = inlined_call_operand.hbm [shape: bf16[6,8,128], index: 4, kind: output, shape index: {0}]   ;;  %s1289_s5 = inlined_call_operand.hbm [shape: bf16[6,8,128], index: 5, kind: output, shape index: {1}]  }
   0x1   :  { %12 = vsyncpa [#allocation10], 0 }
   0x2   :  { %13 = vsyncpa [#allocation13], 0 }
   0x3   :  { %14 = vsyncpa [#allocation8], 0 }
   0x4   :  { %15 = vsyncpa [#allocation16], 0  ;;  %s1142_s18 = smov [#allocation9]   ;;  %s1143_s20 = smov [#allocation6]  }
   0x5   :  { %s33_s19 = sshll.u32 %s1142_s18, 4  ;;  %s21_s21 = sshll.u32 %s1143_s20, 4  ;;  %s34_s19 = int_to_ptr.vmem [resolvable:$true] %s33_s19  ;;  %s1186_s21 = int_to_ptr.vmem [resolvable:$true] %s21_s21 }
   0x6   :  { %s992_s24 = scalar_lea.hbm %s1285_s1, 3072 }
   0x7   :  { %p993_p0 = scmp.ne.s32.totalorder %s1285_s1, %s992_s24  ;;  %p996_p1 = scmp.lt.u32.totalorder %s992_s24, %s1285_s1 }
   0x9   :  { %p998_p2 = pnand %p996_p1, %p993_p0 }
   0xb   :  { %1001 = shalt.err (!%p998_p2)
}
   0xc   :  { %s1002_s29 = scalar_lea.vmem %s34_s19, 3072  ;;  %p1007_p4 = scmp.lt.s32.totalorder %s34_s19, %s34_s19 }
   0xd   :  { %p1003_p3 = scmp.ne.s32.totalorder %s34_s19, %s1002_s29  ;;  %p1008_p5 = scmp.lt.s32.totalorder %s1002_s29, %s1002_s29 }
   0xf   :  { %p1009_p6 = por %p1008_p5, %p1007_p4 }
  0x11   :  { %p1010_p7 = pnand %p1009_p6, %p1003_p3 }
  0x13   :  { %1013 = shalt.err (!%p1010_p7)
}
  0x14   :  { %s1144_s30 = smov 512   ;;  %s1145_s6 = smov 32  }
  0x15   :  { %39 = dma.hbm_to_vmem [thread:$0]  %s1285_s1, 3072, %s34_s19, [#allocation10], %s1144_s30, %s1144_s30, %s1145_s6  }
  0x16   :  { %s1014_s11 = scalar_lea.hbm %s1284_s0, 3072 }
  0x17   :  { %p1015_p8 = scmp.ne.s32.totalorder %s1284_s0, %s1014_s11  ;;  %p1018_p9 = scmp.lt.u32.totalorder %s1014_s11, %s1284_s0 }
  0x19   :  { %p1020_p10 = pnand %p1018_p9, %p1015_p8 }
  0x1b   :  { %1023 = shalt.err (!%p1020_p10)
}
  0x1c   :  { %s1024_s16 = scalar_lea.vmem %s1186_s21, 3072  ;;  %p1029_p12 = scmp.lt.s32.totalorder %s1186_s21, %s1186_s21 }
  0x1d   :  { %p1025_p11 = scmp.ne.s32.totalorder %s1186_s21, %s1024_s16  ;;  %p1030_p13 = scmp.lt.s32.totalorder %s1024_s16, %s1024_s16 }
  0x1f   :  { %p1031_p0 = por %p1030_p13, %p1029_p12 }
  0x21   :  { %p1032_p1 = pnand %p1031_p0, %p1025_p11 }
  0x23   :  { %1035 = shalt.err (!%p1032_p1)
}
  0x24   :  { %27 = dma.hbm_to_vmem [thread:$0]  %s1284_s0, 3072, %s1186_s21, [#allocation7], %s1144_s30, %s1144_s30, %s1145_s6  }
  0x25   :  { %s1146_s18 = smov [#allocation11]   ;;  %s1036_s23 = scalar_lea.hbm %s1286_s2, 4096 }
  0x26   :  { %s45_s19 = sshll.u32 %s1146_s18, 4  ;;  %p1037_p2 = scmp.ne.s32.totalorder %s1286_s2, %s1036_s23  ;;  %s46_s19 = int_to_ptr.vmem [resolvable:$true] %s45_s19 }
  0x27   :  { %p1040_p3 = scmp.lt.u32.totalorder %s1036_s23, %s1286_s2 }
  0x29   :  { %p1042_p4 = pnand %p1040_p3, %p1037_p2 }
  0x2b   :  { %1045 = shalt.err (!%p1042_p4)
}
  0x2c   :  { %s1046_s28 = scalar_lea.vmem %s46_s19, 4096  ;;  %p1051_p6 = scmp.lt.s32.totalorder %s46_s19, %s46_s19 }
  0x2d   :  { %p1047_p5 = scmp.ne.s32.totalorder %s46_s19, %s1046_s28  ;;  %p1052_p7 = scmp.lt.s32.totalorder %s1046_s28, %s1046_s28 }
  0x2f   :  { %p1053_p8 = por %p1052_p7, %p1051_p6 }
  0x31   :  { %p1054_p9 = pnand %p1053_p8, %p1047_p5 }
  0x33   :  { %1057 = shalt.err (!%p1054_p9)
}
  0x34   :  { %s1147_s0 = smov 256   ;;  %s1148_s21 = smov 16  }
  0x35   :  { %51 = dma.hbm_to_vmem [thread:$0]  %s1286_s2, 4096, %s46_s19, [#allocation10], %s1147_s0, %s1147_s0, %s1148_s21  }
  0x36   :  { %s1149_s6 = smov [#allocation12]   ;;  %s1058_s10 = scalar_lea.hbm %s1287_s3, 4096 }
  0x37   :  { %s57_s7 = sshll.u32 %s1149_s6, 4  ;;  %p1059_p10 = scmp.ne.s32.totalorder %s1287_s3, %s1058_s10  ;;  %s58_s7 = int_to_ptr.vmem [resolvable:$true] %s57_s7 }
  0x38   :  { %p1062_p11 = scmp.lt.u32.totalorder %s1058_s10, %s1287_s3 }
  0x3a   :  { %p1064_p12 = pnand %p1062_p11, %p1059_p10 }
  0x3c   :  { %1067 = shalt.err (!%p1064_p12)
}
  0x3d   :  { %s1068_s15 = scalar_lea.vmem %s58_s7, 4096  ;;  %p1073_p0 = scmp.lt.s32.totalorder %s58_s7, %s58_s7 }
  0x3e   :  { %p1069_p13 = scmp.ne.s32.totalorder %s58_s7, %s1068_s15  ;;  %p1074_p1 = scmp.lt.s32.totalorder %s1068_s15, %s1068_s15 }
  0x40   :  { %p1075_p2 = por %p1074_p1, %p1073_p0 }
  0x42   :  { %p1076_p3 = pnand %p1075_p2, %p1069_p13 }
  0x44   :  { %1079 = shalt.err (!%p1076_p3)
}
  0x45   :  { %63 = dma.hbm_to_vmem [thread:$0]  %s1287_s3, 4096, %s58_s7, [#allocation13], %s1147_s0, %s1147_s0, %s1148_s21  }
  0x46   :  { %1128 = dma.done.wait [#allocation7], 3072  }
  0x47   :  { %1129 = vsyncadd [#allocation7], 4294964224 }
  0x48   :  { %1130 = dma.done.wait [#allocation10], 7168  }
  0x49   :  { %1131 = vsyncadd [#allocation10], 4294960128 }
  0x4a   :  { %1132 = dma.done.wait [#allocation13], 4096  }
  0x4b   :  { %1133 = vsyncadd [#allocation13], 4294963200  ;;  %v1150_v0 = vmov 0.0   ;;  %s1241_s1 = smov 0  }
  0x4c   :  { %77 = vst [vmem:[#allocation2] sm:$0xff] %v1150_v0  ;;  %78 = vst [vmem:[#allocation3] sm:$0xff] %v1150_v0 }
  0x4d   :  { %79 = vst [vmem:[#allocation4] sm:$0xff] %v1150_v0  ;;  %80 = vst [vmem:[#allocation5] sm:$0xff] %v1150_v0 }
  0x4e LB: > { %v864_v1 = vld [vmem:[#allocation11 + $0x4] ss:$16 sps:$4 sm:$0xff]   ;;  %v866_v2 = vld [vmem:[#allocation11] ss:$16 sps:$4 sm:$0xff]   ;;  %v1151_v3 = vmov 0   ;;  %s840_s3 = sshll.u32 %s1140_s1, 5  ;;  %s1140_s1 = sphi %s1241_s1, %s86_s1  }
  0x4f   : > { %320 = vmatprep.mubr.bf16.mxu0 %v1151_v3  ;;  %361 = vmatprep.mubr.bf16.mxu1 %v1151_v3  ;;  %v867_v4 = vld [vmem:[#allocation11 + $0x24] ss:$16 sps:$4 sm:$0xff]   ;;  %v869_v5 = vld [vmem:[#allocation11 + $0x20] ss:$16 sps:$4 sm:$0xff]   ;;  %v875_v7 = vld [vmem:[#allocation11 + $0xc] ss:$16 sps:$4 sm:$0xff]  }
  0x50   : > { %288 = vmatprep.subr.bf16.mxu0 %v864_v1  ;;  %v870_v6 = vld [vmem:[#allocation11 + $0x44] ss:$16 sps:$4 sm:$0xff]   ;;  %v878_v8 = vld [vmem:[#allocation11 + $0x8] ss:$16 sps:$4 sm:$0xff]   ;;  %v872_v9 = vld [vmem:[#allocation11 + $0x40] ss:$16 sps:$4 sm:$0xff]   ;;  %329 = vmatprep.subr.bf16.mxu1 %v875_v7 }
  0x51   : > { %289 = vmatpush1.bf16.msra.mxu0 %v866_v2  ;;  %v873_v10 = vld [vmem:[#allocation11 + $0x64] ss:$16 sps:$4 sm:$0xff]   ;;  %330 = vmatpush1.bf16.msra.mxu1 %v878_v8  ;;  %v881_v11 = vld [vmem:[#allocation11 + $0x2c] ss:$16 sps:$4 sm:$0xff]   ;;  %v884_v12 = vld [vmem:[#allocation11 + $0x28] ss:$16 sps:$4 sm:$0xff]  }
  0x52   : > { %290 = vmatprep.subr.bf16.mxu0 %v867_v4  ;;  %331 = vmatprep.subr.bf16.mxu1 %v881_v11  ;;  %v877_v13 = vld [vmem:[#allocation11 + $0x60] ss:$16 sps:$4 sm:$0xff]   ;;  %v879_v14 = vld [vmem:[#allocation11 + $0x84] ss:$16 sps:$4 sm:$0xff]   ;;  %v887_v15 = vld [vmem:[#allocation11 + $0x4c] ss:$16 sps:$4 sm:$0xff]  }
  0x53   : > { %v890_v16 = vld [vmem:[#allocation11 + $0x48] ss:$16 sps:$4 sm:$0xff]   ;;  %v893_v17 = vld [vmem:[#allocation11 + $0x6c] ss:$16 sps:$4 sm:$0xff]   ;;  %v883_v18 = vld [vmem:[#allocation11 + $0x80] ss:$16 sps:$4 sm:$0xff]  }
  0x54   : > { %v885_v19 = vld [vmem:[#allocation11 + $0xa4] ss:$16 sps:$4 sm:$0xff]   ;;  %v896_v20 = vld [vmem:[#allocation11 + $0x68] ss:$16 sps:$4 sm:$0xff]   ;;  %v899_v21 = vld [vmem:[#allocation11 + $0x8c] ss:$16 sps:$4 sm:$0xff]  }
  0x55   : > { %291 = vmatpush1.bf16.msra.mxu0 %v869_v5  ;;  %332 = vmatpush1.bf16.msra.mxu1 %v884_v12  ;;  %v889_v22 = vld [vmem:[#allocation11 + $0xa0] ss:$16 sps:$4 sm:$0xff]   ;;  %v891_v23 = vld [vmem:[#allocation11 + $0xc4] ss:$16 sps:$4 sm:$0xff]   ;;  %v902_v24 = vld [vmem:[#allocation11 + $0x88] ss:$16 sps:$4 sm:$0xff]  }
  0x56   : > { %292 = vmatprep.subr.bf16.mxu0 %v870_v6  ;;  %333 = vmatprep.subr.bf16.mxu1 %v887_v15  ;;  %v903_v25 = vld [vmem:[#allocation11 + $0xac] ss:$16 sps:$4 sm:$0xff]   ;;  %v895_v26 = vld [vmem:[#allocation11 + $0xc0] ss:$16 sps:$4 sm:$0xff]   ;;  %v897_v27 = vld [vmem:[#allocation11 + $0xe4] ss:$16 sps:$4 sm:$0xff]  }
  0x57   : > { %v908_v28 = vld [vmem:[#allocation11 + $0xa8] ss:$16 sps:$4 sm:$0xff]   ;;  %v909_v29 = vld [vmem:[#allocation11 + $0xcc] ss:$16 sps:$4 sm:$0xff]   ;;  %v901_v30 = vld [vmem:[#allocation11 + $0xe0] ss:$16 sps:$4 sm:$0xff]  }
  0x58   : > { %v94_v31 = vld [vmem:[#allocation2] sm:$0xff]  ;;  %v914_v33 = vld [vmem:[#allocation11 + $0xc8] ss:$16 sps:$4 sm:$0xff]   ;;  %v915_v34 = vld [vmem:[#allocation11 + $0xec] ss:$16 sps:$4 sm:$0xff]   ;;  %s89_s17 = scalar_lea.vmem [#allocation6], %s840_s3 }
  0x59   : > { %293 = vmatpush1.bf16.msra.mxu0 %v872_v9  ;;  %334 = vmatpush1.bf16.msra.mxu1 %v890_v16  ;;  %v907_v32 = vld [vmem:[#allocation12 + $0x4] ss:$16 sps:$4 sm:$0xff]   ;;  %v95_v35 = vpack.c.bf16 %v94_v31, %v94_v31  ;;  %v905_v36 = vld [vmem:[#allocation12] ss:$16 sps:$4 sm:$0xff]   ;;  %v920_v38 = vld [vmem:[#allocation11 + $0xe8] ss:$16 sps:$4 sm:$0xff]  }
  0x5a   : > { %294 = vmatprep.subr.bf16.mxu0 %v873_v10  ;;  %335 = vmatprep.subr.bf16.mxu1 %v893_v17  ;;  %v913_v37 = vld [vmem:[#allocation12 + $0x24] ss:$16 sps:$4 sm:$0xff]   ;;  %v926_v39 = vld [vmem:[#allocation12 + $0xc] ss:$16 sps:$4 sm:$0xff]   ;;  %v911_v40 = vld [vmem:[#allocation12 + $0x20] ss:$16 sps:$4 sm:$0xff]  }
  0x5b   : > { %v919_v41 = vld [vmem:[#allocation12 + $0x44] ss:$16 sps:$4 sm:$0xff]   ;;  %v924_v42 = vld [vmem:[#allocation12 + $0x8] ss:$16 sps:$4 sm:$0xff]   ;;  %v932_v43 = vld [vmem:[#allocation12 + $0x2c] ss:$16 sps:$4 sm:$0xff]  }
  0x5c   : > { %v917_v44 = vld [vmem:[#allocation12 + $0x40] ss:$16 sps:$4 sm:$0xff]   ;;  %v923_v45 = vld [vmem:[#allocation12 + $0x64] ss:$16 sps:$4 sm:$0xff]   ;;  %v930_v46 = vld [vmem:[#allocation12 + $0x28] ss:$16 sps:$4 sm:$0xff]  }
  0x5d   : > { %295 = vmatpush1.bf16.msra.mxu0 %v877_v13  ;;  %336 = vmatpush1.bf16.msra.mxu1 %v896_v20  ;;  %v938_v47 = vld [vmem:[#allocation12 + $0x4c] ss:$16 sps:$4 sm:$0xff]   ;;  %v921_v48 = vld [vmem:[#allocation12 + $0x60] ss:$16 sps:$4 sm:$0xff]   ;;  %v929_v49 = vld [vmem:[#allocation12 + $0x84] ss:$16 sps:$4 sm:$0xff]  }
  0x5e   : > { %296 = vmatprep.subr.bf16.mxu0 %v879_v14  ;;  %337 = vmatprep.subr.bf16.mxu1 %v899_v21  ;;  %v936_v50 = vld [vmem:[#allocation12 + $0x48] ss:$16 sps:$4 sm:$0xff]   ;;  %v944_v51 = vld [vmem:[#allocation12 + $0x6c] ss:$16 sps:$4 sm:$0xff]   ;;  %v927_v52 = vld [vmem:[#allocation12 + $0x80] ss:$16 sps:$4 sm:$0xff]  }
  0x5f   : > { %v935_v53 = vld [vmem:[#allocation12 + $0xa4] ss:$16 sps:$4 sm:$0xff]   ;;  %v942_v54 = vld [vmem:[#allocation12 + $0x68] ss:$16 sps:$4 sm:$0xff]   ;;  %v950_v55 = vld [vmem:[#allocation12 + $0x8c] ss:$16 sps:$4 sm:$0xff]  }
  0x60   : > { %v933_v56 = vld [vmem:[#allocation12 + $0xa0] ss:$16 sps:$4 sm:$0xff]   ;;  %v941_v57 = vld [vmem:[#allocation12 + $0xc4] ss:$16 sps:$4 sm:$0xff]   ;;  %v948_v58 = vld [vmem:[#allocation12 + $0x88] ss:$16 sps:$4 sm:$0xff]  }
  0x61   : > { %297 = vmatpush1.bf16.msra.mxu0 %v883_v18  ;;  %338 = vmatpush1.bf16.msra.mxu1 %v902_v24  ;;  %v953_v59 = vld [vmem:[#allocation12 + $0xac] ss:$16 sps:$4 sm:$0xff]   ;;  %v939_v60 = vld [vmem:[#allocation12 + $0xc0] ss:$16 sps:$4 sm:$0xff]   ;;  %v947_v61 = vld [vmem:[#allocation12 + $0xe4] ss:$16 sps:$4 sm:$0xff]  }
  0x62   : > { %298 = vmatprep.subr.bf16.mxu0 %v885_v19  ;;  %339 = vmatprep.subr.bf16.mxu1 %v903_v25  ;;  %v951_v62 = vld [vmem:[#allocation12 + $0xa8] ss:$16 sps:$4 sm:$0xff]   ;;  %v956_v63 = vld [vmem:[#allocation12 + $0xcc] ss:$16 sps:$4 sm:$0xff]   ;;  %v945_v0 = vld [vmem:[#allocation12 + $0xe0] ss:$16 sps:$4 sm:$0xff]  }
  0x63   : > { %v380_v1 = vld [vmem:[#allocation4] sm:$0xff]  ;;  %v954_v2 = vld [vmem:[#allocation12 + $0xc8] ss:$16 sps:$4 sm:$0xff]   ;;  %v90_v6 = vld [vmem:[%s89_s17] sm:$0xff]  ;;  %s375_s18 = scalar_lea.vmem [#allocation9], %s840_s3  ;;  %s838_s19 = sshll.u32 %s1140_s1, 2 }
  0x64   : > { %v381_v4 = vpack.c.bf16 %v380_v1, %v380_v1  ;;  %v957_v5 = vld [vmem:[#allocation12 + $0xe8] ss:$16 sps:$4 sm:$0xff]   ;;  %v92_v25 = vld [vmem:[%s89_s17 + $0x10] sm:$0xff]  ;;  %s716_s20 = scalar_lea.vmem [#allocation14], %s838_s19  ;;  %s719_s22 = ssub.s32 5, %s1140_s1 }
  0x65   : > { %299 = vmatpush1.bf16.msra.mxu0 %v889_v22  ;;  %340 = vmatpush1.bf16.msra.mxu1 %v908_v28  ;;  %v91_v7 = vld [vmem:[%s89_s17 + $0x8] sm:$0xff]  ;;  %v93_v16 = vld [vmem:[%s89_s17 + $0x18] sm:$0xff]  ;;  %s839_s23 = sshll.u32 %s719_s22, 2  ;;  %s86_s1 = sadd.s32 1, %s1140_s1  }
  0x66   : > { %300 = vmatprep.subr.bf16.mxu0 %v891_v23  ;;  %341 = vmatprep.subr.bf16.mxu1 %v909_v29  ;;  %s721_s24 = scalar_lea.vmem [#allocation15], %s839_s23  ;;  %p83_p4 = scmp.ge.s32.totalorder %s86_s1, 6  }
  0x67   :  { %s1152_s25 = smov (%p83_p4), [#allocation14]  }
  0x68   :  { %s728_s26 = sshll.u32 (%p83_p4), %s1152_s25, 4  ;;  %s729_s26 = int_to_ptr.vmem [resolvable:$true] %s728_s26 }
  0x69   : > { %301 = vmatpush1.bf16.msra.mxu0 %v895_v26  ;;  %342 = vmatpush1.bf16.msra.mxu1 %v914_v33  ;;  %s1080_s27 = scalar_lea.vmem (%p83_p4), %s729_s26, 384  ;;  %p1085_p6 = scmp.lt.s32.totalorder (%p83_p4), %s729_s26, %s729_s26 }
  0x6a   : > { %302 = vmatprep.subr.bf16.mxu0 %v897_v27  ;;  %343 = vmatprep.subr.bf16.mxu1 %v915_v34  ;;  %v698_v34 = vld [vmem:[#allocation3] sm:$0xff]  ;;  %p1081_p5 = scmp.ne.s32.totalorder (%p83_p4), %s729_s26, %s1080_s27  ;;  %p1086_p7 = scmp.lt.s32.totalorder (%p83_p4), %s1080_s27, %s1080_s27 }
  0x6c   :  { %p1087_p8 = por (%p83_p4), %p1086_p7, %p1085_p6 }
  0x6d   : > { %303 = vmatpush1.bf16.msra.mxu0 %v901_v30  ;;  %344 = vmatpush1.bf16.msra.mxu1 %v920_v38 }
  0x6e   : > { %574 = vmatprep.subr.bf16.mxu0 %v907_v32  ;;  %615 = vmatprep.subr.bf16.mxu1 %v926_v39  ;;  %p1088_p9 = pnand (%p83_p4), %p1087_p8, %p1081_p5 }
  0x70   : > { %321 = vmatmul.mubr.bf16.vlgmr.msra.gmra.mrb[0].mxu0 %v95_v35  ;;  %362 = vmatmul.mubr.bf16.vlgmr.msra.gmra.mrb[0].mxu1 %v95_v35 }
  0x71   : > { %575 = vmatpush1.bf16.msra.mxu0 %v905_v36  ;;  %606 = vmatprep.mubr.bf16.mxu0 %v1151_v3 }
  0x72   : > { %576 = vmatprep.subr.bf16.mxu0 %v913_v37  ;;  %616 = vmatpush1.bf16.msra.mxu1 %v924_v42  ;;  %v376_v37 = vld [vmem:[%s375_s18] sm:$0xff] }
  0x73   : > { %617 = vmatprep.subr.bf16.mxu1 %v932_v43  ;;  %647 = vmatprep.mubr.bf16.mxu1 %v1151_v3  ;;  %v959_v3 = vld [vmem:[#allocation12 + $0xec] ss:$16 sps:$4 sm:$0xff]  }
  0x75   : > { %577 = vmatpush1.bf16.msra.mxu0 %v911_v40  ;;  %v377_v40 = vld [vmem:[%s375_s18 + $0x8] sm:$0xff] }
  0x76   : > { %578 = vmatprep.subr.bf16.mxu0 %v919_v41  ;;  %618 = vmatpush1.bf16.msra.mxu1 %v930_v46 }
  0x77   : > { %619 = vmatprep.subr.bf16.mxu1 %v938_v47 }
  0x79   : > { %579 = vmatpush1.bf16.msra.mxu0 %v917_v44 }
  0x7a   : > { %580 = vmatprep.subr.bf16.mxu0 %v923_v45  ;;  %620 = vmatpush1.bf16.msra.mxu1 %v936_v50 }
  0x7b   : > { %621 = vmatprep.subr.bf16.mxu1 %v944_v51  ;;  %v379_v51 = vld [vmem:[%s375_s18 + $0x18] sm:$0xff] }
  0x7d   : > { %581 = vmatpush1.bf16.msra.mxu0 %v921_v48 }
  0x7e   : > { %582 = vmatprep.subr.bf16.mxu0 %v929_v49  ;;  %622 = vmatpush1.bf16.msra.mxu1 %v942_v54 }
  0x7f   : > { %623 = vmatprep.subr.bf16.mxu1 %v950_v55 }
  0x81   : > { %583 = vmatpush1.bf16.msra.mxu0 %v927_v52 }
  0x82   : > { %584 = vmatprep.subr.bf16.mxu0 %v935_v53  ;;  %624 = vmatpush1.bf16.msra.mxu1 %v948_v58 }
  0x83   : > { %625 = vmatprep.subr.bf16.mxu1 %v953_v59 }
  0x85   : > { %585 = vmatpush1.bf16.msra.mxu0 %v933_v56 }
  0x86   : > { %586 = vmatprep.subr.bf16.mxu0 %v941_v57  ;;  %626 = vmatpush1.bf16.msra.mxu1 %v951_v62 }
  0x87   : > { %627 = vmatprep.subr.bf16.mxu1 %v956_v63 }
  0x89   : > { %587 = vmatpush1.bf16.msra.mxu0 %v939_v60 }
  0x8a   : > { %588 = vmatprep.subr.bf16.mxu0 %v947_v61  ;;  %628 = vmatpush1.bf16.msra.mxu1 %v954_v2  ;;  %v378_v61 = vld [vmem:[%s375_s18 + $0x10] sm:$0xff] }
  0x8b   : > { %629 = vmatprep.subr.bf16.mxu1 %v959_v3 }
  0x8d   : > { %589 = vmatpush1.bf16.msra.mxu0 %v945_v0 }
  0x8e   : > { %630 = vmatpush1.bf16.msra.mxu1 %v957_v5 }
  0x90   : > { %607 = vmatmul.mubr.bf16.vlgmr.msra.gmra.mrb[4].mxu0 %v381_v4 }
  0x91   : > { %648 = vmatmul.mubr.bf16.vlgmr.msra.gmra.mrb[4].mxu1 %v381_v4 }
 0x143   : > { %v322_v8 = vpop.f32.mrb[0].mxu0  ;;  %v363_v18 = vpop.f32.mrb[0].mxu1 }
 0x144   : > { %v370_v9 = vadd.f32 %v322_v8, %v90_v6  ;;  %v324_v10 = vpop.f32.mrb[1].mxu0  ;;  %v365_v20 = vpop.f32.mrb[1].mxu1  ;;  %v372_v27 = vadd.f32 %v363_v18, %v92_v25 }
 0x145   : > { %v371_v11 = vadd.f32 %v324_v10, %v91_v7  ;;  %v326_v12 = vpop.f32.mrb[2].mxu0  ;;  %v373_v21 = vadd.f32 %v365_v20, %v93_v16  ;;  %v367_v22 = vpop.f32.mrb[2].mxu1 }
 0x146   : > { %v660_v13 = vsub.f32 0.0, %v370_v9  ;;  %v327_v14 = vpop.f32.mrb[3].mxu0  ;;  %v368_v23 = vpop.f32.mrb[3].mxu1  ;;  %v702_v9 = vld [vmem:[#allocation5] sm:$0xff] }
 0x147   : > { %v666_v15 = vsub.f32 0.0, %v371_v11  ;;  %v673_v24 = vsub.f32 0.0, %v373_v21 }
 0x148   : > { %v661_v17 = vmul.f32 1.442695, %v660_v13 }
 0x149   : > { %v667_v19 = vmul.f32 1.442695, %v666_v15  ;;  %v674_v26 = vmul.f32 1.442695, %v673_v24 }
 0x14a   : > { %960 = vpow2.f32 %v661_v17 }
 0x14b   : > { %962 = vpow2.f32 %v667_v19 }
 0x14c   : > { %964 = vpow2.f32 %v674_v26 }
 0x14d   : > { %966 = vtanh.f32 %v372_v27 }
 0x154   : > { %v961_v28 = vpop.eup %960 }
 0x155   : > { %v963_v29 = vpop.eup %962  ;;  %v663_v30 = vadd.f32 1.0, %v961_v28 }
 0x156   : > { %v669_v31 = vadd.f32 1.0, %v963_v29  ;;  %v965_v32 = vpop.eup %964 }
 0x157   : > { %968 = vrcp.f32 %v663_v30  ;;  %v967_v33 = vpop.eup %966  ;;  %v676_v36 = vadd.f32 1.0, %v965_v32 }
 0x158   : > { %970 = vrcp.f32 %v669_v31 }
 0x159   : > { %972 = vrcp.f32 %v676_v36 }
 0x161   : > { %v969_v35 = vpop.eup %968 }
 0x162   : > { %v971_v38 = vpop.eup %970  ;;  %v700_v39 = vmul.f32 %v969_v35, %v967_v33 }
 0x163   : > { %v699_v41 = vmul.f32 %v971_v38, %v698_v34  ;;  %v608_v42 = vpop.f32.mrb[4].mxu0  ;;  %v973_v60 = vpop.eup %972 }
 0x164   : > { %v656_v43 = vadd.f32 %v608_v42, %v376_v37  ;;  %v610_v44 = vpop.f32.mrb[5].mxu0  ;;  %v649_v53 = vpop.f32.mrb[4].mxu1 }
 0x165   : > { %v701_v45 = vadd.f32 %v700_v39, %v699_v41  ;;  %v657_v46 = vadd.f32 %v610_v44, %v377_v40  ;;  %v612_v47 = vpop.f32.mrb[6].mxu0  ;;  %v651_v55 = vpop.f32.mrb[5].mxu1  ;;  %v658_v1 = vadd.f32 %v649_v53, %v378_v61 }
 0x166   : > { %v679_v48 = vsub.f32 0.0, %v656_v43  ;;  %v613_v49 = vpop.f32.mrb[7].mxu0  ;;  %v659_v56 = vadd.f32 %v651_v55, %v379_v51  ;;  %v653_v57 = vpop.f32.mrb[6].mxu1 }
 0x167   : > { %974 = vtanh.f32 %v701_v45  ;;  %710 = vst [vmem:[#allocation3] sm:$0xff] %v701_v45  ;;  %v685_v50 = vsub.f32 0.0, %v657_v46  ;;  %v654_v58 = vpop.f32.mrb[7].mxu1 }
 0x168   : > { %v680_v52 = vmul.f32 1.442695, %v679_v48  ;;  %v692_v59 = vsub.f32 0.0, %v659_v56 }
 0x169   : > { %v686_v54 = vmul.f32 1.442695, %v685_v50 }
 0x16a   : > { %976 = vpow2.f32 %v680_v52  ;;  %v693_v62 = vmul.f32 1.442695, %v692_v59 }
 0x16b   : > { %978 = vpow2.f32 %v686_v54 }
 0x16c   : > { %980 = vpow2.f32 %v693_v62 }
 0x16d   : > { %982 = vtanh.f32 %v658_v1 }
 0x171   : > { %v975_v63 = vpop.eup %974 }
 0x172   : > { %v707_v0 = vmul.f32 %v975_v63, %v973_v60 }
 0x174   : > { %v977_v2 = vpop.eup %976  ;;  %712 = vst [vmem:[#allocation2] sm:$0xff] %v707_v0  ;;  %v714_v3 = vpack.c.bf16 %v707_v0, %v707_v0 }
 0x175   : > { %v979_v4 = vpop.eup %978  ;;  %v682_v5 = vadd.f32 1.0, %v977_v2 }
 0x176   : > { %717 = vst [vmem:[%s716_s20] sm:$0xf] %v714_v3  ;;  %v688_v6 = vadd.f32 1.0, %v979_v4  ;;  %v981_v7 = vpop.eup %980 }
 0x177   : > { %984 = vrcp.f32 %v682_v5  ;;  %v983_v8 = vpop.eup %982  ;;  %v695_v11 = vadd.f32 1.0, %v981_v7 }
 0x178   : > { %986 = vrcp.f32 %v688_v6 }
 0x179   : > { %988 = vrcp.f32 %v695_v11 }
 0x181   : > { %v985_v10 = vpop.eup %984 }
 0x182   : > { %v987_v12 = vpop.eup %986  ;;  %v704_v13 = vmul.f32 %v985_v10, %v983_v8 }
 0x183   : > { %v703_v14 = vmul.f32 %v987_v12, %v702_v9  ;;  %v989_v16 = vpop.eup %988 }
 0x185   : > { %v705_v15 = vadd.f32 %v704_v13, %v703_v14 }
 0x187   : > { %990 = vtanh.f32 %v705_v15  ;;  %711 = vst [vmem:[#allocation5] sm:$0xff] %v705_v15 }
 0x190   :  { %85 = sbr.rel (!%p83_p4) target bundleno = 78 (0x4e), region = 71 }
 0x191   : > { %v991_v17 = vpop.eup %990 }
 0x192   : > { %v709_v18 = vmul.f32 %v991_v17, %v989_v16 }
 0x194   : > { %713 = vst [vmem:[#allocation4] sm:$0xff] %v709_v18  ;;  %v718_v19 = vpack.c.bf16 %v709_v18, %v709_v18 }
 0x196   : > { %722 = vst [vmem:[%s721_s24] sm:$0xf] %v718_v19 }
 0x197   :  { %1091 = shalt.err (!%p1088_p9)
}
 0x198   :  { %s1092_s21 = scalar_lea.hbm %s1288_s4, 384 }
 0x199   :  { %p1093_p10 = scmp.ne.s32.totalorder %s1288_s4, %s1092_s21  ;;  %p1096_p11 = scmp.lt.u32.totalorder %s1092_s21, %s1288_s4 }
 0x19b   :  { %p1098_p12 = pnand %p1096_p11, %p1093_p10 }
 0x19d   :  { %1101 = shalt.err (!%p1098_p12)
}
 0x19e   :  { %s1153_s8 = smov 64   ;;  %s1154_s9 = smov 4  }
 0x19f   :  { %734 = dma.vmem_to_hbm [thread:$0]  %s729_s26, 384, %s1288_s4, [#allocation8], %s1153_s8, %s1153_s8, %s1154_s9  }
 0x1a0   :  { %s1155_s12 = smov [#allocation15]  }
 0x1a1   :  { %s740_s13 = sshll.u32 %s1155_s12, 4  ;;  %s741_s13 = int_to_ptr.vmem [resolvable:$true] %s740_s13 }
 0x1a2   :  { %s1102_s14 = scalar_lea.vmem %s741_s13, 384  ;;  %p1107_p0 = scmp.lt.s32.totalorder %s741_s13, %s741_s13 }
 0x1a3   :  { %p1103_p13 = scmp.ne.s32.totalorder %s741_s13, %s1102_s14  ;;  %p1108_p1 = scmp.lt.s32.totalorder %s1102_s14, %s1102_s14 }
 0x1a5   :  { %p1109_p2 = por %p1108_p1, %p1107_p0 }
 0x1a7   :  { %p1110_p3 = pnand %p1109_p2, %p1103_p13 }
 0x1a9   :  { %1113 = shalt.err (!%p1110_p3)
}
 0x1aa   :  { %s1114_s16 = scalar_lea.hbm %s1289_s5, 384 }
 0x1ab   :  { %p1115_p4 = scmp.ne.s32.totalorder %s1289_s5, %s1114_s16  ;;  %p1118_p5 = scmp.lt.u32.totalorder %s1114_s16, %s1289_s5 }
 0x1ad   :  { %p1120_p6 = pnand %p1118_p5, %p1115_p4 }
 0x1af   :  { %1123 = shalt.err (!%p1120_p6)
}
 0x1b0   :  { %746 = dma.vmem_to_hbm [thread:$0]  %s741_s13, 384, %s1289_s5, [#allocation16], %s1153_s8, %s1153_s8, %s1154_s9  }
 0x1b1   :  { %1134 = dma.done.wait [#allocation8], 384  }
 0x1b2   :  { %1135 = vsyncadd [#allocation8], 4294966912 }
 0x1b3   :  { %1136 = dma.done.wait [#allocation16], 384  }
 0x1b4   :  { %1137 = vsyncadd [#allocation16], 4294966912 }
 0x1b5   :  { %753 = vsyncpa [#allocation7], 1 }
 0x1b6   :  { %754 = vsyncpa [#allocation10], 1 }
 0x1b7   :  { %755 = vsyncpa [#allocation13], 1 }
 0x1b8   :  { %756 = vsyncpa [#allocation8], 1 }
 0x1b9   :  { %757 = vsyncpa [#allocation16], 1 }

// kernel: lipread_forward.15
= control target key start
LH: loop header
LB: loop body
LE: loop exit
PB: predicated region body
PF: predicated region fallthrough
CT: control target
= control target key end

     0   :  { %v256_v0 = vmov 0.0   ;;  %vm257_vm0 = vmmov 0   ;;  %v166_v10 = vlaneseq  ;;  %s322_s1 = inlined_call_operand.vmem [shape: bf16[128,128], index: 1, kind: input, shape index: {}]   ;;  %s323_s0 = inlined_call_operand.vmem [shape: bf16[16,128], index: 0, kind: input, shape index: {}]   ;;  %s324_s2 = inlined_call_operand.vmem [shape: f32[1,128], index: 2, kind: input, shape index: {}]   ;;  %s325_s3 = inlined_call_operand.vmem [shape: f32[1,128], index: 3, kind: input, shape index: {}]   ;;  %s326_s4 = inlined_call_operand.vmem [shape: f32[16,128], index: 4, kind: output, shape index: {}]  }
   0x1   :  { %217 = vmatprep.subr.bf16.mxu0 %v256_v0  ;;  %v239_v1 = vld [vmem:[%s322_s1] sm:$0xff]   ;;  %233 = vmatprep.mubr.msk.bf16.mxu0 %vm257_vm0, %v256_v0  ;;  %v240_v2 = vld [vmem:[%s322_s1 + $0x8] sm:$0xff]   ;;  %v241_v3 = vld [vmem:[%s322_s1 + $0x10] sm:$0xff]  }
   0x2   :  { %218 = vmatpush3.bf16.msra.mxu0 %v239_v1  ;;  %v242_v4 = vld [vmem:[%s322_s1 + $0x18] sm:$0xff]   ;;  %v243_v5 = vld [vmem:[%s322_s1 + $0x20] sm:$0xff]   ;;  %v244_v6 = vld [vmem:[%s322_s1 + $0x28] sm:$0xff]   ;;  %v167_v12 = vand.u32 127, %v166_v10 }
   0x3   :  { %219 = vmatprep.subr.bf16.mxu0 %v256_v0  ;;  %v245_v7 = vld [vmem:[%s322_s1 + $0x30] sm:$0xff]   ;;  %v246_v8 = vld [vmem:[%s322_s1 + $0x38] sm:$0xff]   ;;  %v247_v9 = vld [vmem:[%s323_s0] sm:$0xff]  }
   0x4   :  { %v206_v11 = vld [vmem:[%s324_s2] ss:$0 sm:$0xff]  ;;  %vm168_vm1 = vcmp.lt.s32.totalorder %v167_v12, 10 }
   0x5   :  { %v207_v14 = vld [vmem:[%s325_s3] ss:$0 sm:$0xff] }
   0x6   :  { %220 = vmatpush3.bf16.msra.mxu0 %v240_v2 }
   0x7   :  { %221 = vmatprep.subr.bf16.mxu0 %v256_v0 }
   0xa   :  { %222 = vmatpush3.bf16.msra.mxu0 %v241_v3 }
   0xb   :  { %223 = vmatprep.subr.bf16.mxu0 %v256_v0 }
   0xe   :  { %224 = vmatpush3.bf16.msra.mxu0 %v242_v4 }
   0xf   :  { %225 = vmatprep.subr.bf16.mxu0 %v256_v0 }
  0x12   :  { %226 = vmatpush3.bf16.msra.mxu0 %v243_v5 }
  0x13   :  { %227 = vmatprep.subr.bf16.mxu0 %v256_v0 }
  0x16   :  { %228 = vmatpush3.bf16.msra.mxu0 %v244_v6 }
  0x17   :  { %229 = vmatprep.subr.bf16.mxu0 %v256_v0 }
  0x1a   :  { %230 = vmatpush3.bf16.msra.mxu0 %v245_v7 }
  0x1b   :  { %231 = vmatprep.subr.bf16.mxu0 %v256_v0 }
  0x1e   :  { %232 = vmatpush3.bf16.msra.mxu0 %v246_v8 }
  0x21   :  { %234 = vmatmul.mubr.bf16.vlgmr.msra.gmra.mrb[0].mxu0 %v247_v9 }
  0xf4   :  { %v132_v13 = vpop.f32.mrb[0].mxu0 }
  0xf5   :  { %v155_v15 = vmul.f32 %v206_v11, %v132_v13  ;;  %v235_v16 = vpop.f32.mrb[1].mxu0 }
  0xf6   :  { %v135_v17 = vpop.f32.mrb[2].mxu0 }
  0xf7   :  { %v156_v18 = vmul.f32 %v206_v11, %v135_v17  ;;  %v236_v19 = vpop.f32.mrb[3].mxu0  ;;  %v164_v20 = vadd.f32 %v207_v14, %v155_v15 }
  0xf9   :  { %v169_v21 = vsel %vm168_vm1, %v164_v20, -1e+30  ;;  %v165_v22 = vadd.f32 %v207_v14, %v156_v18 }
  0xfa   :  { %171 = vmax.xlane.f32.xlu0 %v169_v21 }
  0xfb   :  { %v170_v23 = vsel %vm168_vm1, %v165_v22, -1e+30 }
  0xfe   :  { %173 = vmax.xlane.f32.xlu0 %v170_v23 }
 0x187   :  { %v172_v24 = vpop.xlane.xlu0 %171 }
 0x188   :  { %v175_v25 = vsub.f32 %v169_v21, %v172_v24 }
 0x18a   :  { %v177_v26 = vmul.f32 1.442695, %v175_v25 }
 0x18b   :  { %v174_v27 = vpop.xlane.xlu0 %173 }
 0x18c   :  { %v176_v28 = vsub.f32 %v170_v23, %v174_v27  ;;  %248 = vpow2.f32 %v177_v26 }
 0x18e   :  { %v179_v29 = vmul.f32 1.442695, %v176_v28 }
 0x190   :  { %250 = vpow2.f32 %v179_v29 }
 0x196   :  { %v249_v30 = vpop.eup %248 }
 0x197   :  { %181 = vadd.xlane.f32.xlu1 %v249_v30 }
 0x19a   :  { %v251_v31 = vpop.eup %250 }
 0x19b   :  { %183 = vadd.xlane.f32.xlu1 %v251_v31 }
 0x224   :  { %v182_v32 = vpop.xlane.xlu1 %181 }
 0x225   :  { %252 = vlog2.f32 %v182_v32 }
 0x228   :  { %v184_v33 = vpop.xlane.xlu1 %183 }
 0x229   :  { %254 = vlog2.f32 %v184_v33 }
 0x22f   :  { %v253_v34 = vpop.eup %252 }
 0x230   :  { %v186_v35 = vmul.f32 0.6931472, %v253_v34 }
 0x232   :  { %v189_v36 = vsub.f32 %v175_v25, %v186_v35 }
 0x233   :  { %v255_v37 = vpop.eup %254 }
 0x234   :  { %191 = vst [vmem:[%s326_s4] sm:$0xff] %v189_v36  ;;  %v188_v38 = vmul.f32 0.6931472, %v255_v37 }
 0x236   :  { %v190_v39 = vsub.f32 %v176_v28, %v188_v38 }
 0x238   :  { %192 = vst [vmem:[%s326_s4 + $0x8] sm:$0xff] %v190_v39 }

</bundles_post_ra>
